<compile_context>
chip_gen: v7x
topology: tpu7x:2x2x1
jax: 0.10.0
libtpu: 0.0.40
codegen_flags: <defaults>
</compile_context>

<pallas_src>
import functools

import jax
import jax.numpy as jnp
from jax import lax
from jax.experimental import pallas as pl
from jax.experimental.pallas import tpu as pltpu


# ----------------------------------------------------------------------------
# Pallas kernel 1: fused 3x3 conv + folded BN + ReLU (no im2col in HBM).
#
# The (H+2, W+2) zero-padded map is flattened to Np = (H+2)*(W+2) rows and
# extended with E = W+3 zero rows at both ends.  For tap (kh, kw) the operand is
# the contiguous slice rows [E + (kh-1)*(W+2) + (kw-1), +Np) -- for interior
# pixels this indexes exactly the correct neighbour (the horizontal pad columns
# absorb the +/-1 column shifts), and the border rows are masked to zero in the
# epilogue so the output can feed the next conv unchanged.
# ----------------------------------------------------------------------------
def conv3x3_bn_relu(x_ext, w9, scale, bias, mask, H, W):
    """x_ext: (B, Np + 2E, Cin) bf16 extended flattened padded map.
       w9:    (9, Cin, Cout) bf16, tap-major (k = kh*3 + kw).
       scale, bias: (Cout,) f32 folded BatchNorm.
       mask:  (Np, 1) f32, 1 on interior pixels, 0 on the border.
       Returns (B, Np, Cout) bf16 with zero border rows."""
    B, Next, Cin = x_ext.shape
    Np = (H + 2) * (W + 2)
    E = W + 3
    assert Next == Np + 2 * E
    Cout = w9.shape[2]
    assert Cin % 128 == 0 and Cout % 128 == 0

    s_b = scale.reshape(1, Cout).astype(jnp.float32)
    b_b = bias.reshape(1, Cout).astype(jnp.float32)

    def kernel(x_ref, w_ref, s_ref, b_ref, m_ref, o_ref):
        acc = None
        for kh in range(3):
            for kw in range(3):
                off = E + (kh - 1) * (W + 2) + (kw - 1)          # static offset
                tap = jnp.dot(x_ref[off:off + Np, :], w_ref[kh * 3 + kw],
                              preferred_element_type=jnp.float32)
                acc = tap if acc is None else acc + tap
        y = jnp.maximum(acc * s_ref[...] + b_ref[...], 0.0) * m_ref[...]
        o_ref[...] = y.astype(o_ref.dtype)

    return pl.pallas_call(
        kernel,
        out_shape=jax.ShapeDtypeStruct((B, Np, Cout), jnp.bfloat16),
        grid_spec=pltpu.PrefetchScalarGridSpec(
            num_scalar_prefetch=0,
            grid=(B,),
            in_specs=[
                pl.BlockSpec((None, Next, Cin), lambda b: (b, 0, 0)),  # act slab
                pl.BlockSpec((9, Cin, Cout), lambda b: (0, 0, 0)),     # resident W
                pl.BlockSpec((1, Cout), lambda b: (0, 0)),             # BN scale
                pl.BlockSpec((1, Cout), lambda b: (0, 0)),             # BN bias
                pl.BlockSpec((Np, 1), lambda b: (0, 0)),               # border mask
            ],
            out_specs=pl.BlockSpec((None, Np, Cout), lambda b: (b, 0, 0)),
        ),
        compiler_params=pltpu.CompilerParams(
            dimension_semantics=("parallel",),
            vmem_limit_bytes=32 * 1024 * 1024,
        ),
    )(x_ext, w9, s_b, b_b, mask)


# ----------------------------------------------------------------------------
# Pallas kernel 2: fused depthnet 1x1 GEMM + softmax over D + depth*feat outer
# product.  Weight rows are ordered [feat (C rows), depth (D rows)] so the
# sublane split of logits^T is aligned.  Output is written per batch as
# (C, D, pixels) so the final (B, C, D, H, W) result is a free reshape + slice.
# ----------------------------------------------------------------------------
def depthnet_softmax_outer(h, wd_r, bd_r, D, C):
    """h: (B, Np, 512) bf16; wd_r: (C+D, 512) rows = [feat..., depth...];
       bd_r: (C+D,) in the same order.  Returns (B, C, D, Np) f32 with
       out[b, c, d, p] = softmax_d(depth_logits)[d, p] * feat_logits[c, p]."""
    B, Np, K = h.shape
    DC = C + D
    assert wd_r.shape == (DC, K)

    w_b = wd_r.astype(jnp.bfloat16)
    b_b = bd_r.reshape(DC, 1).astype(jnp.float32)

    def kernel(h_ref, w_ref, b_ref, o_ref):
        # logits^T: (C+D, Np), pixels on the lane axis.
        logits_t = lax.dot_general(
            w_ref[...], h_ref[...],
            dimension_numbers=(((1,), (1,)), ((), ())),
            preferred_element_type=jnp.float32,
        ) + b_ref[...]
        feat = logits_t[:C, :]                      # (C, Np) aligned sublane split
        dep = logits_t[C:, :]                       # (D, Np)
        m = jnp.max(dep, axis=0, keepdims=True)
        e = jnp.exp(dep - m)
        s = jnp.sum(e, axis=0, keepdims=True)
        depth = e * pl.reciprocal(s, approx=True)   # EUP reciprocal
        for c in range(C):                          # one (D, Np) slab per feat ch
            o_ref[c, :, :] = (feat[c:c + 1, :] * depth).astype(o_ref.dtype)

    return pl.pallas_call(
        kernel,
        out_shape=jax.ShapeDtypeStruct((B, C, D, Np), jnp.float32),
        grid_spec=pltpu.PrefetchScalarGridSpec(
            num_scalar_prefetch=0,
            grid=(B,),
            in_specs=[
                pl.BlockSpec((None, Np, K), lambda b: (b, 0, 0)),   # activations
                pl.BlockSpec((DC, K), lambda b: (0, 0)),            # resident 1x1 W
                pl.BlockSpec((DC, 1), lambda b: (0, 0)),            # bias
            ],
            out_specs=pl.BlockSpec((None, C, D, Np), lambda b: (b, 0, 0, 0)),
        ),
        compiler_params=pltpu.CompilerParams(
            dimension_semantics=("parallel",),
        ),
    )(h, w_b, b_b)


# ----------------------------------------------------------------------------
# Plain-JAX glue: bilinear upsample (align_corners=True), padding helpers,
# surrogate trunk, parameter prep.
# ----------------------------------------------------------------------------
def upsample2x_bilinear_ac(x):  # x: (B, H, W, C) -> (B, 2H, 2W, C)
    B, H, W, C = x.shape
    Ho, Wo = 2 * H, 2 * W

    def coords(n_in, n_out):
        if n_in == 1:
            z = jnp.zeros((n_out,), jnp.int32)
            return jnp.zeros((n_out,), jnp.float32), z, z
        src = jnp.arange(n_out, dtype=jnp.float32) * (n_in - 1) / (n_out - 1)
        i0 = jnp.clip(jnp.floor(src).astype(jnp.int32), 0, n_in - 2)
        i1 = i0 + 1
        return src - i0.astype(jnp.float32), i0, i1

    fy, y0, y1 = coords(H, Ho)
    fx, x0, x1 = coords(W, Wo)
    top, bot = x[:, y0], x[:, y1]

    def interp_x(v):
        left, right = v[:, :, x0], v[:, :, x1]
        return left * (1.0 - fx)[None, None, :, None] + right * fx[None, None, :, None]

    ti, bi = interp_x(top), interp_x(bot)
    return ti * (1.0 - fy)[None, :, None, None] + bi * fy[None, :, None, None]


def border_mask(H, W):
    Np = (H + 2) * (W + 2)
    hh = jnp.arange(Np) // (W + 2)
    ww = jnp.arange(Np) % (W + 2)
    keep = (hh >= 1) & (hh <= H) & (ww >= 1) & (ww <= W)
    return keep.astype(jnp.float32).reshape(Np, 1)


def conv3x3_w_to_taps(w, cin_pad):
    # torch layout (Cout, Cin, kh, kw) -> (9, cin_pad, Cout), tap k = kh*3 + kw.
    Cout, Cin = w.shape[0], w.shape[1]
    w9 = jnp.transpose(w, (2, 3, 1, 0)).reshape(9, Cin, Cout)
    w9 = jnp.pad(w9, ((0, 0), (0, cin_pad - Cin), (0, 0)))
    return w9.astype(jnp.bfloat16)


def flatten_pad_extend(x_nhwc, cin_pad):
    # NHWC -> bf16, zero channel pad to cin_pad, 1px spatial zero border,
    # flattened to rows, plus E = W+3 zero rows at each end.
    B, H, W, Cin = x_nhwc.shape
    E = W + 3
    xp = jnp.pad(x_nhwc.astype(jnp.bfloat16),
                 ((0, 0), (1, 1), (1, 1), (0, cin_pad - Cin)))
    xf = xp.reshape(B, (H + 2) * (W + 2), cin_pad)
    return jnp.pad(xf, ((0, 0), (E, E), (0, 0)))


def extend_rows(h_flat, W):
    E = W + 3
    return jnp.pad(h_flat, ((0, 0), (E, E), (0, 0)))


def im2col3x3(x):  # reference path only: (B,H,W,C) -> (B*H*W, 9*C)
    B, H, W, C = x.shape
    xp = jnp.pad(x, ((0, 0), (1, 1), (1, 1), (0, 0)))
    cols = []
    for kh in range(3):
        for kw in range(3):
            cols.append(xp[:, kh: kh + H, kw: kw + W, :])
    return jnp.concatenate(cols, axis=-1).reshape(B * H * W, 9 * C)


def conv3x3_w_to_mat(w):  # reference path only
    return jnp.transpose(w, (2, 3, 1, 0)).reshape(-1, w.shape[0])


def fold_bn(gamma, beta, mean, var, eps=1e-5):
    scale = gamma / jnp.sqrt(var + eps)
    return scale, beta - mean * scale


def trunk_surrogate(x_nchw, p4, p5):
    # TODO(synk): stands in for EfficientNet-b0 feature extraction.
    x = jnp.transpose(x_nchw, (0, 2, 3, 1))  # NHWC

    def avgpool(v, k):
        B, H, W, C = v.shape
        return v.reshape(B, H // k, k, W // k, k, C).mean(axis=(2, 4))

    red4 = avgpool(x, 16) @ p4  # (B, H/16, W/16, 112)
    red5 = avgpool(x, 32) @ p5  # (B, H/32, W/32, 320)
    return red4, red5


# ----------------------------------------------------------------------------
# CamEncode forward
# ----------------------------------------------------------------------------
def init_params(key, D, C):
    ks = jax.random.split(key, 16)
    n = lambda k, shp, std: jax.random.normal(k, shp, jnp.float32) * std
    p = {}
    p["p4"] = n(ks[0], (3, 112), 1.0 / jnp.sqrt(3.0))
    p["p5"] = n(ks[1], (3, 320), 1.0 / jnp.sqrt(3.0))
    # Up.conv[0]: Conv2d(432, 512, 3, pad=1, bias=False) + BN
    p["w1"] = n(ks[2], (512, 432, 3, 3), 1.0 / jnp.sqrt(432.0 * 9.0))
    p["g1"] = 1.0 + 0.1 * n(ks[3], (512,), 1.0)
    p["b1"] = 0.1 * n(ks[4], (512,), 1.0)
    p["m1"] = 0.1 * n(ks[5], (512,), 1.0)
    p["v1"] = 1.0 + 0.1 * jnp.abs(n(ks[6], (512,), 1.0))
    # Up.conv[3]: Conv2d(512, 512, 3, pad=1, bias=False) + BN
    p["w2"] = n(ks[7], (512, 512, 3, 3), 1.0 / jnp.sqrt(512.0 * 9.0))
    p["g2"] = 1.0 + 0.1 * n(ks[8], (512,), 1.0)
    p["b2"] = 0.1 * n(ks[9], (512,), 1.0)
    p["m2"] = 0.1 * n(ks[10], (512,), 1.0)
    p["v2"] = 1.0 + 0.1 * jnp.abs(n(ks[11], (512,), 1.0))
    # depthnet: Conv2d(512, D + C, 1)
    p["wd"] = n(ks[12], (D + C, 512, 1, 1), 1.0 / jnp.sqrt(512.0))
    p["bd"] = 0.1 * n(ks[13], (D + C,), 1.0)
    return p


def build_features(x_nchw, p):
    red4, red5 = trunk_surrogate(x_nchw, p["p4"], p["p5"])
    up = upsample2x_bilinear_ac(red5)                  # Up.up(x1)
    return jnp.concatenate([red4, up], axis=-1)        # torch.cat([x2, x1], dim=1)


def cam_encode_forward(x_nchw, p, D, C):
    cat = build_features(x_nchw, p)                    # (B, H, W, 432) f32
    B, H, W, _ = cat.shape
    mask = border_mask(H, W)                           # (Np, 1) f32

    s1, b1 = fold_bn(p["g1"], p["b1"], p["m1"], p["v1"])
    s2, b2 = fold_bn(p["g2"], p["b2"], p["m2"], p["v2"])
    w9_1 = conv3x3_w_to_taps(p["w1"], cin_pad=512)     # K padded 432 -> 512
    w9_2 = conv3x3_w_to_taps(p["w2"], cin_pad=512)

    # Up.conv: two fused conv3x3 + BN + ReLU Pallas kernels (no im2col in HBM).
    x1 = flatten_pad_extend(cat, cin_pad=512)                      # (B, Np+2E, 512)
    h1 = conv3x3_bn_relu(x1, w9_1, s1, b1, mask, H, W)             # (B, Np, 512) bf16
    h2 = conv3x3_bn_relu(extend_rows(h1, W), w9_2, s2, b2, mask, H, W)

    # depthnet 1x1 conv + softmax over D + outer product, one fused kernel.
    wd = p["wd"].reshape(D + C, 512)
    wd_r = jnp.concatenate([wd[D:], wd[:D]], axis=0)   # feat rows first
    bd_r = jnp.concatenate([p["bd"][D:], p["bd"][:D]])
    out4 = depthnet_softmax_outer(h2, wd_r, bd_r, D, C)   # (B, C, D, Np) f32

    # Free view back to spatial coords; drop the zero border (no transpose pass).
    out = out4.reshape(B, C, D, H + 2, W + 2)[:, :, :, 1:H + 1, 1:W + 1]
    return out


def reference_head(x_nchw, p, D, C):
    """Pure-JAX reference of the same math path (bf16 matmul inputs, f32 acc)."""
    cat = build_features(x_nchw, p)
    B, H, W, _ = cat.shape

    def conv_bn_relu_ref(a_bf16, w, g, be, m, v):
        s, b = fold_bn(g, be, m, v)
        y = jnp.dot(a_bf16, conv3x3_w_to_mat(w).astype(jnp.bfloat16),
                    preferred_element_type=jnp.float32)
        y = jnp.maximum(y * s + b, 0.0)
        return y.astype(jnp.bfloat16)

    h = conv_bn_relu_ref(im2col3x3(cat.astype(jnp.bfloat16)),
                         p["w1"], p["g1"], p["b1"], p["m1"], p["v1"])
    h = conv_bn_relu_ref(im2col3x3(h.reshape(B, H, W, 512)),
                         p["w2"], p["g2"], p["b2"], p["m2"], p["v2"])

    wd = p["wd"].reshape(D + C, 512).T.astype(jnp.bfloat16)    # (512, D+C)
    logits = jnp.dot(h, wd, preferred_element_type=jnp.float32) + p["bd"]
    logits = logits.reshape(B, H, W, D + C)
    depth = jax.nn.softmax(logits[..., :D], axis=-1)
    feat = logits[..., D:D + C]
    new_x = feat[..., :, None] * depth[..., None, :]           # (B, H, W, C, D)
    return new_x.transpose(0, 3, 4, 1, 2)                      # (B, C, D, H, W)


if __name__ == "__main__":
    D, C = 4, 8
    B, Hin, Win = 2, 64, 64

    key = jax.random.PRNGKey(0)
    kx, kp = jax.random.split(key)
    x = jax.random.normal(kx, (B, 3, Hin, Win), jnp.float32)   # NCHW like PyTorch
    params = init_params(kp, D, C)

    fwd = jax.jit(functools.partial(cam_encode_forward, D=D, C=C))
    out = jax.block_until_ready(fwd(x, params))

    assert out.shape == (B, C, D, Hin // 16, Win // 16), out.shape
    assert bool(jnp.all(jnp.isfinite(out)))

    ref = reference_head(x, params, D, C)
    err = float(jnp.max(jnp.abs(out - ref)))
    assert bool(jnp.allclose(out, ref, rtol=2e-2, atol=2e-2)), err

    print("KERNEL_OK")
</pallas_src>

<mosaic_0001>
module attributes {stable_mosaic.version = 11 : i64} {
  func.func @kernel(%arg0: i32, %arg1: memref<1x50x512xbf16, #tpu.memory_space<vmem>>, %arg2: memref<9x512x512xbf16, #tpu.memory_space<vmem>>, %arg3: memref<1x512xf32, #tpu.memory_space<vmem>>, %arg4: memref<1x512xf32, #tpu.memory_space<vmem>>, %arg5: memref<36x1xf32, #tpu.memory_space<vmem>>, %arg6: memref<1x36x512xbf16, #tpu.memory_space<vmem>>) attributes {dimension_semantics = [#tpu.dimension_semantics<parallel>], iteration_bounds = array<i64: 2>, scalar_prefetch = 0 : i64, scratch_operands = 0 : i64, tpu.core_type = #tpu.core_type<tc>, window_params = [{transform_indices = @transform_0, window_bounds = array<i64: 1, 50, 512>}, {pipeline_mode = #tpu.pipeline_mode<synchronous>, transform_indices = @transform_1, window_bounds = array<i64: 9, 512, 512>}, {pipeline_mode = #tpu.pipeline_mode<synchronous>, transform_indices = @transform_2, window_bounds = array<i64: 1, 512>}, {pipeline_mode = #tpu.pipeline_mode<synchronous>, transform_indices = @transform_3, window_bounds = array<i64: 1, 512>}, {pipeline_mode = #tpu.pipeline_mode<synchronous>, transform_indices = @transform_4, window_bounds = array<i64: 36, 1>}, {transform_indices = @transform_5, window_bounds = array<i64: 1, 36, 512>}]} {
    %c0 = arith.constant 0 : index
    %c0_0 = arith.constant 0 : index
    %c0_1 = arith.constant 0 : index
    %0 = vector.load %arg1[%c0, %c0_0, %c0_1] : memref<1x50x512xbf16, #tpu.memory_space<vmem>>, vector<1x36x512xbf16>
    %1 = vector.shape_cast %0 : vector<1x36x512xbf16> to vector<36x512xbf16>
    %c0_2 = arith.constant 0 : index
    %c0_3 = arith.constant 0 : index
    %c0_4 = arith.constant 0 : index
    %2 = vector.load %arg2[%c0_2, %c0_3, %c0_4] : memref<9x512x512xbf16, #tpu.memory_space<vmem>>, vector<1x512x512xbf16>
    %3 = vector.shape_cast %2 : vector<1x512x512xbf16> to vector<512x512xbf16>
    %cst = arith.constant dense<0.000000e+00> : vector<36x512xf32>
    %4 = tpu.matmul %1, %3, %cst {dimension_numbers = #tpu.dot_dimension_numbers<[1], [0], [0], [1], [0, 0, 1, 1], [], []>} : vector<36x512xbf16>, vector<512x512xbf16>, vector<36x512xf32> -> vector<36x512xf32>
    %c0_5 = arith.constant 0 : index
    %c1 = arith.constant 1 : index
    %c0_6 = arith.constant 0 : index
    %5 = vector.load %arg1[%c0_5, %c1, %c0_6] : memref<1x50x512xbf16, #tpu.memory_space<vmem>>, vector<1x36x512xbf16>
    %6 = vector.shape_cast %5 : vector<1x36x512xbf16> to vector<36x512xbf16>
    %c1_7 = arith.constant 1 : index
    %c0_8 = arith.constant 0 : index
    %c0_9 = arith.constant 0 : index
    %7 = vector.load %arg2[%c1_7, %c0_8, %c0_9] : memref<9x512x512xbf16, #tpu.memory_space<vmem>>, vector<1x512x512xbf16>
    %8 = vector.shape_cast %7 : vector<1x512x512xbf16> to vector<512x512xbf16>
    %cst_10 = arith.constant dense<0.000000e+00> : vector<36x512xf32>
    %9 = tpu.matmul %6, %8, %cst_10 {dimension_numbers = #tpu.dot_dimension_numbers<[1], [0], [0], [1], [0, 0, 1, 1], [], []>} : vector<36x512xbf16>, vector<512x512xbf16>, vector<36x512xf32> -> vector<36x512xf32>
    %10 = arith.addf %4, %9 : vector<36x512xf32>
    %c0_11 = arith.constant 0 : index
    %c2 = arith.constant 2 : index
    %c0_12 = arith.constant 0 : index
    %11 = vector.load %arg1[%c0_11, %c2, %c0_12] : memref<1x50x512xbf16, #tpu.memory_space<vmem>>, vector<1x36x512xbf16>
    %12 = vector.shape_cast %11 : vector<1x36x512xbf16> to vector<36x512xbf16>
    %c2_13 = arith.constant 2 : index
    %c0_14 = arith.constant 0 : index
    %c0_15 = arith.constant 0 : index
    %13 = vector.load %arg2[%c2_13, %c0_14, %c0_15] : memref<9x512x512xbf16, #tpu.memory_space<vmem>>, vector<1x512x512xbf16>
    %14 = vector.shape_cast %13 : vector<1x512x512xbf16> to vector<512x512xbf16>
    %cst_16 = arith.constant dense<0.000000e+00> : vector<36x512xf32>
    %15 = tpu.matmul %12, %14, %cst_16 {dimension_numbers = #tpu.dot_dimension_numbers<[1], [0], [0], [1], [0, 0, 1, 1], [], []>} : vector<36x512xbf16>, vector<512x512xbf16>, vector<36x512xf32> -> vector<36x512xf32>
    %16 = arith.addf %10, %15 : vector<36x512xf32>
    %c0_17 = arith.constant 0 : index
    %c6 = arith.constant 6 : index
    %c0_18 = arith.constant 0 : index
    %17 = vector.load %arg1[%c0_17, %c6, %c0_18] : memref<1x50x512xbf16, #tpu.memory_space<vmem>>, vector<1x36x512xbf16>
    %18 = vector.shape_cast %17 : vector<1x36x512xbf16> to vector<36x512xbf16>
    %c3 = arith.constant 3 : index
    %c0_19 = arith.constant 0 : index
    %c0_20 = arith.constant 0 : index
    %19 = vector.load %arg2[%c3, %c0_19, %c0_20] : memref<9x512x512xbf16, #tpu.memory_space<vmem>>, vector<1x512x512xbf16>
    %20 = vector.shape_cast %19 : vector<1x512x512xbf16> to vector<512x512xbf16>
    %cst_21 = arith.constant dense<0.000000e+00> : vector<36x512xf32>
    %21 = tpu.matmul %18, %20, %cst_21 {dimension_numbers = #tpu.dot_dimension_numbers<[1], [0], [0], [1], [0, 0, 1, 1], [], []>} : vector<36x512xbf16>, vector<512x512xbf16>, vector<36x512xf32> -> vector<36x512xf32>
    %22 = arith.addf %16, %21 : vector<36x512xf32>
    %c0_22 = arith.constant 0 : index
    %c7 = arith.constant 7 : index
    %c0_23 = arith.constant 0 : index
    %23 = vector.load %arg1[%c0_22, %c7, %c0_23] : memref<1x50x512xbf16, #tpu.memory_space<vmem>>, vector<1x36x512xbf16>
    %24 = vector.shape_cast %23 : vector<1x36x512xbf16> to vector<36x512xbf16>
    %c4 = arith.constant 4 : index
    %c0_24 = arith.constant 0 : index
    %c0_25 = arith.constant 0 : index
    %25 = vector.load %arg2[%c4, %c0_24, %c0_25] : memref<9x512x512xbf16, #tpu.memory_space<vmem>>, vector<1x512x512xbf16>
    %26 = vector.shape_cast %25 : vector<1x512x512xbf16> to vector<512x512xbf16>
    %cst_26 = arith.constant dense<0.000000e+00> : vector<36x512xf32>
    %27 = tpu.matmul %24, %26, %cst_26 {dimension_numbers = #tpu.dot_dimension_numbers<[1], [0], [0], [1], [0, 0, 1, 1], [], []>} : vector<36x512xbf16>, vector<512x512xbf16>, vector<36x512xf32> -> vector<36x512xf32>
    %28 = arith.addf %22, %27 : vector<36x512xf32>
    %c0_27 = arith.constant 0 : index
    %c8 = arith.constant 8 : index
    %c0_28 = arith.constant 0 : index
    %29 = vector.load %arg1[%c0_27, %c8, %c0_28] : memref<1x50x512xbf16, #tpu.memory_space<vmem>>, vector<1x36x512xbf16>
    %30 = vector.shape_cast %29 : vector<1x36x512xbf16> to vector<36x512xbf16>
    %c5 = arith.constant 5 : index
    %c0_29 = arith.constant 0 : index
    %c0_30 = arith.constant 0 : index
    %31 = vector.load %arg2[%c5, %c0_29, %c0_30] : memref<9x512x512xbf16, #tpu.memory_space<vmem>>, vector<1x512x512xbf16>
    %32 = vector.shape_cast %31 : vector<1x512x512xbf16> to vector<512x512xbf16>
    %cst_31 = arith.constant dense<0.000000e+00> : vector<36x512xf32>
    %33 = tpu.matmul %30, %32, %cst_31 {dimension_numbers = #tpu.dot_dimension_numbers<[1], [0], [0], [1], [0, 0, 1, 1], [], []>} : vector<36x512xbf16>, vector<512x512xbf16>, vector<36x512xf32> -> vector<36x512xf32>
    %34 = arith.addf %28, %33 : vector<36x512xf32>
    %c0_32 = arith.constant 0 : index
    %c12 = arith.constant 12 : index
    %c0_33 = arith.constant 0 : index
    %35 = vector.load %arg1[%c0_32, %c12, %c0_33] : memref<1x50x512xbf16, #tpu.memory_space<vmem>>, vector<1x36x512xbf16>
    %36 = vector.shape_cast %35 : vector<1x36x512xbf16> to vector<36x512xbf16>
    %c6_34 = arith.constant 6 : index
    %c0_35 = arith.constant 0 : index
    %c0_36 = arith.constant 0 : index
    %37 = vector.load %arg2[%c6_34, %c0_35, %c0_36] : memref<9x512x512xbf16, #tpu.memory_space<vmem>>, vector<1x512x512xbf16>
    %38 = vector.shape_cast %37 : vector<1x512x512xbf16> to vector<512x512xbf16>
    %cst_37 = arith.constant dense<0.000000e+00> : vector<36x512xf32>
    %39 = tpu.matmul %36, %38, %cst_37 {dimension_numbers = #tpu.dot_dimension_numbers<[1], [0], [0], [1], [0, 0, 1, 1], [], []>} : vector<36x512xbf16>, vector<512x512xbf16>, vector<36x512xf32> -> vector<36x512xf32>
    %40 = arith.addf %34, %39 : vector<36x512xf32>
    %c0_38 = arith.constant 0 : index
    %c13 = arith.constant 13 : index
    %c0_39 = arith.constant 0 : index
    %41 = vector.load %arg1[%c0_38, %c13, %c0_39] : memref<1x50x512xbf16, #tpu.memory_space<vmem>>, vector<1x36x512xbf16>
    %42 = vector.shape_cast %41 : vector<1x36x512xbf16> to vector<36x512xbf16>
    %c7_40 = arith.constant 7 : index
    %c0_41 = arith.constant 0 : index
    %c0_42 = arith.constant 0 : index
    %43 = vector.load %arg2[%c7_40, %c0_41, %c0_42] : memref<9x512x512xbf16, #tpu.memory_space<vmem>>, vector<1x512x512xbf16>
    %44 = vector.shape_cast %43 : vector<1x512x512xbf16> to vector<512x512xbf16>
    %cst_43 = arith.constant dense<0.000000e+00> : vector<36x512xf32>
    %45 = tpu.matmul %42, %44, %cst_43 {dimension_numbers = #tpu.dot_dimension_numbers<[1], [0], [0], [1], [0, 0, 1, 1], [], []>} : vector<36x512xbf16>, vector<512x512xbf16>, vector<36x512xf32> -> vector<36x512xf32>
    %46 = arith.addf %40, %45 : vector<36x512xf32>
    %c0_44 = arith.constant 0 : index
    %c14 = arith.constant 14 : index
    %c0_45 = arith.constant 0 : index
    %47 = vector.load %arg1[%c0_44, %c14, %c0_45] : memref<1x50x512xbf16, #tpu.memory_space<vmem>>, vector<1x36x512xbf16>
    %48 = vector.shape_cast %47 : vector<1x36x512xbf16> to vector<36x512xbf16>
    %c8_46 = arith.constant 8 : index
    %c0_47 = arith.constant 0 : index
    %c0_48 = arith.constant 0 : index
    %49 = vector.load %arg2[%c8_46, %c0_47, %c0_48] : memref<9x512x512xbf16, #tpu.memory_space<vmem>>, vector<1x512x512xbf16>
    %50 = vector.shape_cast %49 : vector<1x512x512xbf16> to vector<512x512xbf16>
    %cst_49 = arith.constant dense<0.000000e+00> : vector<36x512xf32>
    %51 = tpu.matmul %48, %50, %cst_49 {dimension_numbers = #tpu.dot_dimension_numbers<[1], [0], [0], [1], [0, 0, 1, 1], [], []>} : vector<36x512xbf16>, vector<512x512xbf16>, vector<36x512xf32> -> vector<36x512xf32>
    %52 = arith.addf %46, %51 : vector<36x512xf32>
    %c0_50 = arith.constant 0 : index
    %c0_51 = arith.constant 0 : index
    %53 = vector.load %arg3[%c0_50, %c0_51] : memref<1x512xf32, #tpu.memory_space<vmem>>, vector<1x512xf32>
    %54 = vector.broadcast %53 : vector<1x512xf32> to vector<36x512xf32>
    %55 = arith.mulf %52, %54 : vector<36x512xf32>
    %c0_52 = arith.constant 0 : index
    %c0_53 = arith.constant 0 : index
    %56 = vector.load %arg4[%c0_52, %c0_53] : memref<1x512xf32, #tpu.memory_space<vmem>>, vector<1x512xf32>
    %57 = vector.broadcast %56 : vector<1x512xf32> to vector<36x512xf32>
    %58 = arith.addf %55, %57 : vector<36x512xf32>
    %cst_54 = arith.constant 0.000000e+00 : f32
    %59 = vector.broadcast %cst_54 : f32 to vector<36x512xf32>
    %60 = arith.maximumf %58, %59 : vector<36x512xf32>
    %c0_55 = arith.constant 0 : index
    %c0_56 = arith.constant 0 : index
    %61 = vector.load %arg5[%c0_55, %c0_56] : memref<36x1xf32, #tpu.memory_space<vmem>>, vector<36x1xf32>
    %62 = vector.broadcast %61 : vector<36x1xf32> to vector<36x512xf32>
    %63 = arith.mulf %60, %62 : vector<36x512xf32>
    %64 = arith.truncf %63 : vector<36x512xf32> to vector<36x512xbf16>
    %c0_57 = arith.constant 0 : index
    %c0_58 = arith.constant 0 : index
    %c0_59 = arith.constant 0 : index
    %65 = vector.load %arg6[%c0_57, %c0_58, %c0_59] : memref<1x36x512xbf16, #tpu.memory_space<vmem>>, vector<1x36x512xbf16>
    %66 = vector.shape_cast %65 : vector<1x36x512xbf16> to vector<36x512xbf16>
    %67 = vector.shape_cast %64 : vector<36x512xbf16> to vector<1x36x512xbf16>
    tpu.vector_store %arg6[%c0_57, %c0_58, %c0_59], %67 {strides = array<i32>} : memref<1x36x512xbf16, #tpu.memory_space<vmem>>, vector<1x36x512xbf16>,
    return
  }
  func.func @transform_0(%arg0: i32) -> (i32, i32, i32) {
    %c0_i32 = arith.constant 0 : i32
    %c0_i32_0 = arith.constant 0 : i32
    %c0_i32_1 = arith.constant 0 : i32
    return %arg0, %c0_i32, %c0_i32_0 : i32, i32, i32
  }
  func.func @transform_1(%arg0: i32) -> (i32, i32, i32) {
    %c0_i32 = arith.constant 0 : i32
    %c0_i32_0 = arith.constant 0 : i32
    %c0_i32_1 = arith.constant 0 : i32
    %c0_i32_2 = arith.constant 0 : i32
    return %c0_i32, %c0_i32_0, %c0_i32_1 : i32, i32, i32
  }
  func.func @transform_2(%arg0: i32) -> (i32, i32) {
    %c0_i32 = arith.constant 0 : i32
    %c0_i32_0 = arith.constant 0 : i32
    %c0_i32_1 = arith.constant 0 : i32
    return %c0_i32, %c0_i32_0 : i32, i32
  }
  func.func @transform_3(%arg0: i32) -> (i32, i32) {
    %c0_i32 = arith.constant 0 : i32
    %c0_i32_0 = arith.constant 0 : i32
    %c0_i32_1 = arith.constant 0 : i32
    return %c0_i32, %c0_i32_0 : i32, i32
  }
  func.func @transform_4(%arg0: i32) -> (i32, i32) {
    %c0_i32 = arith.constant 0 : i32
    %c0_i32_0 = arith.constant 0 : i32
    %c0_i32_1 = arith.constant 0 : i32
    return %c0_i32, %c0_i32_0 : i32, i32
  }
  func.func @transform_5(%arg0: i32) -> (i32, i32, i32) {
    %c0_i32 = arith.constant 0 : i32
    %c0_i32_0 = arith.constant 0 : i32
    %c0_i32_1 = arith.constant 0 : i32
    return %arg0, %c0_i32, %c0_i32_0 : i32, i32, i32
  }
}

module attributes {stable_mosaic.version = 11 : i64} {
  func.func @kernel(%arg0: i32, %arg1: memref<1x36x512xbf16, #tpu.memory_space<vmem>>, %arg2: memref<12x512xbf16, #tpu.memory_space<vmem>>, %arg3: memref<12x1xf32, #tpu.memory_space<vmem>>, %arg4: memref<1x8x4x36xf32, #tpu.memory_space<vmem>>) attributes {dimension_semantics = [#tpu.dimension_semantics<parallel>], iteration_bounds = array<i64: 2>, scalar_prefetch = 0 : i64, scratch_operands = 0 : i64, tpu.core_type = #tpu.core_type<tc>, window_params = [{transform_indices = @transform_0, window_bounds = array<i64: 1, 36, 512>}, {pipeline_mode = #tpu.pipeline_mode<synchronous>, transform_indices = @transform_1, window_bounds = array<i64: 12, 512>}, {pipeline_mode = #tpu.pipeline_mode<synchronous>, transform_indices = @transform_2, window_bounds = array<i64: 12, 1>}, {transform_indices = @transform_3, window_bounds = array<i64: 1, 8, 4, 36>}]} {
    %c0 = arith.constant 0 : index
    %c0_0 = arith.constant 0 : index
    %0 = vector.load %arg2[%c0, %c0_0] : memref<12x512xbf16, #tpu.memory_space<vmem>>, vector<12x512xbf16>
    %c0_1 = arith.constant 0 : index
    %c0_2 = arith.constant 0 : index
    %c0_3 = arith.constant 0 : index
    %1 = vector.load %arg1[%c0_1, %c0_2, %c0_3] : memref<1x36x512xbf16, #tpu.memory_space<vmem>>, vector<1x36x512xbf16>
    %2 = vector.shape_cast %1 : vector<1x36x512xbf16> to vector<36x512xbf16>
    %cst = arith.constant dense<0.000000e+00> : vector<12x36xf32>
    %3 = tpu.matmul %0, %2, %cst {dimension_numbers = #tpu.dot_dimension_numbers<[1], [1], [0], [0], [0, 0, 1, 0], [], []>} : vector<12x512xbf16>, vector<36x512xbf16>, vector<12x36xf32> -> vector<12x36xf32>
    %c0_4 = arith.constant 0 : index
    %c0_5 = arith.constant 0 : index
    %4 = vector.load %arg3[%c0_4, %c0_5] : memref<12x1xf32, #tpu.memory_space<vmem>>, vector<12x1xf32>
    %5 = vector.broadcast %4 : vector<12x1xf32> to vector<12x36xf32>
    %6 = arith.addf %3, %5 : vector<12x36xf32>
    %7 = vector.extract_strided_slice %6 {offsets = [0, 0], sizes = [8, 36], strides = [1, 1]} : vector<12x36xf32> to vector<8x36xf32>
    %8 = vector.extract_strided_slice %6 {offsets = [8, 0], sizes = [4, 36], strides = [1, 1]} : vector<12x36xf32> to vector<4x36xf32>
    %cst_6 = arith.constant dense<0xFF800000> : vector<36xf32>
    %9 = vector.multi_reduction <maximumf>, %8, %cst_6 [0] : vector<4x36xf32> to vector<36xf32>
    %10 = vector.shape_cast %9 : vector<36xf32> to vector<1x36xf32>
    %11 = vector.broadcast %10 : vector<1x36xf32> to vector<4x36xf32>
    %12 = arith.subf %8, %11 : vector<4x36xf32>
    %13 = math.exp %12 : vector<4x36xf32>
    %cst_7 = arith.constant dense<0.000000e+00> : vector<36xf32>
    %14 = vector.multi_reduction <add>, %13, %cst_7 [0] : vector<4x36xf32> to vector<36xf32>
    %15 = vector.shape_cast %14 : vector<36xf32> to vector<1x36xf32>
    %16 = tpu.reciprocal %15 {approx = true} : vector<1x36xf32> -> vector<1x36xf32>
    %17 = vector.broadcast %16 : vector<1x36xf32> to vector<4x36xf32>
    %18 = arith.mulf %13, %17 : vector<4x36xf32>
    %19 = vector.extract_strided_slice %7 {offsets = [0, 0], sizes = [1, 36], strides = [1, 1]} : vector<8x36xf32> to vector<1x36xf32>
    %20 = vector.broadcast %19 : vector<1x36xf32> to vector<4x36xf32>
    %21 = arith.mulf %20, %18 : vector<4x36xf32>
    %c0_8 = arith.constant 0 : index
    %c0_9 = arith.constant 0 : index
    %c0_10 = arith.constant 0 : index
    %c0_11 = arith.constant 0 : index
    %22 = vector.load %arg4[%c0_8, %c0_9, %c0_10, %c0_11] : memref<1x8x4x36xf32, #tpu.memory_space<vmem>>, vector<1x1x4x36xf32>
    %23 = vector.shape_cast %22 : vector<1x1x4x36xf32> to vector<4x36xf32>
    %24 = vector.shape_cast %21 : vector<4x36xf32> to vector<1x1x4x36xf32>
    tpu.vector_store %arg4[%c0_8, %c0_9, %c0_10, %c0_11], %24 {strides = array<i32>} : memref<1x8x4x36xf32, #tpu.memory_space<vmem>>, vector<1x1x4x36xf32>,
    %25 = vector.extract_strided_slice %7 {offsets = [1, 0], sizes = [1, 36], strides = [1, 1]} : vector<8x36xf32> to vector<1x36xf32>
    %26 = vector.broadcast %25 : vector<1x36xf32> to vector<4x36xf32>
    %27 = arith.mulf %26, %18 : vector<4x36xf32>
    %c0_12 = arith.constant 0 : index
    %c1 = arith.constant 1 : index
    %c0_13 = arith.constant 0 : index
    %c0_14 = arith.constant 0 : index
    %28 = vector.load %arg4[%c0_12, %c1, %c0_13, %c0_14] : memref<1x8x4x36xf32, #tpu.memory_space<vmem>>, vector<1x1x4x36xf32>
    %29 = vector.shape_cast %28 : vector<1x1x4x36xf32> to vector<4x36xf32>
    %30 = vector.shape_cast %27 : vector<4x36xf32> to vector<1x1x4x36xf32>
    tpu.vector_store %arg4[%c0_12, %c1, %c0_13, %c0_14], %30 {strides = array<i32>} : memref<1x8x4x36xf32, #tpu.memory_space<vmem>>, vector<1x1x4x36xf32>,
    %31 = vector.extract_strided_slice %7 {offsets = [2, 0], sizes = [1, 36], strides = [1, 1]} : vector<8x36xf32> to vector<1x36xf32>
    %32 = vector.broadcast %31 : vector<1x36xf32> to vector<4x36xf32>
    %33 = arith.mulf %32, %18 : vector<4x36xf32>
    %c0_15 = arith.constant 0 : index
    %c2 = arith.constant 2 : index
    %c0_16 = arith.constant 0 : index
    %c0_17 = arith.constant 0 : index
    %34 = vector.load %arg4[%c0_15, %c2, %c0_16, %c0_17] : memref<1x8x4x36xf32, #tpu.memory_space<vmem>>, vector<1x1x4x36xf32>
    %35 = vector.shape_cast %34 : vector<1x1x4x36xf32> to vector<4x36xf32>
    %36 = vector.shape_cast %33 : vector<4x36xf32> to vector<1x1x4x36xf32>
    tpu.vector_store %arg4[%c0_15, %c2, %c0_16, %c0_17], %36 {strides = array<i32>} : memref<1x8x4x36xf32, #tpu.memory_space<vmem>>, vector<1x1x4x36xf32>,
    %37 = vector.extract_strided_slice %7 {offsets = [3, 0], sizes = [1, 36], strides = [1, 1]} : vector<8x36xf32> to vector<1x36xf32>
    %38 = vector.broadcast %37 : vector<1x36xf32> to vector<4x36xf32>
    %39 = arith.mulf %38, %18 : vector<4x36xf32>
    %c0_18 = arith.constant 0 : index
    %c3 = arith.constant 3 : index
    %c0_19 = arith.constant 0 : index
    %c0_20 = arith.constant 0 : index
    %40 = vector.load %arg4[%c0_18, %c3, %c0_19, %c0_20] : memref<1x8x4x36xf32, #tpu.memory_space<vmem>>, vector<1x1x4x36xf32>
    %41 = vector.shape_cast %40 : vector<1x1x4x36xf32> to vector<4x36xf32>
    %42 = vector.shape_cast %39 : vector<4x36xf32> to vector<1x1x4x36xf32>
    tpu.vector_store %arg4[%c0_18, %c3, %c0_19, %c0_20], %42 {strides = array<i32>} : memref<1x8x4x36xf32, #tpu.memory_space<vmem>>, vector<1x1x4x36xf32>,
    %43 = vector.extract_strided_slice %7 {offsets = [4, 0], sizes = [1, 36], strides = [1, 1]} : vector<8x36xf32> to vector<1x36xf32>
    %44 = vector.broadcast %43 : vector<1x36xf32> to vector<4x36xf32>
    %45 = arith.mulf %44, %18 : vector<4x36xf32>
    %c0_21 = arith.constant 0 : index
    %c4 = arith.constant 4 : index
    %c0_22 = arith.constant 0 : index
    %c0_23 = arith.constant 0 : index
    %46 = vector.load %arg4[%c0_21, %c4, %c0_22, %c0_23] : memref<1x8x4x36xf32, #tpu.memory_space<vmem>>, vector<1x1x4x36xf32>
    %47 = vector.shape_cast %46 : vector<1x1x4x36xf32> to vector<4x36xf32>
    %48 = vector.shape_cast %45 : vector<4x36xf32> to vector<1x1x4x36xf32>
    tpu.vector_store %arg4[%c0_21, %c4, %c0_22, %c0_23], %48 {strides = array<i32>} : memref<1x8x4x36xf32, #tpu.memory_space<vmem>>, vector<1x1x4x36xf32>,
    %49 = vector.extract_strided_slice %7 {offsets = [5, 0], sizes = [1, 36], strides = [1, 1]} : vector<8x36xf32> to vector<1x36xf32>
    %50 = vector.broadcast %49 : vector<1x36xf32> to vector<4x36xf32>
    %51 = arith.mulf %50, %18 : vector<4x36xf32>
    %c0_24 = arith.constant 0 : index
    %c5 = arith.constant 5 : index
    %c0_25 = arith.constant 0 : index
    %c0_26 = arith.constant 0 : index
    %52 = vector.load %arg4[%c0_24, %c5, %c0_25, %c0_26] : memref<1x8x4x36xf32, #tpu.memory_space<vmem>>, vector<1x1x4x36xf32>
    %53 = vector.shape_cast %52 : vector<1x1x4x36xf32> to vector<4x36xf32>
    %54 = vector.shape_cast %51 : vector<4x36xf32> to vector<1x1x4x36xf32>
    tpu.vector_store %arg4[%c0_24, %c5, %c0_25, %c0_26], %54 {strides = array<i32>} : memref<1x8x4x36xf32, #tpu.memory_space<vmem>>, vector<1x1x4x36xf32>,
    %55 = vector.extract_strided_slice %7 {offsets = [6, 0], sizes = [1, 36], strides = [1, 1]} : vector<8x36xf32> to vector<1x36xf32>
    %56 = vector.broadcast %55 : vector<1x36xf32> to vector<4x36xf32>
    %57 = arith.mulf %56, %18 : vector<4x36xf32>
    %c0_27 = arith.constant 0 : index
    %c6 = arith.constant 6 : index
    %c0_28 = arith.constant 0 : index
    %c0_29 = arith.constant 0 : index
    %58 = vector.load %arg4[%c0_27, %c6, %c0_28, %c0_29] : memref<1x8x4x36xf32, #tpu.memory_space<vmem>>, vector<1x1x4x36xf32>
    %59 = vector.shape_cast %58 : vector<1x1x4x36xf32> to vector<4x36xf32>
    %60 = vector.shape_cast %57 : vector<4x36xf32> to vector<1x1x4x36xf32>
    tpu.vector_store %arg4[%c0_27, %c6, %c0_28, %c0_29], %60 {strides = array<i32>} : memref<1x8x4x36xf32, #tpu.memory_space<vmem>>, vector<1x1x4x36xf32>,
    %61 = vector.extract_strided_slice %7 {offsets = [7, 0], sizes = [1, 36], strides = [1, 1]} : vector<8x36xf32> to vector<1x36xf32>
    %62 = vector.broadcast %61 : vector<1x36xf32> to vector<4x36xf32>
    %63 = arith.mulf %62, %18 : vector<4x36xf32>
    %c0_30 = arith.constant 0 : index
    %c7 = arith.constant 7 : index
    %c0_31 = arith.constant 0 : index
    %c0_32 = arith.constant 0 : index
    %64 = vector.load %arg4[%c0_30, %c7, %c0_31, %c0_32] : memref<1x8x4x36xf32, #tpu.memory_space<vmem>>, vector<1x1x4x36xf32>
    %65 = vector.shape_cast %64 : vector<1x1x4x36xf32> to vector<4x36xf32>
    %66 = vector.shape_cast %63 : vector<4x36xf32> to vector<1x1x4x36xf32>
    tpu.vector_store %arg4[%c0_30, %c7, %c0_31, %c0_32], %66 {strides = array<i32>} : memref<1x8x4x36xf32, #tpu.memory_space<vmem>>, vector<1x1x4x36xf32>,
    return
  }
  func.func @transform_0(%arg0: i32) -> (i32, i32, i32) {
    %c0_i32 = arith.constant 0 : i32
    %c0_i32_0 = arith.constant 0 : i32
    %c0_i32_1 = arith.constant 0 : i32
    return %arg0, %c0_i32, %c0_i32_0 : i32, i32, i32
  }
  func.func @transform_1(%arg0: i32) -> (i32, i32) {
    %c0_i32 = arith.constant 0 : i32
    %c0_i32_0 = arith.constant 0 : i32
    %c0_i32_1 = arith.constant 0 : i32
    return %c0_i32, %c0_i32_0 : i32, i32
  }
  func.func @transform_2(%arg0: i32) -> (i32, i32) {
    %c0_i32 = arith.constant 0 : i32
    %c0_i32_0 = arith.constant 0 : i32
    %c0_i32_1 = arith.constant 0 : i32
    return %c0_i32, %c0_i32_0 : i32, i32
  }
  func.func @transform_3(%arg0: i32) -> (i32, i32, i32, i32) {
    %c0_i32 = arith.constant 0 : i32
    %c0_i32_0 = arith.constant 0 : i32
    %c0_i32_1 = arith.constant 0 : i32
    %c0_i32_2 = arith.constant 0 : i32
    return %arg0, %c0_i32, %c0_i32_0, %c0_i32_1 : i32, i32, i32, i32
  }
}

</mosaic_0001>

<bundles_post_ra>
// kernel: cam_encode_forward.5
= control target key start
LH: loop header
LB: loop body
LE: loop exit
PB: predicated region body
PF: predicated region fallthrough
CT: control target
= control target key end

     0   :  { %s588_s12 = smov 0   ;;  %s637_s0 = inlined_call_operand.vmem [shape: bf16[2,36,512], index: 0, kind: input, shape index: {}]   ;;  %s638_s1 = inlined_call_operand.vmem [shape: bf16[12,512], index: 1, kind: input, shape index: {}]   ;;  %s639_s2 = inlined_call_operand.vmem [shape: f32[12,1], index: 2, kind: input, shape index: {}]   ;;  %s640_s3 = inlined_call_operand.vmem [shape: f32[2,8,4,36], index: 3, kind: output, shape index: {}]  }
   0x1 LB: > { %s484_s13 = sadd.s32 4294967295, %s565_s12   ;;  %p488_p0 = scmp.ge.s32.totalorder %s565_s12, 1  ;;  %s565_s12 = sphi %s588_s12, %s13_s12  }
   0x2   : > { %p137_p1 = scmp.lt.s32.totalorder %s565_s12, 3 }
   0x4   : > { %p138_p2 = pnand %p488_p0, %p137_p1 }
   0x5   : > { %p161_p3 = scmp.lt.s32.totalorder (!%p138_p2), %s484_s13, 1  ;;  %v551_v0 = vld [vmem:[%s638_s1 + $0x4] ss:$16 sps:$4 sm:$0x3f] (!%p138_p2)   ;;  %v567_v1 = vmov (!%p138_p2), 0   ;;  %vm354_vm0 = vcmask (!%p138_p2), 289792   ;;  %v374_v51 = vlaneseq (!%p138_p2) }
   0x6   : > { %141 = sbr.rel (%p138_p2) target bundleno = 320 (0x140), region = 32  ;;  %532 = vset.pattern.permute.xlu0 (!%p138_p2), %v567_v1  ;;  %304 = vmatprep.mubr.bf16.mxu1 (!%p138_p2), %v551_v0  ;;  %v554_v2 = vld [vmem:[%s638_s1 + $0xc] ss:$16 sps:$4 sm:$0x3f] (!%p138_p2)   ;;  %v187_v3 = vld [vmem:[%s639_s2 + $0x8] sm:$0xf] (!%p138_p2) }
   0x7   : > { %195 = vperm.xlu0 (!%p138_p2), %532, %v187_v3   ;;  %345 = vmatprep.mubr.bf16.mxu0 (!%p138_p2), %v554_v2  ;;  %v186_v4 = vld [vmem:[%s639_s2] sm:$0xff] (!%p138_p2)  ;;  %v552_v20 = vld [vmem:[%s638_s1 + $0x8] ss:$16 sps:$4 sm:$0x3f] (!%p138_p2)   ;;  %v375_v53 = vshrl.u32 (!%p138_p2), %v374_v51, 7 }
   0x8   : > { %v549_v19 = vld [vmem:[%s638_s1] ss:$16 sps:$4 sm:$0x3f] (!%p138_p2)  }
   0x9   : > { %v376_v54 = vsub.s32 (!%p138_p2), 0, %v375_v53  ;;  %v382_v55 = vsub.s32 (!%p138_p2), 1, %v375_v53  ;;  %v389_v56 = vsub.s32 (!%p138_p2), 2, %v375_v53  ;;  %v396_v57 = vsub.s32 (!%p138_p2), 3, %v375_v53 }
   0xa   : > { %v403_v58 = vsub.s32 (!%p138_p2), 4, %v375_v53  ;;  %v410_v59 = vsub.s32 (!%p138_p2), 5, %v375_v53  ;;  %v417_v60 = vsub.s32 (!%p138_p2), 6, %v375_v53  ;;  %v424_v61 = vsub.s32 (!%p138_p2), 7, %v375_v53 }
   0xb   : > { %190 = vperm.xlu0 (!%p138_p2), %532, %v186_v4  }
   0xd   : > { %s642_s13 = smov (!%p161_p3, %s484_s13), 1 }
   0xe   : > { %s522_s20 = smul.u32 80, %s642_s13  ;;  %s517_s30 = sshll.u32 %s642_s13, 5 }
   0xf   : > { %s170_s6 = scalar_lea.vmem %s640_s3, %s517_s30 }
  0x10   : > { %s165_s25 = scalar_lea.vmem %s637_s0, %s522_s20 }
  0x11   : > { %v533_v5 = vld [vmem:[%s165_s25 + $0x4] ss:$16 sps:$4 sm:$0xff]   ;;  %v535_v6 = vld [vmem:[%s165_s25 + $0xc] ss:$16 sps:$4 sm:$0xff]   ;;  %v537_v7 = vld [vmem:[%s165_s25] ss:$16 sps:$4 sm:$0xff]  }
  0x12   : > { %272 = vmatprep.subr.bf16.mxu1 %v533_v5  ;;  %v538_v8 = vld [vmem:[%s165_s25 + $0x8] ss:$16 sps:$4 sm:$0xff]   ;;  %313 = vmatprep.subr.bf16.mxu0 %v535_v6  ;;  %v539_v9 = vld [vmem:[%s165_s25 + $0x24] ss:$16 sps:$4 sm:$0xff]   ;;  %v541_v10 = vld [vmem:[%s165_s25 + $0x2c] ss:$16 sps:$4 sm:$0xff]  }
  0x13   : > { %273 = vmatpush1.bf16.xpose.msra.mxu1 %v537_v7  ;;  %314 = vmatpush1.bf16.xpose.msra.mxu0 %v538_v8  ;;  %v184_v11 = vld [vmem:[%s165_s25 + $0x40] sm:$0x33]  ;;  %v185_v12 = vld [vmem:[%s165_s25 + $0x48] sm:$0x33] }
  0x14   : > { %274 = vmatprep.subr.bf16.mxu1 %v539_v9  ;;  %315 = vmatprep.subr.bf16.mxu0 %v541_v10  ;;  %v543_v13 = vld [vmem:[%s165_s25 + $0x20] ss:$16 sps:$4 sm:$0xff]   ;;  %v544_v14 = vld [vmem:[%s165_s25 + $0x28] ss:$16 sps:$4 sm:$0xff]   ;;  %v505_v15 = vcombine.high %v184_v11, %v184_v11  ;;  %v507_v16 = vcombine.high %v185_v12, %v185_v12  ;;  %v504_v17 = vcombine.low %v184_v11, %v184_v11 }
  0x15   : > { %v506_v18 = vcombine.low %v185_v12, %v185_v12 }
  0x1b   : > { %275 = vmatpush1.bf16.xpose.msra.mxu1 %v543_v13  ;;  %316 = vmatpush1.bf16.xpose.msra.mxu0 %v544_v14 }
  0x1c   : > { %276 = vmatprep.subr.bf16.mxu1 %v505_v15  ;;  %317 = vmatprep.subr.bf16.mxu0 %v507_v16 }
  0x23   : > { %277 = vmatpush1.bf16.xpose.msra.mxu1 %v504_v17  ;;  %318 = vmatpush1.bf16.xpose.msra.mxu0 %v506_v18 }
  0x2a   : > { %305 = vmatmul.mubr.bf16.vlgmr.msra.gmra.mrb[0].mxu1 %v549_v19  ;;  %346 = vmatmul.mubr.bf16.vlgmr.msra.gmra.mrb[0].mxu0 %v552_v20 }
  0x86   : > { %v196_v21 = vpop.permute.xlu0 %195 }
  0x8a   : > { %v191_v22 = vpop.permute.xlu0 %190 }
  0xfd   : > { %v306_v23 = vpop.f32.mrb[0].mxu1  ;;  %v347_v24 = vpop.f32.mrb[0].mxu0 }
  0xfe   : > { %v307_v25 = vadd.f32 %v306_v23, %v191_v22  ;;  %v308_v26 = vpop.f32.mrb[1].mxu1  ;;  %v349_v27 = vpop.f32.mrb[1].mxu0 }
  0xff   : > { %v309_v28 = vpop.f32.mrb[2].mxu1  ;;  %v350_v29 = vpop.f32.mrb[2].mxu0 }
 0x100   : > { %v348_v30 = vadd.f32 %v347_v24, %v307_v25  ;;  %v310_v31 = vadd.f32 %v309_v28, %v196_v21  ;;  %v311_v32 = vpop.f32.mrb[3].mxu1  ;;  %v352_v33 = vpop.f32.mrb[3].mxu0 }
 0x102   : > { %v351_v34 = vadd.f32 %v350_v29, %v310_v31  ;;  %v377_v63 = vrot.slane %v348_v30, %v376_v54  ;;  %v383_v0 = vrot.slane %v348_v30, %v382_v55  ;;  %v390_v1 = vrot.slane %v348_v30, %v389_v56 }
 0x103   : > { %v397_v2 = vrot.slane %v348_v30, %v396_v57  ;;  %v404_v4 = vrot.slane %v348_v30, %v403_v58  ;;  %v411_v5 = vrot.slane %v348_v30, %v410_v59  ;;  %v418_v6 = vrot.slane %v348_v30, %v417_v60 }
 0x104   : > { %v355_v35 = vsel %vm354_vm0, %v351_v34, -inf  ;;  %v425_v7 = vrot.slane %v348_v30, %v424_v61 }
 0x105   : > { %v356_v36 = vrot.slane %v355_v35, 4 }
 0x107   : > { %v357_v37 = vmax.f32 %v355_v35, %v356_v36 }
 0x109   : > { %v358_v38 = vrot.slane %v357_v37, 2 }
 0x10b   : > { %v359_v39 = vmax.f32 %v357_v37, %v358_v38 }
 0x10d   : > { %v360_v40 = vrot.slane %v359_v39, 1 }
 0x10f   : > { %v361_v41 = vmax.f32 %v359_v39, %v360_v40 }
 0x111   : > { %v362_v42 = vsub.f32 %v351_v34, %v361_v41 }
 0x113   : > { %v363_v43 = vmul.f32 1.442695, %v362_v42 }
 0x115   : > { %555 = vpow2.f32 %v363_v43 }
 0x11f   : > { %v556_v44 = vpop.eup %555 }
 0x120   : > { %v365_v45 = vsel %vm354_vm0, %v556_v44, 0.0 }
 0x121   : > { %v366_v46 = vrot.slane %v365_v45, 4 }
 0x123   : > { %v367_v47 = vadd.f32 %v366_v46, %v365_v45 }
 0x125   : > { %v368_v48 = vrot.slane %v367_v47, 2 }
 0x127   : > { %v369_v49 = vadd.f32 %v368_v48, %v367_v47 }
 0x129   : > { %v370_v50 = vrot.slane %v369_v49, 1 }
 0x12b   : > { %v371_v52 = vadd.f32 %v370_v50, %v369_v49 }
 0x12d   : > { %557 = vrcp.f32 %v371_v52 }
 0x137   : > { %v558_v62 = vpop.eup %557 }
 0x138   : > { %v373_v3 = vmul.f32 %v558_v62, %v556_v44 }
 0x13a   : > { %v378_v8 = vmul.f32 %v377_v63, %v373_v3  ;;  %v384_v9 = vmul.f32 %v383_v0, %v373_v3  ;;  %v391_v10 = vmul.f32 %v390_v1, %v373_v3  ;;  %v398_v11 = vmul.f32 %v397_v2, %v373_v3 }
 0x13b   : > { %v405_v12 = vmul.f32 %v404_v4, %v373_v3  ;;  %v412_v13 = vmul.f32 %v411_v5, %v373_v3  ;;  %v419_v14 = vmul.f32 %v418_v6, %v373_v3  ;;  %v426_v15 = vmul.f32 %v425_v7, %v373_v3 }
 0x13c   : > { %379 = vst.msk [vmem:[%s170_s6] sm:$0xf] %vm354_vm0, %v378_v8  ;;  %508 = vst.msk [vmem:[%s170_s6 + $0x4] sm:$0xf] %vm354_vm0, %v384_v9 }
 0x13d   : > { %509 = vst.msk [vmem:[%s170_s6 + $0x8] sm:$0xf] %vm354_vm0, %v391_v10  ;;  %510 = vst.msk [vmem:[%s170_s6 + $0xc] sm:$0xf] %vm354_vm0, %v398_v11 }
 0x13e   : > { %511 = vst.msk [vmem:[%s170_s6 + $0x10] sm:$0xf] %vm354_vm0, %v405_v12  ;;  %512 = vst.msk [vmem:[%s170_s6 + $0x14] sm:$0xf] %vm354_vm0, %v412_v13 }
 0x13f   : > { %513 = vst.msk [vmem:[%s170_s6 + $0x18] sm:$0xf] %vm354_vm0, %v419_v14  ;;  %514 = vst.msk [vmem:[%s170_s6 + $0x1c] sm:$0xf] %vm354_vm0, %v426_v15 }
 0x140 PF: > { %s13_s12 = sadd.s32 1, %s565_s12  }
 0x141   : > { %p10_p4 = scmp.ge.s32.totalorder %s13_s12, 4  }
 0x143   :  { %12 = sbr.rel (!%p10_p4) target bundleno = 1 (0x1), region = 69 }

// kernel: cam_encode_forward.3
= control target key start
LH: loop header
LB: loop body
LE: loop exit
PB: predicated region body
PF: predicated region fallthrough
CT: control target
= control target key end

     0   :  { %s15071_s18 = smov 0   ;;  %s19133_s0 = inlined_call_operand.vmem [shape: bf16[2,50,512], index: 0, kind: input, shape index: {}]   ;;  %s19134_s1 = inlined_call_operand.vmem [shape: bf16[9,512,512], index: 1, kind: input, shape index: {}]   ;;  %s19135_s2 = inlined_call_operand.vmem [shape: f32[1,512], index: 2, kind: input, shape index: {}]   ;;  %s19136_s3 = inlined_call_operand.vmem [shape: f32[1,512], index: 3, kind: input, shape index: {}]   ;;  %s19137_s4 = inlined_call_operand.vmem [shape: f32[36,1], index: 4, kind: input, shape index: {}]   ;;  %s19138_s5 = inlined_call_operand.vmem [shape: bf16[2,36,512], index: 5, kind: output, shape index: {}]  }
   0x1 LB: > { %s10514_s19 = sadd.s32 4294967295, %s15038_s18   ;;  %p10518_p0 = scmp.ge.s32.totalorder %s15038_s18, 1  ;;  %s15038_s18 = sphi %s15071_s18, %s15_s18  }
   0x2   : > { %p187_p1 = scmp.lt.s32.totalorder %s15038_s18, 3 }
   0x4   : > { %p188_p2 = pnand %p10518_p0, %p187_p1 }
   0x5   : > { %v13212_v0 = vld [vmem:[%s19134_s1 + $0x404] ss:$16 sps:$4 sm:$0xff] (!%p188_p2)   ;;  %v13214_v1 = vld [vmem:[%s19134_s1 + $0x40c] ss:$16 sps:$4 sm:$0xff] (!%p188_p2)   ;;  %v13216_v2 = vld [vmem:[%s19134_s1 + $0x400] ss:$16 sps:$4 sm:$0xff] (!%p188_p2)  }
   0x6   : > { %191 = sbr.rel (%p188_p2) target bundleno = 1401 (0x579), region = 40  ;;  %1281 = vmatprep.subr.bf16.mxu0 (!%p188_p2), %v13212_v0  ;;  %v13217_v3 = vld [vmem:[%s19134_s1 + $0x408] ss:$16 sps:$4 sm:$0xff] (!%p188_p2)   ;;  %1403 = vmatprep.subr.bf16.mxu1 (!%p188_p2), %v13214_v1  ;;  %v13218_v4 = vld [vmem:[%s19134_s1 + $0x424] ss:$16 sps:$4 sm:$0xff] (!%p188_p2)   ;;  %p215_p3 = scmp.lt.s32.totalorder (!%p188_p2), %s10514_s19, 1 }
   0x7   : > { %1282 = vmatpush1.bf16.msra.mxu0 (!%p188_p2), %v13216_v2  ;;  %1404 = vmatpush1.bf16.msra.mxu1 (!%p188_p2), %v13217_v3  ;;  %v13220_v5 = vld [vmem:[%s19134_s1 + $0x42c] ss:$16 sps:$4 sm:$0xff] (!%p188_p2)   ;;  %v13222_v6 = vld [vmem:[%s19134_s1 + $0x420] ss:$16 sps:$4 sm:$0xff] (!%p188_p2)   ;;  %v13223_v7 = vld [vmem:[%s19134_s1 + $0x428] ss:$16 sps:$4 sm:$0xff] (!%p188_p2)  }
   0x8   : > { %1283 = vmatprep.subr.bf16.mxu0 (!%p188_p2), %v13218_v4  ;;  %1405 = vmatprep.subr.bf16.mxu1 (!%p188_p2), %v13220_v5  ;;  %v13224_v8 = vld [vmem:[%s19134_s1 + $0x444] ss:$16 sps:$4 sm:$0xff] (!%p188_p2)   ;;  %v13226_v9 = vld [vmem:[%s19134_s1 + $0x44c] ss:$16 sps:$4 sm:$0xff] (!%p188_p2)   ;;  %v13228_v10 = vld [vmem:[%s19134_s1 + $0x440] ss:$16 sps:$4 sm:$0xff] (!%p188_p2)  }
   0x9   : > { %v13229_v11 = vld [vmem:[%s19134_s1 + $0x448] ss:$16 sps:$4 sm:$0xff] (!%p188_p2)   ;;  %v13230_v12 = vld [vmem:[%s19134_s1 + $0x464] ss:$16 sps:$4 sm:$0xff] (!%p188_p2)   ;;  %v13232_v13 = vld [vmem:[%s19134_s1 + $0x46c] ss:$16 sps:$4 sm:$0xff] (!%p188_p2)  }
   0xa   : > { %v13234_v14 = vld [vmem:[%s19134_s1 + $0x460] ss:$16 sps:$4 sm:$0xff] (!%p188_p2)   ;;  %v13235_v15 = vld [vmem:[%s19134_s1 + $0x468] ss:$16 sps:$4 sm:$0xff] (!%p188_p2)   ;;  %v13236_v16 = vld [vmem:[%s19134_s1 + $0x484] ss:$16 sps:$4 sm:$0xff] (!%p188_p2)  }
   0xb   : > { %1284 = vmatpush1.bf16.msra.mxu0 (!%p188_p2), %v13222_v6  ;;  %1406 = vmatpush1.bf16.msra.mxu1 (!%p188_p2), %v13223_v7  ;;  %v13238_v17 = vld [vmem:[%s19134_s1 + $0x48c] ss:$16 sps:$4 sm:$0xff] (!%p188_p2)   ;;  %v13240_v18 = vld [vmem:[%s19134_s1 + $0x480] ss:$16 sps:$4 sm:$0xff] (!%p188_p2)   ;;  %v13241_v19 = vld [vmem:[%s19134_s1 + $0x488] ss:$16 sps:$4 sm:$0xff] (!%p188_p2)  }
   0xc   : > { %1285 = vmatprep.subr.bf16.mxu0 (!%p188_p2), %v13224_v8  ;;  %1407 = vmatprep.subr.bf16.mxu1 (!%p188_p2), %v13226_v9  ;;  %v13242_v20 = vld [vmem:[%s19134_s1 + $0x4a4] ss:$16 sps:$4 sm:$0xff] (!%p188_p2)   ;;  %v13244_v21 = vld [vmem:[%s19134_s1 + $0x4ac] ss:$16 sps:$4 sm:$0xff] (!%p188_p2)   ;;  %v13246_v22 = vld [vmem:[%s19134_s1 + $0x4a0] ss:$16 sps:$4 sm:$0xff] (!%p188_p2)  }
   0xd   : > { %v13247_v23 = vld [vmem:[%s19134_s1 + $0x4a8] ss:$16 sps:$4 sm:$0xff]   ;;  %v13248_v24 = vld [vmem:[%s19134_s1 + $0x4c4] ss:$16 sps:$4 sm:$0xff]   ;;  %v13250_v25 = vld [vmem:[%s19134_s1 + $0x4cc] ss:$16 sps:$4 sm:$0xff]  }
   0xe   : > { %v13252_v26 = vld [vmem:[%s19134_s1 + $0x4c0] ss:$16 sps:$4 sm:$0xff]   ;;  %v13253_v27 = vld [vmem:[%s19134_s1 + $0x4c8] ss:$16 sps:$4 sm:$0xff]   ;;  %v13254_v28 = vld [vmem:[%s19134_s1 + $0x4e4] ss:$16 sps:$4 sm:$0xff]  }
   0xf   : > { %1286 = vmatpush1.bf16.msra.mxu0 %v13228_v10  ;;  %1408 = vmatpush1.bf16.msra.mxu1 %v13229_v11  ;;  %v13256_v29 = vld [vmem:[%s19134_s1 + $0x4ec] ss:$16 sps:$4 sm:$0xff]   ;;  %v13258_v30 = vld [vmem:[%s19134_s1 + $0x4e0] ss:$16 sps:$4 sm:$0xff]   ;;  %v13259_v31 = vld [vmem:[%s19134_s1 + $0x4e8] ss:$16 sps:$4 sm:$0xff]  }
  0x10   : > { %1287 = vmatprep.subr.bf16.mxu0 %v13230_v12  ;;  %1409 = vmatprep.subr.bf16.mxu1 %v13232_v13  ;;  %v13260_v32 = vld [vmem:[%s19134_s1 + $0x504] ss:$16 sps:$4 sm:$0xff]   ;;  %v13262_v33 = vld [vmem:[%s19134_s1 + $0x50c] ss:$16 sps:$4 sm:$0xff]   ;;  %v13264_v34 = vld [vmem:[%s19134_s1 + $0x500] ss:$16 sps:$4 sm:$0xff]  }
  0x11   : > { %v13265_v35 = vld [vmem:[%s19134_s1 + $0x508] ss:$16 sps:$4 sm:$0xff]   ;;  %s19140_s19 = smov (!%p215_p3, %s10514_s19), 1  ;;  %v13266_v36 = vld [vmem:[%s19134_s1 + $0x524] ss:$16 sps:$4 sm:$0xff]   ;;  %vm2572_vm1 = vcmask 1046528  }
  0x12   : > { %v13268_v37 = vld [vmem:[%s19134_s1 + $0x52c] ss:$16 sps:$4 sm:$0xff]   ;;  %v13270_v38 = vld [vmem:[%s19134_s1 + $0x520] ss:$16 sps:$4 sm:$0xff]   ;;  %s13199_s29 = smul.u32 112, %s19140_s19  ;;  %vm3698_vm2 = vcmask 1044480  }
  0x13   : > { %1288 = vmatpush1.bf16.msra.mxu0 %v13234_v14  ;;  %1410 = vmatpush1.bf16.msra.mxu1 %v13235_v15  ;;  %v13271_v39 = vld [vmem:[%s19134_s1 + $0x528] ss:$16 sps:$4 sm:$0xff]   ;;  %v13272_v40 = vld [vmem:[%s19134_s1 + $0x544] ss:$16 sps:$4 sm:$0xff]   ;;  %v13274_v41 = vld [vmem:[%s19134_s1 + $0x54c] ss:$16 sps:$4 sm:$0xff]  }
  0x14   : > { %1289 = vmatprep.subr.bf16.mxu0 %v13236_v16  ;;  %1411 = vmatprep.subr.bf16.mxu1 %v13238_v17  ;;  %v13276_v42 = vld [vmem:[%s19134_s1 + $0x540] ss:$16 sps:$4 sm:$0xff]   ;;  %v13277_v43 = vld [vmem:[%s19134_s1 + $0x548] ss:$16 sps:$4 sm:$0xff]   ;;  %s15221_s17 = scalar_lea.vmem %s19133_s0, %s13199_s29  ;;  %v13278_v44 = vld [vmem:[%s19134_s1 + $0x564] ss:$16 sps:$4 sm:$0xff]  }
  0x15   : > { %v13280_v45 = vld [vmem:[%s19134_s1 + $0x56c] ss:$16 sps:$4 sm:$0xff]   ;;  %v13282_v46 = vld [vmem:[%s19134_s1 + $0x560] ss:$16 sps:$4 sm:$0xff]   ;;  %v13283_v47 = vld [vmem:[%s19134_s1 + $0x568] ss:$16 sps:$4 sm:$0xff]  }
  0x16   : > { %v225_v48 = vld [vmem:[%s15221_s17] sm:$0xff]  ;;  %v227_v49 = vld [vmem:[%s15221_s17 + $0x10] sm:$0xff]  ;;  %v13286_v53 = vld [vmem:[%s19134_s1 + $0x58c] ss:$16 sps:$4 sm:$0xff]   ;;  %vm536_vm0 = vsmask.f32 7424 }
  0x17   : > { %1290 = vmatpush1.bf16.msra.mxu0 %v13240_v18  ;;  %1412 = vmatpush1.bf16.msra.mxu1 %v13241_v19  ;;  %v15237_v50 = vcombine.high %v225_v48, %v227_v49  ;;  %v15240_v51 = vld [vmem:[%s15221_s17 + $0x24] ss:$16 sps:$4 sm:$0xff]   ;;  %v13288_v57 = vld [vmem:[%s19134_s1 + $0x580] ss:$16 sps:$4 sm:$0xff]   ;;  %v13289_v58 = vld [vmem:[%s19134_s1 + $0x588] ss:$16 sps:$4 sm:$0xff]   ;;  %v15262_v62 = vcombine.low %v225_v48, %v227_v49 }
  0x18   : > { %1291 = vmatprep.subr.bf16.mxu0 %v13242_v20  ;;  %1413 = vmatprep.subr.bf16.mxu1 %v13244_v21  ;;  %v13284_v52 = vld [vmem:[%s19134_s1 + $0x584] ss:$16 sps:$4 sm:$0xff]   ;;  %v557_v56 = vshll.u32 %v15240_v51, 16  ;;  %v13292_v63 = vld [vmem:[%s19134_s1 + $0x5ac] ss:$16 sps:$4 sm:$0xff]   ;;  %vm7007_vm4 = vcmask 1045504  }
  0x19   : > { %v550_v54 = vshrl.u32 %v15237_v50, 16  ;;  %v552_v55 = vshll.u32 %v15237_v50, 16  ;;  %v13290_v59 = vld [vmem:[%s19134_s1 + $0x5a4] ss:$16 sps:$4 sm:$0xff]   ;;  %v13294_v0 = vld [vmem:[%s19134_s1 + $0x5a0] ss:$16 sps:$4 sm:$0xff]  }
  0x1a   : > { %v15260_v61 = vrot.slane %v557_v56, 1  ;;  %v13295_v2 = vld [vmem:[%s19134_s1 + $0x5a8] ss:$16 sps:$4 sm:$0xff]   ;;  %v13296_v3 = vld [vmem:[%s19134_s1 + $0x5c4] ss:$16 sps:$4 sm:$0xff]   ;;  %v540_v6 = vshll.u32 %v15262_v62, 16 }
  0x1b   : > { %1292 = vmatpush1.bf16.msra.mxu0 %v13246_v22  ;;  %1414 = vmatpush1.bf16.msra.mxu1 %v13247_v23  ;;  %v554_v60 = vrot.slane %v552_v55, 1  ;;  %v15279_v5 = vld [vmem:[%s15221_s17 + $0x20] ss:$16 sps:$4 sm:$0xff]   ;;  %v13298_v7 = vld [vmem:[%s19134_s1 + $0x5cc] ss:$16 sps:$4 sm:$0xff]   ;;  %v538_v11 = vshrl.u32 %v15262_v62, 16 }
  0x1c   : > { %1293 = vmatprep.subr.bf16.mxu0 %v13248_v24  ;;  %1415 = vmatprep.subr.bf16.mxu1 %v13250_v25  ;;  %v13300_v8 = vld [vmem:[%s19134_s1 + $0x5c0] ss:$16 sps:$4 sm:$0xff]   ;;  %v13301_v9 = vld [vmem:[%s19134_s1 + $0x5c8] ss:$16 sps:$4 sm:$0xff]   ;;  %v13302_v10 = vld [vmem:[%s19134_s1 + $0x5e4] ss:$16 sps:$4 sm:$0xff]  }
  0x1d   : > { %v555_v1 = vor.u32 %v554_v60, %v550_v54  ;;  %v542_v12 = vrot.slane %v540_v6, 1  ;;  %v545_v13 = vshll.u32 %v15279_v5, 16  ;;  %v13304_v14 = vld [vmem:[%s19134_s1 + $0x5ec] ss:$16 sps:$4 sm:$0xff]   ;;  %v13306_v15 = vld [vmem:[%s19134_s1 + $0x5e0] ss:$16 sps:$4 sm:$0xff]  }
  0x1e   : > { %v13307_v16 = vld [vmem:[%s19134_s1 + $0x5e8] ss:$16 sps:$4 sm:$0xff]   ;;  %v13313_v17 = vld [vmem:[%s19134_s1 + $0x604] ss:$16 sps:$4 sm:$0xff]   ;;  %v13316_v20 = vld [vmem:[%s19134_s1 + $0x60c] ss:$16 sps:$4 sm:$0xff]  }
  0x1f   : > { %1294 = vmatpush1.bf16.msra.mxu0 %v13252_v26  ;;  %1416 = vmatpush1.bf16.msra.mxu1 %v13253_v27  ;;  %v560_v4 = vsel %vm536_vm0, %v555_v1, %v15260_v61  ;;  %v543_v18 = vor.u32 %v542_v12, %v538_v11  ;;  %v547_v19 = vrot.slane %v545_v13, 1  ;;  %v13311_v21 = vld [vmem:[%s19134_s1 + $0x600] ss:$16 sps:$4 sm:$0xff]   ;;  %v13314_v22 = vld [vmem:[%s19134_s1 + $0x608] ss:$16 sps:$4 sm:$0xff]   ;;  %s13200_s23 = smul.u32 80, %s19140_s19 }
  0x20   : > { %1295 = vmatprep.subr.bf16.mxu0 %v13254_v28  ;;  %1417 = vmatprep.subr.bf16.mxu1 %v13256_v29  ;;  %v13321_v24 = vld [vmem:[%s19134_s1 + $0x624] ss:$16 sps:$4 sm:$0xff]   ;;  %v13324_v25 = vld [vmem:[%s19134_s1 + $0x62c] ss:$16 sps:$4 sm:$0xff]   ;;  %v13319_v26 = vld [vmem:[%s19134_s1 + $0x620] ss:$16 sps:$4 sm:$0xff]  }
  0x21   : > { %1313 = vmatprep.mubr.bf16.mxu0 %v560_v4  ;;  %1435 = vmatprep.mubr.bf16.mxu1 %v560_v4  ;;  %v548_v23 = vsel %vm536_vm0, %v543_v18, %v547_v19  ;;  %v13322_v27 = vld [vmem:[%s19134_s1 + $0x628] ss:$16 sps:$4 sm:$0xff]   ;;  %v13327_v28 = vld [vmem:[%s19134_s1 + $0x644] ss:$16 sps:$4 sm:$0xff]   ;;  %v13330_v29 = vld [vmem:[%s19134_s1 + $0x64c] ss:$16 sps:$4 sm:$0xff]   ;;  %s19094_s25 = scalar_lea.vmem %s19138_s5, %s13200_s23 }
  0x22   : > { %v13345_v49 = vld [vmem:[%s19134_s1 + $0x6a4] ss:$16 sps:$4 sm:$0xff]   ;;  %v13343_v55 = vld [vmem:[%s19134_s1 + $0x6a0] ss:$16 sps:$4 sm:$0xff]   ;;  %v13346_v56 = vld [vmem:[%s19134_s1 + $0x6a8] ss:$16 sps:$4 sm:$0xff]  }
  0x23   : > { %1296 = vmatpush1.bf16.msra.mxu0 %v13258_v30  ;;  %1418 = vmatpush1.bf16.msra.mxu1 %v13259_v31  ;;  %v13325_v30 = vld [vmem:[%s19134_s1 + $0x640] ss:$16 sps:$4 sm:$0xff]   ;;  %v13328_v31 = vld [vmem:[%s19134_s1 + $0x648] ss:$16 sps:$4 sm:$0xff]   ;;  %v13354_v60 = vld [vmem:[%s19134_s1 + $0x6cc] ss:$16 sps:$4 sm:$0xff]  }
  0x24   : > { %1297 = vmatprep.subr.bf16.mxu0 %v13260_v32  ;;  %1419 = vmatprep.subr.bf16.mxu1 %v13262_v33  ;;  %v13333_v32 = vld [vmem:[%s19134_s1 + $0x664] ss:$16 sps:$4 sm:$0xff]   ;;  %v13336_v33 = vld [vmem:[%s19134_s1 + $0x66c] ss:$16 sps:$4 sm:$0xff]   ;;  %v13358_v12 = vld [vmem:[%s19134_s1 + $0x6e8] ss:$16 sps:$4 sm:$0xff]  }
  0x25   : > { %v15411_v4 = vld [vmem:[%s15221_s17 + $0x18] sm:$0xff]  ;;  %v13361_v18 = vld [vmem:[%s19134_s1 + $0x700] ss:$16 sps:$4 sm:$0xff]   ;;  %vm4776_vm3 = vsmask.f32 4352 }
  0x26   : > { %vm8133_vm5 = vsmask.f32 5376 }
  0x27   : > { %1298 = vmatpush1.bf16.msra.mxu0 %v13264_v34  ;;  %1420 = vmatpush1.bf16.msra.mxu1 %v13265_v35  ;;  %v13331_v34 = vld [vmem:[%s19134_s1 + $0x660] ss:$16 sps:$4 sm:$0xff]   ;;  %v13334_v35 = vld [vmem:[%s19134_s1 + $0x668] ss:$16 sps:$4 sm:$0xff]  }
  0x28   : > { %1299 = vmatprep.subr.bf16.mxu0 %v13266_v36  ;;  %1421 = vmatprep.subr.bf16.mxu1 %v13268_v37  ;;  %v13339_v36 = vld [vmem:[%s19134_s1 + $0x684] ss:$16 sps:$4 sm:$0xff]   ;;  %v593_v37 = vshrl.u32 %v15240_v51, 16  ;;  %v13348_v51 = vld [vmem:[%s19134_s1 + $0x6ac] ss:$16 sps:$4 sm:$0xff]  }
  0x2b   : > { %1300 = vmatpush1.bf16.msra.mxu0 %v13270_v38  ;;  %1422 = vmatpush1.bf16.msra.mxu1 %v13271_v39  ;;  %v585_v38 = vshrl.u32 %v15279_v5, 16  ;;  %v13342_v39 = vld [vmem:[%s19134_s1 + $0x68c] ss:$16 sps:$4 sm:$0xff]  }
  0x2c   : > { %1301 = vmatprep.subr.bf16.mxu0 %v13272_v40  ;;  %1423 = vmatprep.subr.bf16.mxu1 %v13274_v41  ;;  %v363_v40 = vld [vmem:[%s15221_s17 + $0x40] sm:$0x77]  ;;  %v13360_v5 = vld [vmem:[%s19134_s1 + $0x6ec] ss:$16 sps:$4 sm:$0xff]  }
  0x2d   : > { %v15363_v41 = vcombine.high %v363_v40, %v363_v40 }
  0x2f   : > { %1302 = vmatpush1.bf16.msra.mxu0 %v13276_v42  ;;  %1424 = vmatpush1.bf16.msra.mxu1 %v13277_v43  ;;  %v15365_v42 = vcombine.low %v363_v40, %v363_v40  ;;  %v13337_v43 = vld [vmem:[%s19134_s1 + $0x680] ss:$16 sps:$4 sm:$0xff]   ;;  %v620_v54 = vshrl.u32 %v15363_v41, 16  ;;  %v13398_v40 = vld [vmem:[%s19134_s1 + $0x7ac] ss:$16 sps:$4 sm:$0xff]  }
  0x30   : > { %1303 = vmatprep.subr.bf16.mxu0 %v13278_v44  ;;  %1425 = vmatprep.subr.bf16.mxu1 %v13280_v45  ;;  %v13340_v44 = vld [vmem:[%s19134_s1 + $0x688] ss:$16 sps:$4 sm:$0xff]   ;;  %v595_v45 = vor.u32 %v593_v37, %v15260_v61  ;;  %v13349_v61 = vld [vmem:[%s19134_s1 + $0x6c0] ss:$16 sps:$4 sm:$0xff]  }
  0x31   : > { %v589_v48 = vshll.u32 %v15365_v42, 16  ;;  %v617_v1 = vshrl.u32 %v15365_v42, 16  ;;  %v13389_v37 = vld [vmem:[%s19134_s1 + $0x788] ss:$16 sps:$4 sm:$0xff]  }
  0x33   : > { %1304 = vmatpush1.bf16.msra.mxu0 %v13282_v46  ;;  %1426 = vmatpush1.bf16.msra.mxu1 %v13283_v47  ;;  %v597_v46 = vshll.u32 %v15363_v41, 16  ;;  %v587_v47 = vor.u32 %v585_v38, %v547_v19 }
  0x34   : > { %1305 = vmatprep.subr.bf16.mxu0 %v13284_v52  ;;  %1427 = vmatprep.subr.bf16.mxu1 %v13286_v53  ;;  %v591_v53 = vrot.slane %v589_v48, 1  ;;  %v13404_v48 = vld [vmem:[%s19134_s1 + $0x7cc] ss:$16 sps:$4 sm:$0xff]  }
  0x35   : > { %v599_v52 = vrot.slane %v597_v46, 1 }
  0x37   : > { %1306 = vmatpush1.bf16.msra.mxu0 %v13288_v57  ;;  %1428 = vmatpush1.bf16.msra.mxu1 %v13289_v58  ;;  %v600_v57 = vsel %vm536_vm0, %v595_v45, %v599_v52  ;;  %v592_v58 = vsel %vm536_vm0, %v587_v47, %v591_v53  ;;  %v13413_v45 = vld [vmem:[%s15221_s17 + $0x28] ss:$16 sps:$4 sm:$0xff]   ;;  %v13401_v47 = vld [vmem:[%s19134_s1 + $0x7c4] ss:$16 sps:$4 sm:$0xff]  }
  0x38   : > { %1307 = vmatprep.subr.bf16.mxu0 %v13290_v59  ;;  %1429 = vmatprep.subr.bf16.mxu1 %v13292_v63  ;;  %v13351_v59 = vld [vmem:[%s19134_s1 + $0x6c4] ss:$16 sps:$4 sm:$0xff]   ;;  %v622_v63 = vor.u32 %v620_v54, %v599_v52  ;;  %v569_v54 = vshll.u32 %v13413_v45, 16 }
  0x3b   : > { %1308 = vmatpush1.bf16.msra.mxu0 %v13294_v0  ;;  %1430 = vmatpush1.bf16.msra.mxu1 %v13295_v2  ;;  %v13352_v0 = vld [vmem:[%s19134_s1 + $0x6c8] ss:$16 sps:$4 sm:$0xff]   ;;  %v13357_v2 = vld [vmem:[%s19134_s1 + $0x6e4] ss:$16 sps:$4 sm:$0xff]  }
  0x3c   : > { %1309 = vmatprep.subr.bf16.mxu0 %v13296_v3  ;;  %1431 = vmatprep.subr.bf16.mxu1 %v13298_v7  ;;  %v15408_v3 = vld [vmem:[%s15221_s17 + $0x8] sm:$0xff] }
  0x3d   : > { %v15418_v6 = vcombine.high %v15408_v3, %v15411_v4  ;;  %v15421_v7 = vld [vmem:[%s15221_s17 + $0x2c] ss:$16 sps:$4 sm:$0xff]   ;;  %v15498_v38 = vcombine.low %v15408_v3, %v15411_v4  ;;  %v13416_v4 = vld [vmem:[%s19134_s1] ss:$16 sps:$4 sm:$0xff]  }
  0x3e   : > { %v581_v13 = vshll.u32 %v15421_v7, 16  ;;  %v13421_v3 = vld [vmem:[%s19134_s1 + $0xc] ss:$16 sps:$4 sm:$0xff]  }
  0x3f   : > { %1310 = vmatpush1.bf16.msra.mxu0 %v13300_v8  ;;  %1432 = vmatpush1.bf16.msra.mxu1 %v13301_v9  ;;  %v13355_v8 = vld [vmem:[%s19134_s1 + $0x6e0] ss:$16 sps:$4 sm:$0xff]   ;;  %v619_v9 = vor.u32 %v617_v1, %v591_v53  ;;  %v576_v11 = vshll.u32 %v15418_v6, 16  ;;  %v564_v46 = vshll.u32 %v15498_v38, 16  ;;  %v562_v52 = vshrl.u32 %v15498_v38, 16 }
  0x40   : > { %1311 = vmatprep.subr.bf16.mxu0 %v13302_v10  ;;  %1433 = vmatprep.subr.bf16.mxu1 %v13304_v14  ;;  %v574_v10 = vshrl.u32 %v15418_v6, 16  ;;  %v13363_v14 = vld [vmem:[%s19134_s1 + $0x704] ss:$16 sps:$4 sm:$0xff]  }
  0x41   : > { %v566_v53 = vrot.slane %v564_v46, 1  ;;  %v13452_v46 = vld [vmem:[%s19134_s1 + $0xc0] ss:$16 sps:$4 sm:$0xff]  }
  0x43   : > { %1312 = vmatpush1.bf16.msra.mxu0 %v13306_v15  ;;  %1434 = vmatpush1.bf16.msra.mxu1 %v13307_v16  ;;  %v13366_v15 = vld [vmem:[%s19134_s1 + $0x70c] ss:$16 sps:$4 sm:$0xff]   ;;  %v578_v16 = vrot.slane %v576_v11, 1 }
  0x44   : > { %1342 = vmatprep.subr.bf16.mxu0 %v13313_v17  ;;  %1464 = vmatprep.subr.bf16.mxu1 %v13316_v20  ;;  %v15438_v17 = vrot.slane %v581_v13, 1  ;;  %v13364_v20 = vld [vmem:[%s19134_s1 + $0x708] ss:$16 sps:$4 sm:$0xff]  }
  0x45   : > { %v579_v19 = vor.u32 %v578_v16, %v574_v10  ;;  %v13424_v10 = vld [vmem:[%s19134_s1 + $0x24] ss:$16 sps:$4 sm:$0xff]  }
  0x46   : > { %1314 = vmatmul.mubr.bf16.vlgmr.msra.gmra.mrb[0].mxu0 %v548_v23  ;;  %1436 = vmatmul.mubr.bf16.vlgmr.msra.gmra.mrb[0].mxu1 %v548_v23 }
  0x47   : > { %1343 = vmatpush1.bf16.msra.mxu0 %v13311_v21  ;;  %1465 = vmatpush1.bf16.msra.mxu1 %v13314_v22  ;;  %v13369_v21 = vld [vmem:[%s19134_s1 + $0x724] ss:$16 sps:$4 sm:$0xff]   ;;  %v13372_v22 = vld [vmem:[%s19134_s1 + $0x72c] ss:$16 sps:$4 sm:$0xff]   ;;  %v584_v23 = vsel %vm536_vm0, %v579_v19, %v15438_v17 }
  0x48   : > { %1344 = vmatprep.subr.bf16.mxu0 %v13321_v24  ;;  %1466 = vmatprep.subr.bf16.mxu1 %v13324_v25  ;;  %v13367_v24 = vld [vmem:[%s19134_s1 + $0x720] ss:$16 sps:$4 sm:$0xff]   ;;  %v13370_v25 = vld [vmem:[%s19134_s1 + $0x728] ss:$16 sps:$4 sm:$0xff]  }
  0x49   : > { %1323 = vmatprep.mubr.bf16.mxu0 %v600_v57  ;;  %1445 = vmatprep.mubr.bf16.mxu1 %v600_v57  ;;  %v364_v57 = vld [vmem:[%s15221_s17 + $0x48] sm:$0x77] }
  0x4a   : > { %v15543_v1 = vcombine.low %v364_v57, %v364_v57 }
  0x4b   : > { %1345 = vmatpush1.bf16.msra.mxu0 %v13319_v26  ;;  %1467 = vmatpush1.bf16.msra.mxu1 %v13322_v27  ;;  %v13375_v26 = vld [vmem:[%s19134_s1 + $0x744] ss:$16 sps:$4 sm:$0xff]   ;;  %v13378_v27 = vld [vmem:[%s19134_s1 + $0x74c] ss:$16 sps:$4 sm:$0xff]  }
  0x4c   : > { %1346 = vmatprep.subr.bf16.mxu0 %v13327_v28  ;;  %1468 = vmatprep.subr.bf16.mxu1 %v13330_v29  ;;  %v13373_v28 = vld [vmem:[%s19134_s1 + $0x740] ss:$16 sps:$4 sm:$0xff]   ;;  %v13376_v29 = vld [vmem:[%s19134_s1 + $0x748] ss:$16 sps:$4 sm:$0xff]   ;;  %v605_v13 = vshll.u32 %v15543_v1, 16 }
  0x4e   : > { %1324 = vmatmul.mubr.bf16.gmra.mrb[4].mxu0 %v592_v58  ;;  %1446 = vmatmul.mubr.bf16.gmra.mrb[4].mxu1 %v592_v58  ;;  %v609_v58 = vshrl.u32 %v15421_v7, 16  ;;  %v13419_v7 = vld [vmem:[%s19134_s1 + $0x8] ss:$16 sps:$4 sm:$0xff]  }
  0x4f   : > { %1347 = vmatpush1.bf16.msra.mxu0 %v13325_v30  ;;  %1469 = vmatpush1.bf16.msra.mxu1 %v13328_v31  ;;  %v13381_v30 = vld [vmem:[%s19134_s1 + $0x764] ss:$16 sps:$4 sm:$0xff]   ;;  %v13384_v31 = vld [vmem:[%s19134_s1 + $0x76c] ss:$16 sps:$4 sm:$0xff]  }
  0x50   : > { %1348 = vmatprep.subr.bf16.mxu0 %v13333_v32  ;;  %1470 = vmatprep.subr.bf16.mxu1 %v13336_v33  ;;  %v13379_v32 = vld [vmem:[%s19134_s1 + $0x760] ss:$16 sps:$4 sm:$0xff]   ;;  %v13382_v33 = vld [vmem:[%s19134_s1 + $0x768] ss:$16 sps:$4 sm:$0xff]  }
  0x51   : > { %1333 = vmatprep.mubr.bf16.mxu0 %v622_v63  ;;  %1455 = vmatprep.mubr.bf16.mxu1 %v622_v63  ;;  %v571_v63 = vrot.slane %v569_v54, 1  ;;  %v13464_v54 = vld [vmem:[%s19134_s1 + $0x100] ss:$16 sps:$4 sm:$0xff]  }
  0x53   : > { %1349 = vmatpush1.bf16.msra.mxu0 %v13331_v34  ;;  %1471 = vmatpush1.bf16.msra.mxu1 %v13334_v35  ;;  %v13388_v34 = vld [vmem:[%s19134_s1 + $0x784] ss:$16 sps:$4 sm:$0xff]   ;;  %v13391_v35 = vld [vmem:[%s19134_s1 + $0x78c] ss:$16 sps:$4 sm:$0xff]  }
  0x54   : > { %1350 = vmatprep.subr.bf16.mxu0 %v13339_v36  ;;  %1472 = vmatprep.subr.bf16.mxu1 %v13342_v39  ;;  %v13386_v36 = vld [vmem:[%s19134_s1 + $0x780] ss:$16 sps:$4 sm:$0xff]   ;;  %v13395_v39 = vld [vmem:[%s19134_s1 + $0x7a4] ss:$16 sps:$4 sm:$0xff]  }
  0x56   : > { %1334 = vmatmul.mubr.bf16.gmra.mrb[8].mxu0 %v619_v9  ;;  %1456 = vmatmul.mubr.bf16.gmra.mrb[8].mxu1 %v619_v9 }
  0x57   : > { %1351 = vmatpush1.bf16.msra.mxu0 %v13337_v43  ;;  %1473 = vmatpush1.bf16.msra.mxu1 %v13340_v44  ;;  %v13393_v43 = vld [vmem:[%s19134_s1 + $0x7a0] ss:$16 sps:$4 sm:$0xff]   ;;  %v13396_v44 = vld [vmem:[%s19134_s1 + $0x7a8] ss:$16 sps:$4 sm:$0xff]  }
  0x58   : > { %1352 = vmatprep.subr.bf16.mxu0 %v13345_v49  ;;  %1474 = vmatprep.subr.bf16.mxu1 %v13348_v51  ;;  %v13399_v49 = vld [vmem:[%s19134_s1 + $0x7c0] ss:$16 sps:$4 sm:$0xff]   ;;  %v13402_v51 = vld [vmem:[%s19134_s1 + $0x7c8] ss:$16 sps:$4 sm:$0xff]  }
  0x59   : > { %1374 = vmatprep.mubr.bf16.mxu0 %v584_v23  ;;  %1496 = vmatprep.mubr.bf16.mxu1 %v584_v23  ;;  %v13428_v23 = vld [vmem:[%s19134_s1 + $0x40] ss:$16 sps:$4 sm:$0xff]  }
  0x5b   : > { %1353 = vmatpush1.bf16.msra.mxu0 %v13343_v55  ;;  %1475 = vmatpush1.bf16.msra.mxu1 %v13346_v56  ;;  %v13407_v55 = vld [vmem:[%s19134_s1 + $0x7e4] ss:$16 sps:$4 sm:$0xff]   ;;  %v13410_v56 = vld [vmem:[%s19134_s1 + $0x7ec] ss:$16 sps:$4 sm:$0xff]  }
  0x5c   : > { %1354 = vmatprep.subr.bf16.mxu0 %v13351_v59  ;;  %1476 = vmatprep.subr.bf16.mxu1 %v13354_v60  ;;  %v13405_v59 = vld [vmem:[%s19134_s1 + $0x7e0] ss:$16 sps:$4 sm:$0xff]   ;;  %v13408_v60 = vld [vmem:[%s19134_s1 + $0x7e8] ss:$16 sps:$4 sm:$0xff]  }
  0x5f   : > { %1355 = vmatpush1.bf16.msra.mxu0 %v13349_v61  ;;  %1477 = vmatpush1.bf16.msra.mxu1 %v13352_v0  ;;  %v567_v61 = vor.u32 %v566_v53, %v562_v52  ;;  %v15541_v0 = vcombine.high %v364_v57, %v364_v57  ;;  %v13466_v52 = vld [vmem:[%s19134_s1 + $0x104] ss:$16 sps:$4 sm:$0xff]   ;;  %v13469_v53 = vld [vmem:[%s19134_s1 + $0x10c] ss:$16 sps:$4 sm:$0xff]  }
  0x60   : > { %1356 = vmatprep.subr.bf16.mxu0 %v13357_v2  ;;  %1478 = vmatprep.subr.bf16.mxu1 %v13360_v5  ;;  %v13418_v2 = vld [vmem:[%s19134_s1 + $0x4] ss:$16 sps:$4 sm:$0xff]   ;;  %v13475_v57 = vld [vmem:[%s19134_s1 + $0x12c] ss:$16 sps:$4 sm:$0xff]  }
  0x61   : > { %v613_v5 = vshll.u32 %v15541_v0, 16  ;;  %v572_v9 = vsel %vm536_vm0, %v567_v61, %v571_v63  ;;  %v13481_v61 = vld [vmem:[%s19134_s1 + $0x14c] ss:$16 sps:$4 sm:$0xff]  }
  0x63   : > { %1357 = vmatpush1.bf16.msra.mxu0 %v13355_v8  ;;  %1479 = vmatpush1.bf16.msra.mxu1 %v13358_v12  ;;  %v611_v8 = vor.u32 %v609_v58, %v15438_v17  ;;  %v615_v11 = vrot.slane %v613_v5, 1  ;;  %v601_v12 = vshrl.u32 %v13413_v45, 16  ;;  %v13425_v17 = vld [vmem:[%s19134_s1 + $0x28] ss:$16 sps:$4 sm:$0xff]   ;;  %v13457_v45 = vld [vmem:[%s19134_s1 + $0xcc] ss:$16 sps:$4 sm:$0xff]  }
  0x64   : > { %1358 = vmatprep.subr.bf16.mxu0 %v13363_v14  ;;  %1480 = vmatprep.subr.bf16.mxu1 %v13366_v15  ;;  %v13427_v14 = vld [vmem:[%s19134_s1 + $0x2c] ss:$16 sps:$4 sm:$0xff]   ;;  %v13422_v15 = vld [vmem:[%s19134_s1 + $0x20] ss:$16 sps:$4 sm:$0xff]  }
  0x65   : > { %v616_v16 = vsel %vm536_vm0, %v611_v8, %v615_v11  ;;  %v603_v19 = vor.u32 %v601_v12, %v571_v63  ;;  %v13470_v58 = vld [vmem:[%s19134_s1 + $0x120] ss:$16 sps:$4 sm:$0xff]   ;;  %v13491_v8 = vld [vmem:[%s19134_s1 + $0x184] ss:$16 sps:$4 sm:$0xff]  }
  0x66   : > { %v13476_v63 = vld [vmem:[%s19134_s1 + $0x140] ss:$16 sps:$4 sm:$0xff]   ;;  %v13498_v12 = vld [vmem:[%s19134_s1 + $0x1a4] ss:$16 sps:$4 sm:$0xff]  }
  0x67   : > { %1359 = vmatpush1.bf16.msra.mxu0 %v13361_v18  ;;  %1481 = vmatpush1.bf16.msra.mxu1 %v13364_v20  ;;  %v13430_v18 = vld [vmem:[%s19134_s1 + $0x44] ss:$16 sps:$4 sm:$0xff]   ;;  %v607_v20 = vrot.slane %v605_v13, 1  ;;  %v13482_v5 = vld [vmem:[%s19134_s1 + $0x160] ss:$16 sps:$4 sm:$0xff]  }
  0x68   : > { %1360 = vmatprep.subr.bf16.mxu0 %v13369_v21  ;;  %1482 = vmatprep.subr.bf16.mxu1 %v13372_v22  ;;  %v13433_v21 = vld [vmem:[%s19134_s1 + $0x4c] ss:$16 sps:$4 sm:$0xff]   ;;  %v626_v22 = vshrl.u32 %v15541_v0, 16 }
  0x69   : > { %v13501_v13 = vld [vmem:[%s19134_s1 + $0x1ac] ss:$16 sps:$4 sm:$0xff]  }
  0x6b   : > { %1361 = vmatpush1.bf16.msra.mxu0 %v13367_v24  ;;  %1483 = vmatpush1.bf16.msra.mxu1 %v13370_v25  ;;  %v13431_v24 = vld [vmem:[%s19134_s1 + $0x48] ss:$16 sps:$4 sm:$0xff]   ;;  %v13436_v25 = vld [vmem:[%s19134_s1 + $0x64] ss:$16 sps:$4 sm:$0xff]  }
  0x6c   : > { %1362 = vmatprep.subr.bf16.mxu0 %v13375_v26  ;;  %1484 = vmatprep.subr.bf16.mxu1 %v13378_v27  ;;  %v608_v26 = vsel %vm536_vm0, %v603_v19, %v607_v20  ;;  %v13439_v27 = vld [vmem:[%s19134_s1 + $0x6c] ss:$16 sps:$4 sm:$0xff]   ;;  %v13505_v19 = vld [vmem:[%s19134_s1 + $0x1c8] ss:$16 sps:$4 sm:$0xff]  }
  0x6f   : > { %1363 = vmatpush1.bf16.msra.mxu0 %v13373_v28  ;;  %1485 = vmatpush1.bf16.msra.mxu1 %v13376_v29  ;;  %v628_v28 = vor.u32 %v626_v22, %v615_v11  ;;  %v13434_v29 = vld [vmem:[%s19134_s1 + $0x60] ss:$16 sps:$4 sm:$0xff]   ;;  %v13492_v11 = vld [vmem:[%s19134_s1 + $0x188] ss:$16 sps:$4 sm:$0xff]  }
  0x70   : > { %1364 = vmatprep.subr.bf16.mxu0 %v13381_v30  ;;  %1486 = vmatprep.subr.bf16.mxu1 %v13384_v31  ;;  %v623_v30 = vshrl.u32 %v15543_v1, 16  ;;  %v13437_v31 = vld [vmem:[%s19134_s1 + $0x68] ss:$16 sps:$4 sm:$0xff]   ;;  %v13508_v22 = vld [vmem:[%s19134_s1 + $0x1e0] ss:$16 sps:$4 sm:$0xff]  }
  0x73   : > { %1365 = vmatpush1.bf16.msra.mxu0 %v13379_v32  ;;  %1487 = vmatpush1.bf16.msra.mxu1 %v13382_v33  ;;  %v13442_v32 = vld [vmem:[%s19134_s1 + $0x84] ss:$16 sps:$4 sm:$0xff]   ;;  %v13445_v33 = vld [vmem:[%s19134_s1 + $0x8c] ss:$16 sps:$4 sm:$0xff]  }
  0x74   : > { %1366 = vmatprep.subr.bf16.mxu0 %v13388_v34  ;;  %1488 = vmatprep.subr.bf16.mxu1 %v13391_v35  ;;  %v13440_v34 = vld [vmem:[%s19134_s1 + $0x80] ss:$16 sps:$4 sm:$0xff]   ;;  %v625_v35 = vor.u32 %v623_v30, %v607_v20  ;;  %v13510_v20 = vld [vmem:[%s19134_s1 + $0x1e4] ss:$16 sps:$4 sm:$0xff]  }
  0x75   : > { %v13520_v30 = vld [vmem:[%s19134_s1 + $0x220] ss:$16 sps:$4 sm:$0xff]  }
  0x77   : > { %1367 = vmatpush1.bf16.msra.mxu0 %v13386_v36  ;;  %1489 = vmatpush1.bf16.msra.mxu1 %v13389_v37  ;;  %v13443_v36 = vld [vmem:[%s19134_s1 + $0x88] ss:$16 sps:$4 sm:$0xff]   ;;  %v13448_v37 = vld [vmem:[%s19134_s1 + $0xa4] ss:$16 sps:$4 sm:$0xff]  }
  0x78   : > { %1368 = vmatprep.subr.bf16.mxu0 %v13395_v39  ;;  %1490 = vmatprep.subr.bf16.mxu1 %v13398_v40  ;;  %v13451_v39 = vld [vmem:[%s19134_s1 + $0xac] ss:$16 sps:$4 sm:$0xff]   ;;  %v13446_v40 = vld [vmem:[%s19134_s1 + $0xa0] ss:$16 sps:$4 sm:$0xff]  }
  0x7b   : > { %1369 = vmatpush1.bf16.msra.mxu0 %v13393_v43  ;;  %1491 = vmatpush1.bf16.msra.mxu1 %v13396_v44  ;;  %v13449_v43 = vld [vmem:[%s19134_s1 + $0xa8] ss:$16 sps:$4 sm:$0xff]   ;;  %v13454_v44 = vld [vmem:[%s19134_s1 + $0xc4] ss:$16 sps:$4 sm:$0xff]  }
  0x7c   : > { %1370 = vmatprep.subr.bf16.mxu0 %v13401_v47  ;;  %1492 = vmatprep.subr.bf16.mxu1 %v13404_v48  ;;  %v13455_v47 = vld [vmem:[%s19134_s1 + $0xc8] ss:$16 sps:$4 sm:$0xff]   ;;  %v13460_v48 = vld [vmem:[%s19134_s1 + $0xe4] ss:$16 sps:$4 sm:$0xff]  }
  0x7f   : > { %1371 = vmatpush1.bf16.msra.mxu0 %v13399_v49  ;;  %1493 = vmatpush1.bf16.msra.mxu1 %v13402_v51  ;;  %v13458_v49 = vld [vmem:[%s19134_s1 + $0xe0] ss:$16 sps:$4 sm:$0xff]   ;;  %v13461_v51 = vld [vmem:[%s19134_s1 + $0xe8] ss:$16 sps:$4 sm:$0xff]  }
  0x80   : > { %1372 = vmatprep.subr.bf16.mxu0 %v13407_v55  ;;  %1494 = vmatprep.subr.bf16.mxu1 %v13410_v56  ;;  %v13467_v55 = vld [vmem:[%s19134_s1 + $0x108] ss:$16 sps:$4 sm:$0xff]   ;;  %v13472_v56 = vld [vmem:[%s19134_s1 + $0x124] ss:$16 sps:$4 sm:$0xff]  }
  0x83   : > { %1373 = vmatpush1.bf16.msra.mxu0 %v13405_v59  ;;  %1495 = vmatpush1.bf16.msra.mxu1 %v13408_v60  ;;  %v13473_v59 = vld [vmem:[%s19134_s1 + $0x128] ss:$16 sps:$4 sm:$0xff]   ;;  %v13478_v60 = vld [vmem:[%s19134_s1 + $0x144] ss:$16 sps:$4 sm:$0xff]  }
  0x84   : > { %2187 = vmatprep.subr.bf16.mxu0 %v13418_v2  ;;  %2309 = vmatprep.subr.bf16.mxu1 %v13421_v3  ;;  %v13479_v2 = vld [vmem:[%s19134_s1 + $0x148] ss:$16 sps:$4 sm:$0xff]   ;;  %v13484_v3 = vld [vmem:[%s19134_s1 + $0x164] ss:$16 sps:$4 sm:$0xff]  }
  0x86   : > { %1375 = vmatmul.mubr.bf16.vlgmr.msra.gmra.mrb[0].mxu0 %v572_v9  ;;  %1497 = vmatmul.mubr.bf16.vlgmr.msra.gmra.mrb[0].mxu1 %v572_v9  ;;  %v13494_v9 = vld [vmem:[%s19134_s1 + $0x18c] ss:$16 sps:$4 sm:$0xff]  }
  0x87   : > { %2188 = vmatpush1.bf16.msra.mxu0 %v13416_v4  ;;  %2310 = vmatpush1.bf16.msra.mxu1 %v13419_v7  ;;  %v13487_v4 = vld [vmem:[%s19134_s1 + $0x16c] ss:$16 sps:$4 sm:$0xff]   ;;  %v13485_v7 = vld [vmem:[%s19134_s1 + $0x168] ss:$16 sps:$4 sm:$0xff]  }
  0x88   : > { %2189 = vmatprep.subr.bf16.mxu0 %v13424_v10  ;;  %2311 = vmatprep.subr.bf16.mxu1 %v13427_v14  ;;  %v13489_v10 = vld [vmem:[%s19134_s1 + $0x180] ss:$16 sps:$4 sm:$0xff]  }
  0x89   : > { %1384 = vmatprep.mubr.bf16.mxu0 %v616_v16  ;;  %1506 = vmatprep.mubr.bf16.mxu1 %v616_v16  ;;  %v13496_v14 = vld [vmem:[%s19134_s1 + $0x1a0] ss:$16 sps:$4 sm:$0xff]   ;;  %v13504_v16 = vld [vmem:[%s19134_s1 + $0x1c4] ss:$16 sps:$4 sm:$0xff]  }
  0x8b   : > { %2190 = vmatpush1.bf16.msra.mxu0 %v13422_v15  ;;  %2312 = vmatpush1.bf16.msra.mxu1 %v13425_v17  ;;  %v13499_v15 = vld [vmem:[%s19134_s1 + $0x1a8] ss:$16 sps:$4 sm:$0xff]   ;;  %v13507_v17 = vld [vmem:[%s19134_s1 + $0x1cc] ss:$16 sps:$4 sm:$0xff]  }
  0x8c   : > { %2191 = vmatprep.subr.bf16.mxu0 %v13430_v18  ;;  %2313 = vmatprep.subr.bf16.mxu1 %v13433_v21  ;;  %v13502_v18 = vld [vmem:[%s19134_s1 + $0x1c0] ss:$16 sps:$4 sm:$0xff]   ;;  %v13513_v21 = vld [vmem:[%s19134_s1 + $0x1ec] ss:$16 sps:$4 sm:$0xff]  }
  0x8e   : > { %1385 = vmatmul.mubr.bf16.gmra.mrb[4].mxu0 %v608_v26  ;;  %1507 = vmatmul.mubr.bf16.gmra.mrb[4].mxu1 %v608_v26  ;;  %v13514_v26 = vld [vmem:[%s19134_s1 + $0x200] ss:$16 sps:$4 sm:$0xff]  }
  0x8f   : > { %2192 = vmatpush1.bf16.msra.mxu0 %v13428_v23  ;;  %2314 = vmatpush1.bf16.msra.mxu1 %v13431_v24  ;;  %v13511_v23 = vld [vmem:[%s19134_s1 + $0x1e8] ss:$16 sps:$4 sm:$0xff]   ;;  %v13516_v24 = vld [vmem:[%s19134_s1 + $0x204] ss:$16 sps:$4 sm:$0xff]  }
  0x90   : > { %2193 = vmatprep.subr.bf16.mxu0 %v13436_v25  ;;  %2315 = vmatprep.subr.bf16.mxu1 %v13439_v27  ;;  %v13519_v25 = vld [vmem:[%s19134_s1 + $0x20c] ss:$16 sps:$4 sm:$0xff]   ;;  %v13517_v27 = vld [vmem:[%s19134_s1 + $0x208] ss:$16 sps:$4 sm:$0xff]  }
  0x91   : > { %1394 = vmatprep.mubr.bf16.mxu0 %v628_v28  ;;  %1516 = vmatprep.mubr.bf16.mxu1 %v628_v28  ;;  %v13522_v28 = vld [vmem:[%s19134_s1 + $0x224] ss:$16 sps:$4 sm:$0xff]  }
  0x93   : > { %2194 = vmatpush1.bf16.msra.mxu0 %v13434_v29  ;;  %2316 = vmatpush1.bf16.msra.mxu1 %v13437_v31  ;;  %v13525_v29 = vld [vmem:[%s19134_s1 + $0x22c] ss:$16 sps:$4 sm:$0xff]   ;;  %v13523_v31 = vld [vmem:[%s19134_s1 + $0x228] ss:$16 sps:$4 sm:$0xff]  }
  0x94   : > { %2195 = vmatprep.subr.bf16.mxu0 %v13442_v32  ;;  %2317 = vmatprep.subr.bf16.mxu1 %v13445_v33  ;;  %v13528_v32 = vld [vmem:[%s19134_s1 + $0x244] ss:$16 sps:$4 sm:$0xff]   ;;  %v13526_v33 = vld [vmem:[%s19134_s1 + $0x240] ss:$16 sps:$4 sm:$0xff]  }
  0x96   : > { %1395 = vmatmul.mubr.bf16.gmra.mrb[8].mxu0 %v625_v35  ;;  %1517 = vmatmul.mubr.bf16.gmra.mrb[8].mxu1 %v625_v35  ;;  %v13529_v35 = vld [vmem:[%s19134_s1 + $0x248] ss:$16 sps:$4 sm:$0xff]  }
  0x97   : > { %2196 = vmatpush1.bf16.msra.mxu0 %v13440_v34  ;;  %2318 = vmatpush1.bf16.msra.mxu1 %v13443_v36  ;;  %v15783_v34 = vld [vmem:[%s15221_s17 + $0x24] ss:$16 sps:$4 sm:$0xff]  }
  0x98   : > { %2197 = vmatprep.subr.bf16.mxu0 %v13448_v37  ;;  %2319 = vmatprep.subr.bf16.mxu1 %v13451_v39  ;;  %v233_v36 = vld [vmem:[%s15221_s17 + $0x40] sm:$0x33]  ;;  %v13537_v39 = vld [vmem:[%s19134_s1 + $0x26c] ss:$16 sps:$4 sm:$0xff]  }
  0x99   : > { %2219 = vmatprep.mubr.bf16.mxu0 %v15237_v50  ;;  %2341 = vmatprep.mubr.bf16.mxu1 %v15237_v50  ;;  %v13463_v50 = vld [vmem:[%s19134_s1 + $0xec] ss:$16 sps:$4 sm:$0xff]   ;;  %v13534_v37 = vld [vmem:[%s19134_s1 + $0x264] ss:$16 sps:$4 sm:$0xff]  }
  0x9b   : > { %2198 = vmatpush1.bf16.msra.mxu0 %v13446_v40  ;;  %2320 = vmatpush1.bf16.msra.mxu1 %v13449_v43  ;;  %v10790_v40 = vcombine.high %v233_v36, %v233_v36  ;;  %v13532_v43 = vld [vmem:[%s19134_s1 + $0x260] ss:$16 sps:$4 sm:$0xff]  }
  0x9c   : > { %2199 = vmatprep.subr.bf16.mxu0 %v13454_v44  ;;  %2321 = vmatprep.subr.bf16.mxu1 %v13457_v45  ;;  %v13535_v44 = vld [vmem:[%s19134_s1 + $0x268] ss:$16 sps:$4 sm:$0xff]   ;;  %v15804_v45 = vld [vmem:[%s15221_s17 + $0x20] ss:$16 sps:$4 sm:$0xff]  }
  0x9f   : > { %2200 = vmatpush1.bf16.msra.mxu0 %v13452_v46  ;;  %2322 = vmatpush1.bf16.msra.mxu1 %v13455_v47  ;;  %v13540_v46 = vld [vmem:[%s19134_s1 + $0x284] ss:$16 sps:$4 sm:$0xff]   ;;  %v13543_v47 = vld [vmem:[%s19134_s1 + $0x28c] ss:$16 sps:$4 sm:$0xff]  }
  0xa0   : > { %2201 = vmatprep.subr.bf16.mxu0 %v13460_v48  ;;  %2323 = vmatprep.subr.bf16.mxu1 %v13463_v50  ;;  %v13538_v48 = vld [vmem:[%s19134_s1 + $0x280] ss:$16 sps:$4 sm:$0xff]   ;;  %v13541_v50 = vld [vmem:[%s19134_s1 + $0x288] ss:$16 sps:$4 sm:$0xff]  }
  0xa3   : > { %2202 = vmatpush1.bf16.msra.mxu0 %v13458_v49  ;;  %2324 = vmatpush1.bf16.msra.mxu1 %v13461_v51  ;;  %v10789_v49 = vcombine.low %v233_v36, %v233_v36  ;;  %v13546_v51 = vld [vmem:[%s19134_s1 + $0x2a4] ss:$16 sps:$4 sm:$0xff]   ;;  %v13612_v36 = vld [vmem:[%s19134_s1 + $0x800] ss:$16 sps:$4 sm:$0xff]  }
  0xa4   : > { %2203 = vmatprep.subr.bf16.mxu0 %v13466_v52  ;;  %2325 = vmatprep.subr.bf16.mxu1 %v13469_v53  ;;  %v13549_v52 = vld [vmem:[%s19134_s1 + $0x2ac] ss:$16 sps:$4 sm:$0xff]   ;;  %v13544_v53 = vld [vmem:[%s19134_s1 + $0x2a0] ss:$16 sps:$4 sm:$0xff]  }
  0xa7   : > { %2204 = vmatpush1.bf16.msra.mxu0 %v13464_v54  ;;  %2326 = vmatpush1.bf16.msra.mxu1 %v13467_v55  ;;  %v13547_v54 = vld [vmem:[%s19134_s1 + $0x2a8] ss:$16 sps:$4 sm:$0xff]   ;;  %v13552_v55 = vld [vmem:[%s19134_s1 + $0x2c4] ss:$16 sps:$4 sm:$0xff]  }
  0xa8   : > { %2205 = vmatprep.subr.bf16.mxu0 %v13472_v56  ;;  %2327 = vmatprep.subr.bf16.mxu1 %v13475_v57  ;;  %v13555_v56 = vld [vmem:[%s19134_s1 + $0x2cc] ss:$16 sps:$4 sm:$0xff]   ;;  %v13550_v57 = vld [vmem:[%s19134_s1 + $0x2c0] ss:$16 sps:$4 sm:$0xff]  }
  0xab   : > { %2206 = vmatpush1.bf16.msra.mxu0 %v13470_v58  ;;  %2328 = vmatpush1.bf16.msra.mxu1 %v13473_v59  ;;  %v13553_v58 = vld [vmem:[%s19134_s1 + $0x2c8] ss:$16 sps:$4 sm:$0xff]   ;;  %v13558_v59 = vld [vmem:[%s19134_s1 + $0x2e4] ss:$16 sps:$4 sm:$0xff]  }
  0xac   : > { %2207 = vmatprep.subr.bf16.mxu0 %v13478_v60  ;;  %2329 = vmatprep.subr.bf16.mxu1 %v13481_v61  ;;  %v13556_v60 = vld [vmem:[%s19134_s1 + $0x2e0] ss:$16 sps:$4 sm:$0xff]   ;;  %v13559_v61 = vld [vmem:[%s19134_s1 + $0x2e8] ss:$16 sps:$4 sm:$0xff]  }
  0xaf   : > { %2208 = vmatpush1.bf16.msra.mxu0 %v13476_v63  ;;  %2330 = vmatpush1.bf16.msra.mxu1 %v13479_v2  ;;  %v13564_v63 = vld [vmem:[%s19134_s1 + $0x304] ss:$16 sps:$4 sm:$0xff]   ;;  %v13567_v2 = vld [vmem:[%s19134_s1 + $0x30c] ss:$16 sps:$4 sm:$0xff]  }
  0xb0   : > { %2209 = vmatprep.subr.bf16.mxu0 %v13484_v3  ;;  %2331 = vmatprep.subr.bf16.mxu1 %v13487_v4  ;;  %v13562_v3 = vld [vmem:[%s19134_s1 + $0x300] ss:$16 sps:$4 sm:$0xff]   ;;  %v13565_v4 = vld [vmem:[%s19134_s1 + $0x308] ss:$16 sps:$4 sm:$0xff]  }
  0xb3   : > { %2210 = vmatpush1.bf16.msra.mxu0 %v13482_v5  ;;  %2332 = vmatpush1.bf16.msra.mxu1 %v13485_v7  ;;  %v13570_v5 = vld [vmem:[%s19134_s1 + $0x324] ss:$16 sps:$4 sm:$0xff]   ;;  %v13573_v7 = vld [vmem:[%s19134_s1 + $0x32c] ss:$16 sps:$4 sm:$0xff]  }
  0xb4   : > { %2211 = vmatprep.subr.bf16.mxu0 %v13491_v8  ;;  %2333 = vmatprep.subr.bf16.mxu1 %v13494_v9  ;;  %v13568_v8 = vld [vmem:[%s19134_s1 + $0x320] ss:$16 sps:$4 sm:$0xff]   ;;  %v13571_v9 = vld [vmem:[%s19134_s1 + $0x328] ss:$16 sps:$4 sm:$0xff]  }
  0xb7   : > { %2212 = vmatpush1.bf16.msra.mxu0 %v13489_v10  ;;  %2334 = vmatpush1.bf16.msra.mxu1 %v13492_v11  ;;  %v13576_v10 = vld [vmem:[%s19134_s1 + $0x344] ss:$16 sps:$4 sm:$0xff]   ;;  %v13579_v11 = vld [vmem:[%s19134_s1 + $0x34c] ss:$16 sps:$4 sm:$0xff]  }
  0xb8   : > { %2213 = vmatprep.subr.bf16.mxu0 %v13498_v12  ;;  %2335 = vmatprep.subr.bf16.mxu1 %v13501_v13  ;;  %v13574_v12 = vld [vmem:[%s19134_s1 + $0x340] ss:$16 sps:$4 sm:$0xff]   ;;  %v13577_v13 = vld [vmem:[%s19134_s1 + $0x348] ss:$16 sps:$4 sm:$0xff]  }
  0xbb   : > { %2214 = vmatpush1.bf16.msra.mxu0 %v13496_v14  ;;  %2336 = vmatpush1.bf16.msra.mxu1 %v13499_v15  ;;  %v13582_v14 = vld [vmem:[%s19134_s1 + $0x364] ss:$16 sps:$4 sm:$0xff]   ;;  %v13585_v15 = vld [vmem:[%s19134_s1 + $0x36c] ss:$16 sps:$4 sm:$0xff]  }
  0xbc   : > { %2215 = vmatprep.subr.bf16.mxu0 %v13504_v16  ;;  %2337 = vmatprep.subr.bf16.mxu1 %v13507_v17  ;;  %v13580_v16 = vld [vmem:[%s19134_s1 + $0x360] ss:$16 sps:$4 sm:$0xff]   ;;  %v13583_v17 = vld [vmem:[%s19134_s1 + $0x368] ss:$16 sps:$4 sm:$0xff]  }
  0xbf   : > { %2216 = vmatpush1.bf16.msra.mxu0 %v13502_v18  ;;  %2338 = vmatpush1.bf16.msra.mxu1 %v13505_v19  ;;  %v13588_v18 = vld [vmem:[%s19134_s1 + $0x384] ss:$16 sps:$4 sm:$0xff]   ;;  %v13591_v19 = vld [vmem:[%s19134_s1 + $0x38c] ss:$16 sps:$4 sm:$0xff]  }
  0xc0   : > { %2217 = vmatprep.subr.bf16.mxu0 %v13510_v20  ;;  %2339 = vmatprep.subr.bf16.mxu1 %v13513_v21  ;;  %v13586_v20 = vld [vmem:[%s19134_s1 + $0x380] ss:$16 sps:$4 sm:$0xff]   ;;  %v13589_v21 = vld [vmem:[%s19134_s1 + $0x388] ss:$16 sps:$4 sm:$0xff]  }
  0xc3   : > { %2218 = vmatpush1.bf16.msra.mxu0 %v13508_v22  ;;  %2340 = vmatpush1.bf16.msra.mxu1 %v13511_v23  ;;  %v13594_v22 = vld [vmem:[%s19134_s1 + $0x3a4] ss:$16 sps:$4 sm:$0xff]   ;;  %v13597_v23 = vld [vmem:[%s19134_s1 + $0x3ac] ss:$16 sps:$4 sm:$0xff]  }
  0xc4   : > { %2248 = vmatprep.subr.bf16.mxu0 %v13516_v24  ;;  %2370 = vmatprep.subr.bf16.mxu1 %v13519_v25  ;;  %v13592_v24 = vld [vmem:[%s19134_s1 + $0x3a0] ss:$16 sps:$4 sm:$0xff]   ;;  %v13595_v25 = vld [vmem:[%s19134_s1 + $0x3a8] ss:$16 sps:$4 sm:$0xff]  }
  0xc6   : > { %2220 = vmatmul.mubr.bf16.vlgmr.msra.gmra.mrb[0].mxu0 %v15262_v62  ;;  %2342 = vmatmul.mubr.bf16.vlgmr.msra.gmra.mrb[0].mxu1 %v15262_v62  ;;  %v13531_v62 = vld [vmem:[%s19134_s1 + $0x24c] ss:$16 sps:$4 sm:$0xff]  }
  0xc7   : > { %2249 = vmatpush1.bf16.msra.mxu0 %v13514_v26  ;;  %2371 = vmatpush1.bf16.msra.mxu1 %v13517_v27  ;;  %v13601_v26 = vld [vmem:[%s19134_s1 + $0x3c4] ss:$16 sps:$4 sm:$0xff]   ;;  %v13604_v27 = vld [vmem:[%s19134_s1 + $0x3cc] ss:$16 sps:$4 sm:$0xff]  }
  0xc8   : > { %2250 = vmatprep.subr.bf16.mxu0 %v13522_v28  ;;  %2372 = vmatprep.subr.bf16.mxu1 %v13525_v29  ;;  %v13599_v28 = vld [vmem:[%s19134_s1 + $0x3c0] ss:$16 sps:$4 sm:$0xff]   ;;  %v13602_v29 = vld [vmem:[%s19134_s1 + $0x3c8] ss:$16 sps:$4 sm:$0xff]  }
  0xc9   : > { %2229 = vmatprep.mubr.bf16.mxu0 %v15783_v34  ;;  %2351 = vmatprep.mubr.bf16.mxu1 %v15783_v34 }
  0xcb   : > { %2251 = vmatpush1.bf16.msra.mxu0 %v13520_v30  ;;  %2373 = vmatpush1.bf16.msra.mxu1 %v13523_v31  ;;  %v13608_v30 = vld [vmem:[%s19134_s1 + $0x3e4] ss:$16 sps:$4 sm:$0xff]   ;;  %v13611_v31 = vld [vmem:[%s19134_s1 + $0x3ec] ss:$16 sps:$4 sm:$0xff]  }
  0xcc   : > { %2252 = vmatprep.subr.bf16.mxu0 %v13528_v32  ;;  %2374 = vmatprep.subr.bf16.mxu1 %v13531_v62  ;;  %v13606_v32 = vld [vmem:[%s19134_s1 + $0x3e0] ss:$16 sps:$4 sm:$0xff]   ;;  %v13609_v62 = vld [vmem:[%s19134_s1 + $0x3e8] ss:$16 sps:$4 sm:$0xff]  }
  0xce   : > { %2230 = vmatmul.mubr.bf16.gmra.mrb[4].mxu0 %v15804_v45  ;;  %2352 = vmatmul.mubr.bf16.gmra.mrb[4].mxu1 %v15804_v45 }
  0xcf   : > { %2253 = vmatpush1.bf16.msra.mxu0 %v13526_v33  ;;  %2375 = vmatpush1.bf16.msra.mxu1 %v13529_v35  ;;  %v13614_v33 = vld [vmem:[%s19134_s1 + $0x804] ss:$16 sps:$4 sm:$0xff]   ;;  %v13617_v35 = vld [vmem:[%s19134_s1 + $0x80c] ss:$16 sps:$4 sm:$0xff]  }
  0xd0   : > { %2254 = vmatprep.subr.bf16.mxu0 %v13534_v37  ;;  %2376 = vmatprep.subr.bf16.mxu1 %v13537_v39  ;;  %v13615_v37 = vld [vmem:[%s19134_s1 + $0x808] ss:$16 sps:$4 sm:$0xff]   ;;  %v13620_v39 = vld [vmem:[%s19134_s1 + $0x824] ss:$16 sps:$4 sm:$0xff]  }
  0xd1   : > { %2239 = vmatprep.mubr.bf16.mxu0 %v10790_v40  ;;  %2361 = vmatprep.mubr.bf16.mxu1 %v10790_v40  ;;  %v13623_v40 = vld [vmem:[%s19134_s1 + $0x82c] ss:$16 sps:$4 sm:$0xff]  }
  0xd3   : > { %2255 = vmatpush1.bf16.msra.mxu0 %v13532_v43  ;;  %2377 = vmatpush1.bf16.msra.mxu1 %v13535_v44  ;;  %v13618_v43 = vld [vmem:[%s19134_s1 + $0x820] ss:$16 sps:$4 sm:$0xff]   ;;  %v13621_v44 = vld [vmem:[%s19134_s1 + $0x828] ss:$16 sps:$4 sm:$0xff]  }
  0xd4   : > { %2256 = vmatprep.subr.bf16.mxu0 %v13540_v46  ;;  %2378 = vmatprep.subr.bf16.mxu1 %v13543_v47  ;;  %v13626_v46 = vld [vmem:[%s19134_s1 + $0x844] ss:$16 sps:$4 sm:$0xff]   ;;  %v13624_v47 = vld [vmem:[%s19134_s1 + $0x840] ss:$16 sps:$4 sm:$0xff]  }
  0xd6   : > { %2240 = vmatmul.mubr.bf16.gmra.mrb[8].mxu0 %v10789_v49  ;;  %2362 = vmatmul.mubr.bf16.gmra.mrb[8].mxu1 %v10789_v49  ;;  %v234_v49 = vld [vmem:[%s15221_s17 + $0x48] sm:$0x33] }
  0xd7   : > { %2257 = vmatpush1.bf16.msra.mxu0 %v13538_v48  ;;  %2379 = vmatpush1.bf16.msra.mxu1 %v13541_v50  ;;  %v15990_v48 = vld [vmem:[%s15221_s17 + $0x2c] ss:$16 sps:$4 sm:$0xff]   ;;  %v13627_v50 = vld [vmem:[%s19134_s1 + $0x848] ss:$16 sps:$4 sm:$0xff]  }
  0xd8   : > { %2258 = vmatprep.subr.bf16.mxu0 %v13546_v51  ;;  %2380 = vmatprep.subr.bf16.mxu1 %v13549_v52  ;;  %v13632_v51 = vld [vmem:[%s19134_s1 + $0x864] ss:$16 sps:$4 sm:$0xff]  }
  0xd9   : > { %2280 = vmatprep.mubr.bf16.mxu0 %v15418_v6  ;;  %2402 = vmatprep.mubr.bf16.mxu1 %v15418_v6  ;;  %v13561_v6 = vld [vmem:[%s19134_s1 + $0x2ec] ss:$16 sps:$4 sm:$0xff]   ;;  %v16002_v52 = vld [vmem:[%s15221_s17] sm:$0xee] }
  0xdb   : > { %2259 = vmatpush1.bf16.msra.mxu0 %v13544_v53  ;;  %2381 = vmatpush1.bf16.msra.mxu1 %v13547_v54  ;;  %v13635_v53 = vld [vmem:[%s19134_s1 + $0x86c] ss:$16 sps:$4 sm:$0xff]   ;;  %v10792_v54 = vcombine.high %v234_v49, %v234_v49 }
  0xdc   : > { %2260 = vmatprep.subr.bf16.mxu0 %v13552_v55  ;;  %2382 = vmatprep.subr.bf16.mxu1 %v13555_v56  ;;  %v13630_v55 = vld [vmem:[%s19134_s1 + $0x860] ss:$16 sps:$4 sm:$0xff]   ;;  %v16011_v56 = vld [vmem:[%s15221_s17 + $0x28] ss:$16 sps:$4 sm:$0xff]  }
  0xdf   : > { %2261 = vmatpush1.bf16.msra.mxu0 %v13550_v57  ;;  %2383 = vmatpush1.bf16.msra.mxu1 %v13553_v58  ;;  %v16016_v57 = vld [vmem:[%s15221_s17 + $0x10] sm:$0xff] }
  0xe0   : > { %2262 = vmatprep.subr.bf16.mxu0 %v13558_v59  ;;  %2384 = vmatprep.subr.bf16.mxu1 %v13561_v6  ;;  %v11050_v58 = vcombine.high %v16002_v52, %v16016_v57  ;;  %v13633_v59 = vld [vmem:[%s19134_s1 + $0x868] ss:$16 sps:$4 sm:$0xff]   ;;  %v13638_v6 = vld [vmem:[%s19134_s1 + $0x884] ss:$16 sps:$4 sm:$0xff]  }
  0xe3   : > { %2263 = vmatpush1.bf16.msra.mxu0 %v13556_v60  ;;  %2385 = vmatpush1.bf16.msra.mxu1 %v13559_v61  ;;  %v13641_v60 = vld [vmem:[%s19134_s1 + $0x88c] ss:$16 sps:$4 sm:$0xff]   ;;  %v13636_v61 = vld [vmem:[%s19134_s1 + $0x880] ss:$16 sps:$4 sm:$0xff]  }
  0xe4   : > { %2264 = vmatprep.subr.bf16.mxu0 %v13564_v63  ;;  %2386 = vmatprep.subr.bf16.mxu1 %v13567_v2  ;;  %v10791_v63 = vcombine.low %v234_v49, %v234_v49  ;;  %v2576_v2 = vrot.slane %v11050_v58, 1  ;;  %v13700_v49 = vld [vmem:[%s19134_s1 + $0x9c8] ss:$16 sps:$4 sm:$0xff]   ;;  %v13704_v58 = vld [vmem:[%s19134_s1 + $0x9e0] ss:$16 sps:$4 sm:$0xff]  }
  0xe7   : > { %2265 = vmatpush1.bf16.msra.mxu0 %v13562_v3  ;;  %2387 = vmatpush1.bf16.msra.mxu1 %v13565_v4  ;;  %v2577_v3 = vrot.slane %v15783_v34, 1  ;;  %v13639_v4 = vld [vmem:[%s19134_s1 + $0x888] ss:$16 sps:$4 sm:$0xff]   ;;  %v13726_v34 = vld [vmem:[%s19134_s1 + $0xa44] ss:$16 sps:$4 sm:$0xff]  }
  0xe8   : > { %2266 = vmatprep.subr.bf16.mxu0 %v13570_v5  ;;  %2388 = vmatprep.subr.bf16.mxu1 %v13573_v7  ;;  %v13644_v5 = vld [vmem:[%s19134_s1 + $0x8a4] ss:$16 sps:$4 sm:$0xff]   ;;  %v13647_v7 = vld [vmem:[%s19134_s1 + $0x8ac] ss:$16 sps:$4 sm:$0xff]  }
  0xeb   : > { %2267 = vmatpush1.bf16.msra.mxu0 %v13568_v8  ;;  %2389 = vmatpush1.bf16.msra.mxu1 %v13571_v9  ;;  %v13642_v8 = vld [vmem:[%s19134_s1 + $0x8a0] ss:$16 sps:$4 sm:$0xff]   ;;  %v2578_v9 = vsel %vm2572_vm1, %v2576_v2, %v2577_v3  ;;  %v13720_v2 = vld [vmem:[%s19134_s1 + $0xa24] ss:$16 sps:$4 sm:$0xff]  }
  0xec   : > { %2268 = vmatprep.subr.bf16.mxu0 %v13576_v10  ;;  %2390 = vmatprep.subr.bf16.mxu1 %v13579_v11  ;;  %v13645_v10 = vld [vmem:[%s19134_s1 + $0x8a8] ss:$16 sps:$4 sm:$0xff]   ;;  %v13650_v11 = vld [vmem:[%s19134_s1 + $0x8c4] ss:$16 sps:$4 sm:$0xff]  }
  0xef   : > { %2269 = vmatpush1.bf16.msra.mxu0 %v13574_v12  ;;  %2391 = vmatpush1.bf16.msra.mxu1 %v13577_v13  ;;  %v13653_v12 = vld [vmem:[%s19134_s1 + $0x8cc] ss:$16 sps:$4 sm:$0xff]   ;;  %v13648_v13 = vld [vmem:[%s19134_s1 + $0x8c0] ss:$16 sps:$4 sm:$0xff]  }
  0xf0   : > { %2270 = vmatprep.subr.bf16.mxu0 %v13582_v14  ;;  %2392 = vmatprep.subr.bf16.mxu1 %v13585_v15  ;;  %v13651_v14 = vld [vmem:[%s19134_s1 + $0x8c8] ss:$16 sps:$4 sm:$0xff]   ;;  %v13656_v15 = vld [vmem:[%s19134_s1 + $0x8e4] ss:$16 sps:$4 sm:$0xff]  }
  0xf3   : > { %2271 = vmatpush1.bf16.msra.mxu0 %v13580_v16  ;;  %2393 = vmatpush1.bf16.msra.mxu1 %v13583_v17  ;;  %v13659_v16 = vld [vmem:[%s19134_s1 + $0x8ec] ss:$16 sps:$4 sm:$0xff]   ;;  %v13654_v17 = vld [vmem:[%s19134_s1 + $0x8e0] ss:$16 sps:$4 sm:$0xff]  }
  0xf4   : > { %2272 = vmatprep.subr.bf16.mxu0 %v13588_v18  ;;  %2394 = vmatprep.subr.bf16.mxu1 %v13591_v19  ;;  %v13657_v18 = vld [vmem:[%s19134_s1 + $0x8e8] ss:$16 sps:$4 sm:$0xff]   ;;  %v13662_v19 = vld [vmem:[%s19134_s1 + $0x904] ss:$16 sps:$4 sm:$0xff]  }
  0xf7   : > { %2273 = vmatpush1.bf16.msra.mxu0 %v13586_v20  ;;  %2395 = vmatpush1.bf16.msra.mxu1 %v13589_v21  ;;  %v13665_v20 = vld [vmem:[%s19134_s1 + $0x90c] ss:$16 sps:$4 sm:$0xff]   ;;  %v13660_v21 = vld [vmem:[%s19134_s1 + $0x900] ss:$16 sps:$4 sm:$0xff]  }
  0xf8   : > { %2274 = vmatprep.subr.bf16.mxu0 %v13594_v22  ;;  %2396 = vmatprep.subr.bf16.mxu1 %v13597_v23  ;;  %v13663_v22 = vld [vmem:[%s19134_s1 + $0x908] ss:$16 sps:$4 sm:$0xff]   ;;  %v13668_v23 = vld [vmem:[%s19134_s1 + $0x924] ss:$16 sps:$4 sm:$0xff]  }
  0xfb   : > { %2275 = vmatpush1.bf16.msra.mxu0 %v13592_v24  ;;  %2397 = vmatpush1.bf16.msra.mxu1 %v13595_v25  ;;  %v13671_v24 = vld [vmem:[%s19134_s1 + $0x92c] ss:$16 sps:$4 sm:$0xff]   ;;  %v13666_v25 = vld [vmem:[%s19134_s1 + $0x920] ss:$16 sps:$4 sm:$0xff]  }
  0xfc   : > { %2276 = vmatprep.subr.bf16.mxu0 %v13601_v26  ;;  %2398 = vmatprep.subr.bf16.mxu1 %v13604_v27  ;;  %v13669_v26 = vld [vmem:[%s19134_s1 + $0x928] ss:$16 sps:$4 sm:$0xff]   ;;  %v13674_v27 = vld [vmem:[%s19134_s1 + $0x944] ss:$16 sps:$4 sm:$0xff]  }
  0xff   : > { %2277 = vmatpush1.bf16.msra.mxu0 %v13599_v28  ;;  %2399 = vmatpush1.bf16.msra.mxu1 %v13602_v29  ;;  %v13677_v28 = vld [vmem:[%s19134_s1 + $0x94c] ss:$16 sps:$4 sm:$0xff]   ;;  %v13672_v29 = vld [vmem:[%s19134_s1 + $0x940] ss:$16 sps:$4 sm:$0xff]  }
 0x100   : > { %2278 = vmatprep.subr.bf16.mxu0 %v13608_v30  ;;  %2400 = vmatprep.subr.bf16.mxu1 %v13611_v31  ;;  %v13675_v30 = vld [vmem:[%s19134_s1 + $0x948] ss:$16 sps:$4 sm:$0xff]   ;;  %v13680_v31 = vld [vmem:[%s19134_s1 + $0x964] ss:$16 sps:$4 sm:$0xff]  }
 0x103   : > { %2279 = vmatpush1.bf16.msra.mxu0 %v13606_v32  ;;  %2401 = vmatpush1.bf16.msra.mxu1 %v13609_v62  ;;  %v13683_v32 = vld [vmem:[%s19134_s1 + $0x96c] ss:$16 sps:$4 sm:$0xff]   ;;  %v13678_v62 = vld [vmem:[%s19134_s1 + $0x960] ss:$16 sps:$4 sm:$0xff]  }
 0x104   : > { %3245 = vmatprep.subr.bf16.mxu0 %v13614_v33  ;;  %3367 = vmatprep.subr.bf16.mxu1 %v13617_v35  ;;  %v13681_v33 = vld [vmem:[%s19134_s1 + $0x968] ss:$16 sps:$4 sm:$0xff]   ;;  %v13686_v35 = vld [vmem:[%s19134_s1 + $0x984] ss:$16 sps:$4 sm:$0xff]  }
 0x106   : > { %2281 = vmatmul.mubr.bf16.vlgmr.msra.gmra.mrb[0].mxu0 %v15498_v38  ;;  %2403 = vmatmul.mubr.bf16.vlgmr.msra.gmra.mrb[0].mxu1 %v15498_v38  ;;  %v13629_v38 = vld [vmem:[%s19134_s1 + $0x84c] ss:$16 sps:$4 sm:$0xff]  }
 0x107   : > { %3246 = vmatpush1.bf16.msra.mxu0 %v13612_v36  ;;  %3368 = vmatpush1.bf16.msra.mxu1 %v13615_v37  ;;  %v13689_v36 = vld [vmem:[%s19134_s1 + $0x98c] ss:$16 sps:$4 sm:$0xff]   ;;  %v13684_v37 = vld [vmem:[%s19134_s1 + $0x980] ss:$16 sps:$4 sm:$0xff]  }
 0x108   : > { %3247 = vmatprep.subr.bf16.mxu0 %v13620_v39  ;;  %3369 = vmatprep.subr.bf16.mxu1 %v13623_v40  ;;  %v13687_v39 = vld [vmem:[%s19134_s1 + $0x988] ss:$16 sps:$4 sm:$0xff]   ;;  %v13692_v40 = vld [vmem:[%s19134_s1 + $0x9a4] ss:$16 sps:$4 sm:$0xff]  }
 0x109   : > { %2290 = vmatprep.mubr.bf16.mxu0 %v15990_v48  ;;  %2412 = vmatprep.mubr.bf16.mxu1 %v15990_v48 }
 0x10b   : > { %3248 = vmatpush1.bf16.msra.mxu0 %v13618_v43  ;;  %3370 = vmatpush1.bf16.msra.mxu1 %v13621_v44  ;;  %v13695_v43 = vld [vmem:[%s19134_s1 + $0x9ac] ss:$16 sps:$4 sm:$0xff]   ;;  %v13690_v44 = vld [vmem:[%s19134_s1 + $0x9a0] ss:$16 sps:$4 sm:$0xff]  }
 0x10c   : > { %3249 = vmatprep.subr.bf16.mxu0 %v13626_v46  ;;  %3371 = vmatprep.subr.bf16.mxu1 %v13629_v38  ;;  %v13693_v46 = vld [vmem:[%s19134_s1 + $0x9a8] ss:$16 sps:$4 sm:$0xff]   ;;  %v13699_v38 = vld [vmem:[%s19134_s1 + $0x9c4] ss:$16 sps:$4 sm:$0xff]  }
 0x10e   : > { %2291 = vmatmul.mubr.bf16.gmra.mrb[4].mxu0 %v16011_v56  ;;  %2413 = vmatmul.mubr.bf16.gmra.mrb[4].mxu1 %v16011_v56 }
 0x10f   : > { %3250 = vmatpush1.bf16.msra.mxu0 %v13624_v47  ;;  %3372 = vmatpush1.bf16.msra.mxu1 %v13627_v50  ;;  %v13702_v47 = vld [vmem:[%s19134_s1 + $0x9cc] ss:$16 sps:$4 sm:$0xff]   ;;  %v13697_v50 = vld [vmem:[%s19134_s1 + $0x9c0] ss:$16 sps:$4 sm:$0xff]  }
 0x110   : > { %3251 = vmatprep.subr.bf16.mxu0 %v13632_v51  ;;  %3373 = vmatprep.subr.bf16.mxu1 %v13635_v53  ;;  %v11049_v51 = vcombine.low %v16002_v52, %v16016_v57  ;;  %v13706_v53 = vld [vmem:[%s19134_s1 + $0x9e4] ss:$16 sps:$4 sm:$0xff]   ;;  %v13707_v52 = vld [vmem:[%s19134_s1 + $0x9e8] ss:$16 sps:$4 sm:$0xff]  }
 0x111   : > { %2300 = vmatprep.mubr.bf16.mxu0 %v10792_v54  ;;  %2422 = vmatprep.mubr.bf16.mxu1 %v10792_v54  ;;  %v13709_v54 = vld [vmem:[%s19134_s1 + $0x9ec] ss:$16 sps:$4 sm:$0xff]  }
 0x112   : > { %v2573_v57 = vrot.slane %v11049_v51, 1  ;;  %v13772_v51 = vld [vmem:[%s19134_s1 + $0xb40] ss:$16 sps:$4 sm:$0xff]  }
 0x113   : > { %3252 = vmatpush1.bf16.msra.mxu0 %v13630_v55  ;;  %3374 = vmatpush1.bf16.msra.mxu1 %v13633_v59  ;;  %v2574_v55 = vrot.slane %v15804_v45, 1  ;;  %v13714_v59 = vld [vmem:[%s19134_s1 + $0xa04] ss:$16 sps:$4 sm:$0xff]   ;;  %v13717_v45 = vld [vmem:[%s19134_s1 + $0xa0c] ss:$16 sps:$4 sm:$0xff]  }
 0x114   : > { %3253 = vmatprep.subr.bf16.mxu0 %v13638_v6  ;;  %3375 = vmatprep.subr.bf16.mxu1 %v13641_v60  ;;  %v2587_v6 = vrot.slane %v15363_v41, 1  ;;  %v13712_v60 = vld [vmem:[%s19134_s1 + $0xa00] ss:$16 sps:$4 sm:$0xff]   ;;  %v13723_v41 = vld [vmem:[%s19134_s1 + $0xa2c] ss:$16 sps:$4 sm:$0xff]  }
 0x116   : > { %2301 = vmatmul.mubr.bf16.gmra.mrb[8].mxu0 %v10791_v63  ;;  %2423 = vmatmul.mubr.bf16.gmra.mrb[8].mxu1 %v10791_v63  ;;  %v2575_v63 = vsel %vm2572_vm1, %v2573_v57, %v2574_v55  ;;  %v13786_v57 = vld [vmem:[%s19134_s1 + $0xb84] ss:$16 sps:$4 sm:$0xff]  }
 0x117   : > { %3254 = vmatpush1.bf16.msra.mxu0 %v13636_v61  ;;  %3376 = vmatpush1.bf16.msra.mxu1 %v13639_v4  ;;  %v13715_v61 = vld [vmem:[%s19134_s1 + $0xa08] ss:$16 sps:$4 sm:$0xff]   ;;  %v2588_v4 = vsel %vm2572_vm1, %v2577_v3, %v2587_v6  ;;  %v13729_v3 = vld [vmem:[%s19134_s1 + $0xa4c] ss:$16 sps:$4 sm:$0xff]  }
 0x118   : > { %3255 = vmatprep.subr.bf16.mxu0 %v13644_v5  ;;  %3377 = vmatprep.subr.bf16.mxu1 %v13647_v7  ;;  %v13718_v5 = vld [vmem:[%s19134_s1 + $0xa20] ss:$16 sps:$4 sm:$0xff]   ;;  %v13721_v7 = vld [vmem:[%s19134_s1 + $0xa28] ss:$16 sps:$4 sm:$0xff]  }
 0x119   : > { %3277 = vmatprep.mubr.bf16.mxu0 %v2578_v9  ;;  %3399 = vmatprep.mubr.bf16.mxu1 %v2578_v9  ;;  %v13724_v9 = vld [vmem:[%s19134_s1 + $0xa40] ss:$16 sps:$4 sm:$0xff]  }
 0x11b   : > { %3256 = vmatpush1.bf16.msra.mxu0 %v13642_v8  ;;  %3378 = vmatpush1.bf16.msra.mxu1 %v13645_v10  ;;  %v2585_v8 = vrot.slane %v15365_v42, 1  ;;  %v13727_v42 = vld [vmem:[%s19134_s1 + $0xa48] ss:$16 sps:$4 sm:$0xff]  }
 0x11c   : > { %3257 = vmatprep.subr.bf16.mxu0 %v13650_v11  ;;  %3379 = vmatprep.subr.bf16.mxu1 %v13653_v12  ;;  %v16218_v11 = vld [vmem:[%s15221_s17 + $0x8] sm:$0xee]  ;;  %v13732_v12 = vld [vmem:[%s19134_s1 + $0xa64] ss:$16 sps:$4 sm:$0xff]  }
 0x11d   : > { %v2586_v10 = vsel %vm2572_vm1, %v2574_v55, %v2585_v8  ;;  %v13783_v55 = vld [vmem:[%s19134_s1 + $0xb6c] ss:$16 sps:$4 sm:$0xff]  }
 0x11f   : > { %3258 = vmatpush1.bf16.msra.mxu0 %v13648_v13  ;;  %3380 = vmatpush1.bf16.msra.mxu1 %v13651_v14  ;;  %v13735_v13 = vld [vmem:[%s19134_s1 + $0xa6c] ss:$16 sps:$4 sm:$0xff]  }
 0x120   : > { %3259 = vmatprep.subr.bf16.mxu0 %v13656_v15  ;;  %3381 = vmatprep.subr.bf16.mxu1 %v13659_v16  ;;  %v16227_v14 = vld [vmem:[%s15221_s17 + $0x18] sm:$0xff]  ;;  %v13730_v16 = vld [vmem:[%s19134_s1 + $0xa60] ss:$16 sps:$4 sm:$0xff]  }
 0x121   : > { %v11052_v15 = vcombine.high %v16218_v11, %v16227_v14 }
 0x123   : > { %3260 = vmatpush1.bf16.msra.mxu0 %v13654_v17  ;;  %3382 = vmatpush1.bf16.msra.mxu1 %v13657_v18  ;;  %v13733_v17 = vld [vmem:[%s19134_s1 + $0xa68] ss:$16 sps:$4 sm:$0xff]   ;;  %v13738_v18 = vld [vmem:[%s19134_s1 + $0xa84] ss:$16 sps:$4 sm:$0xff]  }
 0x124   : > { %3261 = vmatprep.subr.bf16.mxu0 %v13662_v19  ;;  %3383 = vmatprep.subr.bf16.mxu1 %v13665_v20  ;;  %v13741_v19 = vld [vmem:[%s19134_s1 + $0xa8c] ss:$16 sps:$4 sm:$0xff]   ;;  %v2582_v20 = vrot.slane %v11052_v15, 1  ;;  %v13813_v15 = vld [vmem:[%s19134_s1 + $0xc08] ss:$16 sps:$4 sm:$0xff]  }
 0x127   : > { %3262 = vmatpush1.bf16.msra.mxu0 %v13660_v21  ;;  %3384 = vmatpush1.bf16.msra.mxu1 %v13663_v22  ;;  %v2583_v21 = vrot.slane %v15990_v48, 1  ;;  %v13736_v22 = vld [vmem:[%s19134_s1 + $0xa80] ss:$16 sps:$4 sm:$0xff]   ;;  %v13824_v48 = vld [vmem:[%s19134_s1 + $0xc44] ss:$16 sps:$4 sm:$0xff]  }
 0x128   : > { %3263 = vmatprep.subr.bf16.mxu0 %v13668_v23  ;;  %3385 = vmatprep.subr.bf16.mxu1 %v13671_v24  ;;  %v13739_v23 = vld [vmem:[%s19134_s1 + $0xa88] ss:$16 sps:$4 sm:$0xff]   ;;  %v13744_v24 = vld [vmem:[%s19134_s1 + $0xaa4] ss:$16 sps:$4 sm:$0xff]  }
 0x12b   : > { %3264 = vmatpush1.bf16.msra.mxu0 %v13666_v25  ;;  %3386 = vmatpush1.bf16.msra.mxu1 %v13669_v26  ;;  %v13747_v25 = vld [vmem:[%s19134_s1 + $0xaac] ss:$16 sps:$4 sm:$0xff]   ;;  %v2584_v26 = vsel %vm2572_vm1, %v2582_v20, %v2583_v21  ;;  %v13819_v20 = vld [vmem:[%s19134_s1 + $0xc28] ss:$16 sps:$4 sm:$0xff]  }
 0x12c   : > { %3265 = vmatprep.subr.bf16.mxu0 %v13674_v27  ;;  %3387 = vmatprep.subr.bf16.mxu1 %v13677_v28  ;;  %v13742_v27 = vld [vmem:[%s19134_s1 + $0xaa0] ss:$16 sps:$4 sm:$0xff]   ;;  %v13745_v28 = vld [vmem:[%s19134_s1 + $0xaa8] ss:$16 sps:$4 sm:$0xff]  }
 0x12f   : > { %3266 = vmatpush1.bf16.msra.mxu0 %v13672_v29  ;;  %3388 = vmatpush1.bf16.msra.mxu1 %v13675_v30  ;;  %v13750_v29 = vld [vmem:[%s19134_s1 + $0xac4] ss:$16 sps:$4 sm:$0xff]   ;;  %v13753_v30 = vld [vmem:[%s19134_s1 + $0xacc] ss:$16 sps:$4 sm:$0xff]  }
 0x130   : > { %3267 = vmatprep.subr.bf16.mxu0 %v13680_v31  ;;  %3389 = vmatprep.subr.bf16.mxu1 %v13683_v32  ;;  %v13748_v31 = vld [vmem:[%s19134_s1 + $0xac0] ss:$16 sps:$4 sm:$0xff]   ;;  %v13751_v32 = vld [vmem:[%s19134_s1 + $0xac8] ss:$16 sps:$4 sm:$0xff]  }
 0x133   : > { %3268 = vmatpush1.bf16.msra.mxu0 %v13678_v62  ;;  %3390 = vmatpush1.bf16.msra.mxu1 %v13681_v33  ;;  %v13756_v62 = vld [vmem:[%s19134_s1 + $0xae4] ss:$16 sps:$4 sm:$0xff]   ;;  %v13759_v33 = vld [vmem:[%s19134_s1 + $0xaec] ss:$16 sps:$4 sm:$0xff]  }
 0x134   : > { %3269 = vmatprep.subr.bf16.mxu0 %v13686_v35  ;;  %3391 = vmatprep.subr.bf16.mxu1 %v13689_v36  ;;  %v13754_v35 = vld [vmem:[%s19134_s1 + $0xae0] ss:$16 sps:$4 sm:$0xff]   ;;  %v13757_v36 = vld [vmem:[%s19134_s1 + $0xae8] ss:$16 sps:$4 sm:$0xff]  }
 0x137   : > { %3270 = vmatpush1.bf16.msra.mxu0 %v13684_v37  ;;  %3392 = vmatpush1.bf16.msra.mxu1 %v13687_v39  ;;  %v13762_v37 = vld [vmem:[%s19134_s1 + $0xb04] ss:$16 sps:$4 sm:$0xff]   ;;  %v13765_v39 = vld [vmem:[%s19134_s1 + $0xb0c] ss:$16 sps:$4 sm:$0xff]  }
 0x138   : > { %3271 = vmatprep.subr.bf16.mxu0 %v13692_v40  ;;  %3393 = vmatprep.subr.bf16.mxu1 %v13695_v43  ;;  %v13760_v40 = vld [vmem:[%s19134_s1 + $0xb00] ss:$16 sps:$4 sm:$0xff]   ;;  %v13763_v43 = vld [vmem:[%s19134_s1 + $0xb08] ss:$16 sps:$4 sm:$0xff]  }
 0x13b   : > { %3272 = vmatpush1.bf16.msra.mxu0 %v13690_v44  ;;  %3394 = vmatpush1.bf16.msra.mxu1 %v13693_v46  ;;  %v13768_v44 = vld [vmem:[%s19134_s1 + $0xb24] ss:$16 sps:$4 sm:$0xff]   ;;  %v13771_v46 = vld [vmem:[%s19134_s1 + $0xb2c] ss:$16 sps:$4 sm:$0xff]  }
 0x13c   : > { %3273 = vmatprep.subr.bf16.mxu0 %v13699_v38  ;;  %3395 = vmatprep.subr.bf16.mxu1 %v13702_v47  ;;  %v13766_v38 = vld [vmem:[%s19134_s1 + $0xb20] ss:$16 sps:$4 sm:$0xff]   ;;  %v13769_v47 = vld [vmem:[%s19134_s1 + $0xb28] ss:$16 sps:$4 sm:$0xff]  }
 0x13f   : > { %3274 = vmatpush1.bf16.msra.mxu0 %v13697_v50  ;;  %3396 = vmatpush1.bf16.msra.mxu1 %v13700_v49  ;;  %v13774_v50 = vld [vmem:[%s19134_s1 + $0xb44] ss:$16 sps:$4 sm:$0xff]   ;;  %v13777_v49 = vld [vmem:[%s19134_s1 + $0xb4c] ss:$16 sps:$4 sm:$0xff]  }
 0x140   : > { %3275 = vmatprep.subr.bf16.mxu0 %v13706_v53  ;;  %3397 = vmatprep.subr.bf16.mxu1 %v13709_v54  ;;  %v13775_v53 = vld [vmem:[%s19134_s1 + $0xb48] ss:$16 sps:$4 sm:$0xff]   ;;  %v13780_v54 = vld [vmem:[%s19134_s1 + $0xb64] ss:$16 sps:$4 sm:$0xff]  }
 0x143   : > { %3276 = vmatpush1.bf16.msra.mxu0 %v13704_v58  ;;  %3398 = vmatpush1.bf16.msra.mxu1 %v13707_v52  ;;  %v13778_v58 = vld [vmem:[%s19134_s1 + $0xb60] ss:$16 sps:$4 sm:$0xff]   ;;  %v13781_v52 = vld [vmem:[%s19134_s1 + $0xb68] ss:$16 sps:$4 sm:$0xff]  }
 0x144   : > { %3306 = vmatprep.subr.bf16.mxu0 %v13714_v59  ;;  %3428 = vmatprep.subr.bf16.mxu1 %v13717_v45  ;;  %v13789_v59 = vld [vmem:[%s19134_s1 + $0xb8c] ss:$16 sps:$4 sm:$0xff]   ;;  %v13784_v45 = vld [vmem:[%s19134_s1 + $0xb80] ss:$16 sps:$4 sm:$0xff]  }
 0x146   : > { %3278 = vmatmul.mubr.bf16.vlgmr.msra.gmra.mrb[0].mxu0 %v2575_v63  ;;  %3400 = vmatmul.mubr.bf16.vlgmr.msra.gmra.mrb[0].mxu1 %v2575_v63  ;;  %v13790_v63 = vld [vmem:[%s19134_s1 + $0xba0] ss:$16 sps:$4 sm:$0xff]  }
 0x147   : > { %3307 = vmatpush1.bf16.msra.mxu0 %v13712_v60  ;;  %3429 = vmatpush1.bf16.msra.mxu1 %v13715_v61  ;;  %v13792_v60 = vld [vmem:[%s19134_s1 + $0xba4] ss:$16 sps:$4 sm:$0xff]   ;;  %v13795_v61 = vld [vmem:[%s19134_s1 + $0xbac] ss:$16 sps:$4 sm:$0xff]  }
 0x148   : > { %3308 = vmatprep.subr.bf16.mxu0 %v13720_v2  ;;  %3430 = vmatprep.subr.bf16.mxu1 %v13723_v41  ;;  %v13793_v2 = vld [vmem:[%s19134_s1 + $0xba8] ss:$16 sps:$4 sm:$0xff]   ;;  %v13798_v41 = vld [vmem:[%s19134_s1 + $0xbc4] ss:$16 sps:$4 sm:$0xff]  }
 0x149   : > { %3287 = vmatprep.mubr.bf16.mxu0 %v2588_v4  ;;  %3409 = vmatprep.mubr.bf16.mxu1 %v2588_v4  ;;  %v13801_v4 = vld [vmem:[%s19134_s1 + $0xbcc] ss:$16 sps:$4 sm:$0xff]  }
 0x14b   : > { %3309 = vmatpush1.bf16.msra.mxu0 %v13718_v5  ;;  %3431 = vmatpush1.bf16.msra.mxu1 %v13721_v7  ;;  %v13796_v5 = vld [vmem:[%s19134_s1 + $0xbc0] ss:$16 sps:$4 sm:$0xff]   ;;  %v13799_v7 = vld [vmem:[%s19134_s1 + $0xbc8] ss:$16 sps:$4 sm:$0xff]  }
 0x14c   : > { %3310 = vmatprep.subr.bf16.mxu0 %v13726_v34  ;;  %3432 = vmatprep.subr.bf16.mxu1 %v13729_v3  ;;  %v13804_v34 = vld [vmem:[%s19134_s1 + $0xbe4] ss:$16 sps:$4 sm:$0xff]   ;;  %v13807_v3 = vld [vmem:[%s19134_s1 + $0xbec] ss:$16 sps:$4 sm:$0xff]  }
 0x14e   : > { %3288 = vmatmul.mubr.bf16.gmra.mrb[4].mxu0 %v2586_v10  ;;  %3410 = vmatmul.mubr.bf16.gmra.mrb[4].mxu1 %v2586_v10  ;;  %v13805_v10 = vld [vmem:[%s19134_s1 + $0xbe8] ss:$16 sps:$4 sm:$0xff]  }
 0x14f   : > { %3311 = vmatpush1.bf16.msra.mxu0 %v13724_v9  ;;  %3433 = vmatpush1.bf16.msra.mxu1 %v13727_v42  ;;  %v2580_v9 = vrot.slane %v16011_v56, 1  ;;  %v13802_v42 = vld [vmem:[%s19134_s1 + $0xbe0] ss:$16 sps:$4 sm:$0xff]   ;;  %v13815_v56 = vld [vmem:[%s19134_s1 + $0xc0c] ss:$16 sps:$4 sm:$0xff]  }
 0x150   : > { %3312 = vmatprep.subr.bf16.mxu0 %v13732_v12  ;;  %3434 = vmatprep.subr.bf16.mxu1 %v13735_v13  ;;  %v13812_v12 = vld [vmem:[%s19134_s1 + $0xc04] ss:$16 sps:$4 sm:$0xff]   ;;  %v2591_v13 = vrot.slane %v15541_v0, 1  ;;  %v13821_v0 = vld [vmem:[%s19134_s1 + $0xc2c] ss:$16 sps:$4 sm:$0xff]  }
 0x151   : > { %3297 = vmatprep.mubr.bf16.mxu0 %v2587_v6  ;;  %3419 = vmatprep.mubr.bf16.mxu1 %v2587_v6  ;;  %v13787_v6 = vld [vmem:[%s19134_s1 + $0xb88] ss:$16 sps:$4 sm:$0xff]  }
 0x153   : > { %3313 = vmatpush1.bf16.msra.mxu0 %v13730_v16  ;;  %3435 = vmatpush1.bf16.msra.mxu1 %v13733_v17  ;;  %v13818_v17 = vld [vmem:[%s19134_s1 + $0xc24] ss:$16 sps:$4 sm:$0xff]  }
 0x154   : > { %3314 = vmatprep.subr.bf16.mxu0 %v13738_v18  ;;  %3436 = vmatprep.subr.bf16.mxu1 %v13741_v19  ;;  %v2592_v18 = vsel %vm2572_vm1, %v2583_v21, %v2591_v13  ;;  %v13816_v19 = vld [vmem:[%s19134_s1 + $0xc20] ss:$16 sps:$4 sm:$0xff]   ;;  %v13827_v21 = vld [vmem:[%s19134_s1 + $0xc4c] ss:$16 sps:$4 sm:$0xff]  }
 0x156   : > { %3298 = vmatmul.mubr.bf16.gmra.mrb[8].mxu0 %v2585_v8  ;;  %3420 = vmatmul.mubr.bf16.gmra.mrb[8].mxu1 %v2585_v8  ;;  %v11051_v8 = vcombine.low %v16218_v11, %v16227_v14  ;;  %v13810_v14 = vld [vmem:[%s19134_s1 + $0xc00] ss:$16 sps:$4 sm:$0xff]  }
 0x157   : > { %3315 = vmatpush1.bf16.msra.mxu0 %v13736_v22  ;;  %3437 = vmatpush1.bf16.msra.mxu1 %v13739_v23  ;;  %v2589_v22 = vrot.slane %v15543_v1, 1  ;;  %v13822_v23 = vld [vmem:[%s19134_s1 + $0xc40] ss:$16 sps:$4 sm:$0xff]  }
 0x158   : > { %3316 = vmatprep.subr.bf16.mxu0 %v13744_v24  ;;  %3438 = vmatprep.subr.bf16.mxu1 %v13747_v25  ;;  %v2579_v11 = vrot.slane %v11051_v8, 1  ;;  %v13825_v24 = vld [vmem:[%s19134_s1 + $0xc48] ss:$16 sps:$4 sm:$0xff]   ;;  %v16431_v1 = vld [vmem:[%s15221_s17] sm:$0x88]  ;;  %v16434_v25 = vld [vmem:[%s15221_s17 + $0x10] sm:$0xff] }
 0x159   : > { %3338 = vmatprep.mubr.bf16.mxu0 %v2584_v26  ;;  %3460 = vmatprep.mubr.bf16.mxu1 %v2584_v26  ;;  %v2590_v26 = vsel %vm2572_vm1, %v2580_v9, %v2589_v22  ;;  %v13873_v8 = vld [vmem:[%s19134_s1 + $0xd48] ss:$16 sps:$4 sm:$0xff]  }
 0x15a   : > { %v2581_v16 = vsel %vm2572_vm1, %v2579_v11, %v2580_v9  ;;  %v13876_v9 = vld [vmem:[%s19134_s1 + $0xd60] ss:$16 sps:$4 sm:$0xff]   ;;  %v13887_v11 = vld [vmem:[%s19134_s1 + $0xd8c] ss:$16 sps:$4 sm:$0xff]  }
 0x15b   : > { %3317 = vmatpush1.bf16.msra.mxu0 %v13742_v27  ;;  %3439 = vmatpush1.bf16.msra.mxu1 %v13745_v28  ;;  %v16438_v27 = vld [vmem:[%s15221_s17 + $0x20] sm:$0xff]  ;;  %v16441_v28 = vld [vmem:[%s15221_s17 + $0x30] sm:$0xff] }
 0x15c   : > { %3318 = vmatprep.subr.bf16.mxu0 %v13750_v29  ;;  %3440 = vmatprep.subr.bf16.mxu1 %v13753_v30  ;;  %v13830_v29 = vld [vmem:[%s19134_s1 + $0xc64] ss:$16 sps:$4 sm:$0xff]   ;;  %v13833_v30 = vld [vmem:[%s19134_s1 + $0xc6c] ss:$16 sps:$4 sm:$0xff]  }
 0x15f   : > { %3319 = vmatpush1.bf16.msra.mxu0 %v13748_v31  ;;  %3441 = vmatpush1.bf16.msra.mxu1 %v13751_v32  ;;  %v16451_v31 = vcombine.high %v16431_v1, %v16434_v25  ;;  %v16455_v32 = vcombine.high %v16438_v27, %v16441_v28 }
 0x160   : > { %3320 = vmatprep.subr.bf16.mxu0 %v13756_v62  ;;  %3442 = vmatprep.subr.bf16.mxu1 %v13759_v33  ;;  %v13828_v62 = vld [vmem:[%s19134_s1 + $0xc60] ss:$16 sps:$4 sm:$0xff]   ;;  %v13831_v33 = vld [vmem:[%s19134_s1 + $0xc68] ss:$16 sps:$4 sm:$0xff]  }
 0x163   : > { %3321 = vmatpush1.bf16.msra.mxu0 %v13754_v35  ;;  %3443 = vmatpush1.bf16.msra.mxu1 %v13757_v36  ;;  %v13836_v35 = vld [vmem:[%s19134_s1 + $0xc84] ss:$16 sps:$4 sm:$0xff]   ;;  %v13839_v36 = vld [vmem:[%s19134_s1 + $0xc8c] ss:$16 sps:$4 sm:$0xff]  }
 0x164   : > { %3322 = vmatprep.subr.bf16.mxu0 %v13762_v37  ;;  %3444 = vmatprep.subr.bf16.mxu1 %v13765_v39  ;;  %v3702_v37 = vrot.slane %v16451_v31, 3  ;;  %v3703_v39 = vrot.slane %v16455_v32, 3 }
 0x167   : > { %3323 = vmatpush1.bf16.msra.mxu0 %v13760_v40  ;;  %3445 = vmatpush1.bf16.msra.mxu1 %v13763_v43  ;;  %v13834_v40 = vld [vmem:[%s19134_s1 + $0xc80] ss:$16 sps:$4 sm:$0xff]   ;;  %v13837_v43 = vld [vmem:[%s19134_s1 + $0xc88] ss:$16 sps:$4 sm:$0xff]  }
 0x168   : > { %3324 = vmatprep.subr.bf16.mxu0 %v13768_v44  ;;  %3446 = vmatprep.subr.bf16.mxu1 %v13771_v46  ;;  %v13842_v44 = vld [vmem:[%s19134_s1 + $0xca4] ss:$16 sps:$4 sm:$0xff]   ;;  %v13845_v46 = vld [vmem:[%s19134_s1 + $0xcac] ss:$16 sps:$4 sm:$0xff]  }
 0x16b   : > { %3325 = vmatpush1.bf16.msra.mxu0 %v13766_v38  ;;  %3447 = vmatpush1.bf16.msra.mxu1 %v13769_v47  ;;  %v3704_v38 = vsel %vm3698_vm2, %v3702_v37, %v3703_v39  ;;  %v13840_v47 = vld [vmem:[%s19134_s1 + $0xca0] ss:$16 sps:$4 sm:$0xff]  }
 0x16c   : > { %3326 = vmatprep.subr.bf16.mxu0 %v13774_v50  ;;  %3448 = vmatprep.subr.bf16.mxu1 %v13777_v49  ;;  %v13843_v50 = vld [vmem:[%s19134_s1 + $0xca8] ss:$16 sps:$4 sm:$0xff]   ;;  %v13848_v49 = vld [vmem:[%s19134_s1 + $0xcc4] ss:$16 sps:$4 sm:$0xff]  }
 0x16f   : > { %3327 = vmatpush1.bf16.msra.mxu0 %v13772_v51  ;;  %3449 = vmatpush1.bf16.msra.mxu1 %v13775_v53  ;;  %v13851_v51 = vld [vmem:[%s19134_s1 + $0xccc] ss:$16 sps:$4 sm:$0xff]   ;;  %v13846_v53 = vld [vmem:[%s19134_s1 + $0xcc0] ss:$16 sps:$4 sm:$0xff]  }
 0x170   : > { %3328 = vmatprep.subr.bf16.mxu0 %v13780_v54  ;;  %3450 = vmatprep.subr.bf16.mxu1 %v13783_v55  ;;  %v13849_v54 = vld [vmem:[%s19134_s1 + $0xcc8] ss:$16 sps:$4 sm:$0xff]   ;;  %v13854_v55 = vld [vmem:[%s19134_s1 + $0xce4] ss:$16 sps:$4 sm:$0xff]  }
 0x173   : > { %3329 = vmatpush1.bf16.msra.mxu0 %v13778_v58  ;;  %3451 = vmatpush1.bf16.msra.mxu1 %v13781_v52  ;;  %v13857_v58 = vld [vmem:[%s19134_s1 + $0xcec] ss:$16 sps:$4 sm:$0xff]   ;;  %v13852_v52 = vld [vmem:[%s19134_s1 + $0xce0] ss:$16 sps:$4 sm:$0xff]  }
 0x174   : > { %3330 = vmatprep.subr.bf16.mxu0 %v13786_v57  ;;  %3452 = vmatprep.subr.bf16.mxu1 %v13789_v59  ;;  %v13855_v57 = vld [vmem:[%s19134_s1 + $0xce8] ss:$16 sps:$4 sm:$0xff]   ;;  %v13860_v59 = vld [vmem:[%s19134_s1 + $0xd04] ss:$16 sps:$4 sm:$0xff]  }
 0x177   : > { %3331 = vmatpush1.bf16.msra.mxu0 %v13784_v45  ;;  %3453 = vmatpush1.bf16.msra.mxu1 %v13787_v6  ;;  %v13863_v45 = vld [vmem:[%s19134_s1 + $0xd0c] ss:$16 sps:$4 sm:$0xff]   ;;  %v13858_v6 = vld [vmem:[%s19134_s1 + $0xd00] ss:$16 sps:$4 sm:$0xff]  }
 0x178   : > { %3332 = vmatprep.subr.bf16.mxu0 %v13792_v60  ;;  %3454 = vmatprep.subr.bf16.mxu1 %v13795_v61  ;;  %v13861_v60 = vld [vmem:[%s19134_s1 + $0xd08] ss:$16 sps:$4 sm:$0xff]   ;;  %v13866_v61 = vld [vmem:[%s19134_s1 + $0xd24] ss:$16 sps:$4 sm:$0xff]  }
 0x17b   : > { %3333 = vmatpush1.bf16.msra.mxu0 %v13790_v63  ;;  %3455 = vmatpush1.bf16.msra.mxu1 %v13793_v2  ;;  %v13869_v63 = vld [vmem:[%s19134_s1 + $0xd2c] ss:$16 sps:$4 sm:$0xff]   ;;  %v13864_v2 = vld [vmem:[%s19134_s1 + $0xd20] ss:$16 sps:$4 sm:$0xff]  }
 0x17c   : > { %3334 = vmatprep.subr.bf16.mxu0 %v13798_v41  ;;  %3456 = vmatprep.subr.bf16.mxu1 %v13801_v4  ;;  %v13867_v41 = vld [vmem:[%s19134_s1 + $0xd28] ss:$16 sps:$4 sm:$0xff]   ;;  %v13872_v4 = vld [vmem:[%s19134_s1 + $0xd44] ss:$16 sps:$4 sm:$0xff]  }
 0x17f   : > { %3335 = vmatpush1.bf16.msra.mxu0 %v13796_v5  ;;  %3457 = vmatpush1.bf16.msra.mxu1 %v13799_v7  ;;  %v13875_v5 = vld [vmem:[%s19134_s1 + $0xd4c] ss:$16 sps:$4 sm:$0xff]   ;;  %v13870_v7 = vld [vmem:[%s19134_s1 + $0xd40] ss:$16 sps:$4 sm:$0xff]  }
 0x180   : > { %3336 = vmatprep.subr.bf16.mxu0 %v13804_v34  ;;  %3458 = vmatprep.subr.bf16.mxu1 %v13807_v3  ;;  %v13878_v34 = vld [vmem:[%s19134_s1 + $0xd64] ss:$16 sps:$4 sm:$0xff]   ;;  %v13881_v3 = vld [vmem:[%s19134_s1 + $0xd6c] ss:$16 sps:$4 sm:$0xff]  }
 0x183   : > { %3337 = vmatpush1.bf16.msra.mxu0 %v13802_v42  ;;  %3459 = vmatpush1.bf16.msra.mxu1 %v13805_v10  ;;  %v13879_v42 = vld [vmem:[%s19134_s1 + $0xd68] ss:$16 sps:$4 sm:$0xff]   ;;  %v13884_v10 = vld [vmem:[%s19134_s1 + $0xd84] ss:$16 sps:$4 sm:$0xff]  }
 0x184   : > { %4371 = vmatprep.subr.bf16.mxu0 %v13812_v12  ;;  %4493 = vmatprep.subr.bf16.mxu1 %v13815_v56  ;;  %v13882_v12 = vld [vmem:[%s19134_s1 + $0xd80] ss:$16 sps:$4 sm:$0xff]   ;;  %v13885_v56 = vld [vmem:[%s19134_s1 + $0xd88] ss:$16 sps:$4 sm:$0xff]  }
 0x186   : > { %3339 = vmatmul.mubr.bf16.vlgmr.msra.gmra.mrb[0].mxu0 %v2581_v16  ;;  %3461 = vmatmul.mubr.bf16.vlgmr.msra.gmra.mrb[0].mxu1 %v2581_v16  ;;  %v13891_v16 = vld [vmem:[%s19134_s1 + $0xda8] ss:$16 sps:$4 sm:$0xff]  }
 0x187   : > { %4372 = vmatpush1.bf16.msra.mxu0 %v13810_v14  ;;  %4494 = vmatpush1.bf16.msra.mxu1 %v13813_v15  ;;  %v13893_v14 = vld [vmem:[%s19134_s1 + $0xdac] ss:$16 sps:$4 sm:$0xff]   ;;  %v13888_v15 = vld [vmem:[%s19134_s1 + $0xda0] ss:$16 sps:$4 sm:$0xff]  }
 0x188   : > { %4373 = vmatprep.subr.bf16.mxu0 %v13818_v17  ;;  %4495 = vmatprep.subr.bf16.mxu1 %v13821_v0  ;;  %v13896_v17 = vld [vmem:[%s19134_s1 + $0xdc4] ss:$16 sps:$4 sm:$0xff]   ;;  %v13899_v0 = vld [vmem:[%s19134_s1 + $0xdcc] ss:$16 sps:$4 sm:$0xff]  }
 0x189   : > { %3348 = vmatprep.mubr.bf16.mxu0 %v2592_v18  ;;  %3470 = vmatprep.mubr.bf16.mxu1 %v2592_v18  ;;  %v13894_v18 = vld [vmem:[%s19134_s1 + $0xdc0] ss:$16 sps:$4 sm:$0xff]  }
 0x18b   : > { %4374 = vmatpush1.bf16.msra.mxu0 %v13816_v19  ;;  %4496 = vmatpush1.bf16.msra.mxu1 %v13819_v20  ;;  %v13897_v19 = vld [vmem:[%s19134_s1 + $0xdc8] ss:$16 sps:$4 sm:$0xff]   ;;  %v16602_v20 = vcombine.low %v16431_v1, %v16434_v25  ;;  %v13900_v1 = vld [vmem:[%s19134_s1 + $0xde0] ss:$16 sps:$4 sm:$0xff]  }
 0x18c   : > { %4375 = vmatprep.subr.bf16.mxu0 %v13824_v48  ;;  %4497 = vmatprep.subr.bf16.mxu1 %v13827_v21  ;;  %v3517_v48 = vld [vmem:[%s15221_s17 + $0x40] sm:$0xff]  ;;  %v3519_v21 = vld [vmem:[%s15221_s17 + $0x50] sm:$0x11]  ;;  %v13903_v25 = vld [vmem:[%s19134_s1 + $0xde8] ss:$16 sps:$4 sm:$0xff]  }
 0x18d   : > { %v11317_v37 = vcombine.low %v3517_v48, %v3519_v21 }
 0x18e   : > { %3349 = vmatmul.mubr.bf16.gmra.mrb[4].mxu0 %v2590_v26  ;;  %3471 = vmatmul.mubr.bf16.gmra.mrb[4].mxu1 %v2590_v26  ;;  %v11318_v26 = vcombine.high %v3517_v48, %v3519_v21  ;;  %v13966_v48 = vld [vmem:[%s19134_s1 + $0xf24] ss:$16 sps:$4 sm:$0xff]   ;;  %v13969_v21 = vld [vmem:[%s19134_s1 + $0xf2c] ss:$16 sps:$4 sm:$0xff]  }
 0x18f   : > { %4376 = vmatpush1.bf16.msra.mxu0 %v13822_v23  ;;  %4498 = vmatpush1.bf16.msra.mxu1 %v13825_v24  ;;  %v13902_v23 = vld [vmem:[%s19134_s1 + $0xde4] ss:$16 sps:$4 sm:$0xff]   ;;  %v13905_v24 = vld [vmem:[%s19134_s1 + $0xdec] ss:$16 sps:$4 sm:$0xff]  }
 0x190   : > { %4377 = vmatprep.subr.bf16.mxu0 %v13830_v29  ;;  %4499 = vmatprep.subr.bf16.mxu1 %v13833_v30  ;;  %v13911_v29 = vld [vmem:[%s19134_s1 + $0xe04] ss:$16 sps:$4 sm:$0xff]   ;;  %v13914_v30 = vld [vmem:[%s19134_s1 + $0xe0c] ss:$16 sps:$4 sm:$0xff]  }
 0x191   : > { %3358 = vmatprep.mubr.bf16.mxu0 %v2591_v13  ;;  %3480 = vmatprep.mubr.bf16.mxu1 %v2591_v13  ;;  %v13890_v13 = vld [vmem:[%s19134_s1 + $0xda4] ss:$16 sps:$4 sm:$0xff]  }
 0x193   : > { %4378 = vmatpush1.bf16.msra.mxu0 %v13828_v62  ;;  %4500 = vmatpush1.bf16.msra.mxu1 %v13831_v33  ;;  %v3713_v62 = vrot.slane %v11318_v26, 3  ;;  %v13909_v33 = vld [vmem:[%s19134_s1 + $0xe00] ss:$16 sps:$4 sm:$0xff]   ;;  %v13972_v26 = vld [vmem:[%s19134_s1 + $0xf44] ss:$16 sps:$4 sm:$0xff]  }
 0x194   : > { %4379 = vmatprep.subr.bf16.mxu0 %v13836_v35  ;;  %4501 = vmatprep.subr.bf16.mxu1 %v13839_v36  ;;  %v13912_v35 = vld [vmem:[%s19134_s1 + $0xe08] ss:$16 sps:$4 sm:$0xff]  }
 0x196   : > { %3359 = vmatmul.mubr.bf16.gmra.mrb[8].mxu0 %v2589_v22  ;;  %3481 = vmatmul.mubr.bf16.gmra.mrb[8].mxu1 %v2589_v22  ;;  %v16606_v22 = vcombine.low %v16438_v27, %v16441_v28  ;;  %v3699_v27 = vrot.slane %v16602_v20, 3 }
 0x197   : > { %4380 = vmatpush1.bf16.msra.mxu0 %v13834_v40  ;;  %4502 = vmatpush1.bf16.msra.mxu1 %v13837_v43  ;;  %v13918_v40 = vld [vmem:[%s19134_s1 + $0xe24] ss:$16 sps:$4 sm:$0xff]   ;;  %v13921_v43 = vld [vmem:[%s19134_s1 + $0xe2c] ss:$16 sps:$4 sm:$0xff]  }
 0x198   : > { %4381 = vmatprep.subr.bf16.mxu0 %v13842_v44  ;;  %4503 = vmatprep.subr.bf16.mxu1 %v13845_v46  ;;  %v3700_v28 = vrot.slane %v16606_v22, 3  ;;  %v3714_v44 = vsel %vm3698_vm2, %v3703_v39, %v3713_v62  ;;  %v13916_v46 = vld [vmem:[%s19134_s1 + $0xe20] ss:$16 sps:$4 sm:$0xff]   ;;  %v13927_v39 = vld [vmem:[%s19134_s1 + $0xe4c] ss:$16 sps:$4 sm:$0xff]  }
 0x199   : > { %4403 = vmatprep.mubr.bf16.mxu0 %v3704_v38  ;;  %4525 = vmatprep.mubr.bf16.mxu1 %v3704_v38  ;;  %v13919_v38 = vld [vmem:[%s19134_s1 + $0xe28] ss:$16 sps:$4 sm:$0xff]  }
 0x19a   : > { %v3701_v36 = vsel %vm3698_vm2, %v3699_v27, %v3700_v28  ;;  %v13973_v27 = vld [vmem:[%s19134_s1 + $0xf48] ss:$16 sps:$4 sm:$0xff]  }
 0x19b   : > { %4382 = vmatpush1.bf16.msra.mxu0 %v13840_v47  ;;  %4504 = vmatpush1.bf16.msra.mxu1 %v13843_v50  ;;  %v3711_v47 = vrot.slane %v11317_v37, 3  ;;  %v13924_v50 = vld [vmem:[%s19134_s1 + $0xe44] ss:$16 sps:$4 sm:$0xff]   ;;  %v13986_v37 = vld [vmem:[%s19134_s1 + $0xf88] ss:$16 sps:$4 sm:$0xff]  }
 0x19c   : > { %4383 = vmatprep.subr.bf16.mxu0 %v13848_v49  ;;  %4505 = vmatprep.subr.bf16.mxu1 %v13851_v51  ;;  %v13922_v49 = vld [vmem:[%s19134_s1 + $0xe40] ss:$16 sps:$4 sm:$0xff]   ;;  %v13925_v51 = vld [vmem:[%s19134_s1 + $0xe48] ss:$16 sps:$4 sm:$0xff]  }
 0x19f   : > { %4384 = vmatpush1.bf16.msra.mxu0 %v13846_v53  ;;  %4506 = vmatpush1.bf16.msra.mxu1 %v13849_v54  ;;  %v16665_v53 = vld [vmem:[%s15221_s17 + $0x8] sm:$0x88]  ;;  %v16668_v54 = vld [vmem:[%s15221_s17 + $0x18] sm:$0xff] }
 0x1a0   : > { %4385 = vmatprep.subr.bf16.mxu0 %v13854_v55  ;;  %4507 = vmatprep.subr.bf16.mxu1 %v13857_v58  ;;  %v3712_v55 = vsel %vm3698_vm2, %v3700_v28, %v3711_v47  ;;  %v16672_v58 = vld [vmem:[%s15221_s17 + $0x28] sm:$0xff]  ;;  %v13978_v28 = vld [vmem:[%s19134_s1 + $0xf64] ss:$16 sps:$4 sm:$0xff]  }
 0x1a3   : > { %4386 = vmatpush1.bf16.msra.mxu0 %v13852_v52  ;;  %4508 = vmatpush1.bf16.msra.mxu1 %v13855_v57  ;;  %v16675_v52 = vld [vmem:[%s15221_s17 + $0x38] sm:$0xff]  ;;  %v13930_v57 = vld [vmem:[%s19134_s1 + $0xe64] ss:$16 sps:$4 sm:$0xff]  }
 0x1a4   : > { %4387 = vmatprep.subr.bf16.mxu0 %v13860_v59  ;;  %4509 = vmatprep.subr.bf16.mxu1 %v13863_v45  ;;  %v13933_v59 = vld [vmem:[%s19134_s1 + $0xe6c] ss:$16 sps:$4 sm:$0xff]   ;;  %v16685_v45 = vcombine.high %v16665_v53, %v16668_v54 }
 0x1a7   : > { %4388 = vmatpush1.bf16.msra.mxu0 %v13858_v6  ;;  %4510 = vmatpush1.bf16.msra.mxu1 %v13861_v60  ;;  %v16689_v6 = vcombine.high %v16672_v58, %v16675_v52  ;;  %v13928_v60 = vld [vmem:[%s19134_s1 + $0xe60] ss:$16 sps:$4 sm:$0xff]  }
 0x1a8   : > { %4389 = vmatprep.subr.bf16.mxu0 %v13866_v61  ;;  %4511 = vmatprep.subr.bf16.mxu1 %v13869_v63  ;;  %v13931_v61 = vld [vmem:[%s19134_s1 + $0xe68] ss:$16 sps:$4 sm:$0xff]   ;;  %v13936_v63 = vld [vmem:[%s19134_s1 + $0xe84] ss:$16 sps:$4 sm:$0xff]  }
 0x1ab   : > { %4390 = vmatpush1.bf16.msra.mxu0 %v13864_v2  ;;  %4512 = vmatpush1.bf16.msra.mxu1 %v13867_v41  ;;  %v13939_v2 = vld [vmem:[%s19134_s1 + $0xe8c] ss:$16 sps:$4 sm:$0xff]   ;;  %v3708_v41 = vrot.slane %v16685_v45, 3 }
 0x1ac   : > { %4391 = vmatprep.subr.bf16.mxu0 %v13872_v4  ;;  %4513 = vmatprep.subr.bf16.mxu1 %v13875_v5  ;;  %v3709_v4 = vrot.slane %v16689_v6, 3  ;;  %v13934_v5 = vld [vmem:[%s19134_s1 + $0xe80] ss:$16 sps:$4 sm:$0xff]  }
 0x1af   : > { %4392 = vmatpush1.bf16.msra.mxu0 %v13870_v7  ;;  %4514 = vmatpush1.bf16.msra.mxu1 %v13873_v8  ;;  %v13937_v7 = vld [vmem:[%s19134_s1 + $0xe88] ss:$16 sps:$4 sm:$0xff]   ;;  %v13942_v8 = vld [vmem:[%s19134_s1 + $0xea4] ss:$16 sps:$4 sm:$0xff]  }
 0x1b0   : > { %4393 = vmatprep.subr.bf16.mxu0 %v13878_v34  ;;  %4515 = vmatprep.subr.bf16.mxu1 %v13881_v3  ;;  %v13945_v34 = vld [vmem:[%s19134_s1 + $0xeac] ss:$16 sps:$4 sm:$0xff]   ;;  %v3710_v3 = vsel %vm3698_vm2, %v3708_v41, %v3709_v4 }
 0x1b3   : > { %4394 = vmatpush1.bf16.msra.mxu0 %v13876_v9  ;;  %4516 = vmatpush1.bf16.msra.mxu1 %v13879_v42  ;;  %v13940_v9 = vld [vmem:[%s19134_s1 + $0xea0] ss:$16 sps:$4 sm:$0xff]   ;;  %v13943_v42 = vld [vmem:[%s19134_s1 + $0xea8] ss:$16 sps:$4 sm:$0xff]  }
 0x1b4   : > { %4395 = vmatprep.subr.bf16.mxu0 %v13884_v10  ;;  %4517 = vmatprep.subr.bf16.mxu1 %v13887_v11  ;;  %v13948_v10 = vld [vmem:[%s19134_s1 + $0xec4] ss:$16 sps:$4 sm:$0xff]   ;;  %v13951_v11 = vld [vmem:[%s19134_s1 + $0xecc] ss:$16 sps:$4 sm:$0xff]  }
 0x1b7   : > { %4396 = vmatpush1.bf16.msra.mxu0 %v13882_v12  ;;  %4518 = vmatpush1.bf16.msra.mxu1 %v13885_v56  ;;  %v13946_v12 = vld [vmem:[%s19134_s1 + $0xec0] ss:$16 sps:$4 sm:$0xff]   ;;  %v13949_v56 = vld [vmem:[%s19134_s1 + $0xec8] ss:$16 sps:$4 sm:$0xff]  }
 0x1b8   : > { %4397 = vmatprep.subr.bf16.mxu0 %v13890_v13  ;;  %4519 = vmatprep.subr.bf16.mxu1 %v13893_v14  ;;  %v13954_v13 = vld [vmem:[%s19134_s1 + $0xee4] ss:$16 sps:$4 sm:$0xff]   ;;  %v13957_v14 = vld [vmem:[%s19134_s1 + $0xeec] ss:$16 sps:$4 sm:$0xff]  }
 0x1bb   : > { %4398 = vmatpush1.bf16.msra.mxu0 %v13888_v15  ;;  %4520 = vmatpush1.bf16.msra.mxu1 %v13891_v16  ;;  %v13952_v15 = vld [vmem:[%s19134_s1 + $0xee0] ss:$16 sps:$4 sm:$0xff]   ;;  %v13955_v16 = vld [vmem:[%s19134_s1 + $0xee8] ss:$16 sps:$4 sm:$0xff]  }
 0x1bc   : > { %4399 = vmatprep.subr.bf16.mxu0 %v13896_v17  ;;  %4521 = vmatprep.subr.bf16.mxu1 %v13899_v0  ;;  %v13960_v17 = vld [vmem:[%s19134_s1 + $0xf04] ss:$16 sps:$4 sm:$0xff]   ;;  %v13963_v0 = vld [vmem:[%s19134_s1 + $0xf0c] ss:$16 sps:$4 sm:$0xff]  }
 0x1bf   : > { %4400 = vmatpush1.bf16.msra.mxu0 %v13894_v18  ;;  %4522 = vmatpush1.bf16.msra.mxu1 %v13897_v19  ;;  %v13958_v18 = vld [vmem:[%s19134_s1 + $0xf00] ss:$16 sps:$4 sm:$0xff]   ;;  %v13961_v19 = vld [vmem:[%s19134_s1 + $0xf08] ss:$16 sps:$4 sm:$0xff]  }
 0x1c0   : > { %4401 = vmatprep.subr.bf16.mxu0 %v13902_v23  ;;  %4523 = vmatprep.subr.bf16.mxu1 %v13905_v24  ;;  %v13964_v23 = vld [vmem:[%s19134_s1 + $0xf20] ss:$16 sps:$4 sm:$0xff]   ;;  %v13967_v24 = vld [vmem:[%s19134_s1 + $0xf28] ss:$16 sps:$4 sm:$0xff]  }
 0x1c3   : > { %4402 = vmatpush1.bf16.msra.mxu0 %v13900_v1  ;;  %4524 = vmatpush1.bf16.msra.mxu1 %v13903_v25  ;;  %v13975_v1 = vld [vmem:[%s19134_s1 + $0xf4c] ss:$16 sps:$4 sm:$0xff]   ;;  %v13970_v25 = vld [vmem:[%s19134_s1 + $0xf40] ss:$16 sps:$4 sm:$0xff]  }
 0x1c4   : > { %4432 = vmatprep.subr.bf16.mxu0 %v13911_v29  ;;  %4554 = vmatprep.subr.bf16.mxu1 %v13914_v30  ;;  %v13981_v29 = vld [vmem:[%s19134_s1 + $0xf6c] ss:$16 sps:$4 sm:$0xff]   ;;  %v13976_v30 = vld [vmem:[%s19134_s1 + $0xf60] ss:$16 sps:$4 sm:$0xff]  }
 0x1c6   : > { %4404 = vmatmul.mubr.bf16.vlgmr.msra.gmra.mrb[0].mxu0 %v3701_v36  ;;  %4526 = vmatmul.mubr.bf16.vlgmr.msra.gmra.mrb[0].mxu1 %v3701_v36  ;;  %v13983_v36 = vld [vmem:[%s19134_s1 + $0xf80] ss:$16 sps:$4 sm:$0xff]  }
 0x1c7   : > { %4433 = vmatpush1.bf16.msra.mxu0 %v13909_v33  ;;  %4555 = vmatpush1.bf16.msra.mxu1 %v13912_v35  ;;  %v13985_v33 = vld [vmem:[%s19134_s1 + $0xf84] ss:$16 sps:$4 sm:$0xff]   ;;  %v13988_v35 = vld [vmem:[%s19134_s1 + $0xf8c] ss:$16 sps:$4 sm:$0xff]  }
 0x1c8   : > { %4434 = vmatprep.subr.bf16.mxu0 %v13918_v40  ;;  %4556 = vmatprep.subr.bf16.mxu1 %v13921_v43  ;;  %v13992_v40 = vld [vmem:[%s19134_s1 + $0xfa4] ss:$16 sps:$4 sm:$0xff]   ;;  %v13995_v43 = vld [vmem:[%s19134_s1 + $0xfac] ss:$16 sps:$4 sm:$0xff]  }
 0x1c9   : > { %4413 = vmatprep.mubr.bf16.mxu0 %v3714_v44  ;;  %4535 = vmatprep.mubr.bf16.mxu1 %v3714_v44  ;;  %v13990_v44 = vld [vmem:[%s19134_s1 + $0xfa0] ss:$16 sps:$4 sm:$0xff]  }
 0x1cb   : > { %4435 = vmatpush1.bf16.msra.mxu0 %v13916_v46  ;;  %4557 = vmatpush1.bf16.msra.mxu1 %v13919_v38  ;;  %v13993_v46 = vld [vmem:[%s19134_s1 + $0xfa8] ss:$16 sps:$4 sm:$0xff]   ;;  %v13998_v38 = vld [vmem:[%s19134_s1 + $0xfc4] ss:$16 sps:$4 sm:$0xff]  }
 0x1cc   : > { %4436 = vmatprep.subr.bf16.mxu0 %v13924_v50  ;;  %4558 = vmatprep.subr.bf16.mxu1 %v13927_v39  ;;  %v13996_v50 = vld [vmem:[%s19134_s1 + $0xfc0] ss:$16 sps:$4 sm:$0xff]   ;;  %v13999_v39 = vld [vmem:[%s19134_s1 + $0xfc8] ss:$16 sps:$4 sm:$0xff]  }
 0x1ce   : > { %4414 = vmatmul.mubr.bf16.gmra.mrb[4].mxu0 %v3712_v55  ;;  %4536 = vmatmul.mubr.bf16.gmra.mrb[4].mxu1 %v3712_v55  ;;  %v3518_v55 = vld [vmem:[%s15221_s17 + $0x48] sm:$0xff] }
 0x1cf   : > { %4437 = vmatpush1.bf16.msra.mxu0 %v13922_v49  ;;  %4559 = vmatpush1.bf16.msra.mxu1 %v13925_v51  ;;  %v16836_v49 = vcombine.low %v16665_v53, %v16668_v54  ;;  %v16840_v51 = vcombine.low %v16672_v58, %v16675_v52  ;;  %v14002_v53 = vld [vmem:[%s19134_s1 + $0xfe0] ss:$16 sps:$4 sm:$0xff]   ;;  %v14005_v54 = vld [vmem:[%s19134_s1 + $0xfe8] ss:$16 sps:$4 sm:$0xff]  }
 0x1d0   : > { %4438 = vmatprep.subr.bf16.mxu0 %v13930_v57  ;;  %4560 = vmatprep.subr.bf16.mxu1 %v13933_v59  ;;  %v3520_v57 = vld [vmem:[%s15221_s17 + $0x58] sm:$0x11]  ;;  %v14004_v59 = vld [vmem:[%s19134_s1 + $0xfe4] ss:$16 sps:$4 sm:$0xff]  }
 0x1d1   : > { %4423 = vmatprep.mubr.bf16.mxu0 %v3713_v62  ;;  %4545 = vmatprep.mubr.bf16.mxu1 %v3713_v62  ;;  %v13979_v62 = vld [vmem:[%s19134_s1 + $0xf68] ss:$16 sps:$4 sm:$0xff]   ;;  %v3705_v58 = vrot.slane %v16836_v49, 3  ;;  %v3706_v52 = vrot.slane %v16840_v51, 3 }
 0x1d3   : > { %4439 = vmatpush1.bf16.msra.mxu0 %v13928_v60  ;;  %4561 = vmatpush1.bf16.msra.mxu1 %v13931_v61  ;;  %v14007_v60 = vld [vmem:[%s19134_s1 + $0xfec] ss:$16 sps:$4 sm:$0xff]   ;;  %v11320_v61 = vcombine.high %v3518_v55, %v3520_v57 }
 0x1d4   : > { %4440 = vmatprep.subr.bf16.mxu0 %v13936_v63  ;;  %4562 = vmatprep.subr.bf16.mxu1 %v13939_v2  ;;  %v14013_v63 = vld [vmem:[%s19134_s1 + $0x1004] ss:$16 sps:$4 sm:$0xff]   ;;  %v14016_v2 = vld [vmem:[%s19134_s1 + $0x100c] ss:$16 sps:$4 sm:$0xff]  }
 0x1d5   : > { %v3717_v41 = vrot.slane %v11320_v61, 3  ;;  %v14068_v61 = vld [vmem:[%s19134_s1 + $0x1124] ss:$16 sps:$4 sm:$0xff]  }
 0x1d6   : > { %4424 = vmatmul.mubr.bf16.gmra.mrb[8].mxu0 %v3711_v47  ;;  %4546 = vmatmul.mubr.bf16.gmra.mrb[8].mxu1 %v3711_v47  ;;  %v14001_v47 = vld [vmem:[%s19134_s1 + $0xfcc] ss:$16 sps:$4 sm:$0xff]  }
 0x1d7   : > { %4441 = vmatpush1.bf16.msra.mxu0 %v13934_v5  ;;  %4563 = vmatpush1.bf16.msra.mxu1 %v13937_v7  ;;  %v14011_v5 = vld [vmem:[%s19134_s1 + $0x1000] ss:$16 sps:$4 sm:$0xff]   ;;  %v14014_v7 = vld [vmem:[%s19134_s1 + $0x1008] ss:$16 sps:$4 sm:$0xff]  }
 0x1d8   : > { %4442 = vmatprep.subr.bf16.mxu0 %v13942_v8  ;;  %4564 = vmatprep.subr.bf16.mxu1 %v13945_v34  ;;  %v3707_v8 = vsel %vm3698_vm2, %v3705_v58, %v3706_v52  ;;  %v11319_v34 = vcombine.low %v3518_v55, %v3520_v57  ;;  %v14062_v55 = vld [vmem:[%s19134_s1 + $0x1104] ss:$16 sps:$4 sm:$0xff]   ;;  %v14065_v57 = vld [vmem:[%s19134_s1 + $0x110c] ss:$16 sps:$4 sm:$0xff]   ;;  %v14069_v58 = vld [vmem:[%s19134_s1 + $0x1128] ss:$16 sps:$4 sm:$0xff]  }
 0x1d9   : > { %4464 = vmatprep.mubr.bf16.mxu0 %v3710_v3  ;;  %4586 = vmatprep.mubr.bf16.mxu1 %v3710_v3  ;;  %v14020_v3 = vld [vmem:[%s19134_s1 + $0x1024] ss:$16 sps:$4 sm:$0xff]  }
 0x1db   : > { %4443 = vmatpush1.bf16.msra.mxu0 %v13940_v9  ;;  %4565 = vmatpush1.bf16.msra.mxu1 %v13943_v42  ;;  %v14023_v9 = vld [vmem:[%s19134_s1 + $0x102c] ss:$16 sps:$4 sm:$0xff]   ;;  %v3718_v42 = vsel %vm3698_vm2, %v3709_v4, %v3717_v41 }
 0x1dc   : > { %4444 = vmatprep.subr.bf16.mxu0 %v13948_v10  ;;  %4566 = vmatprep.subr.bf16.mxu1 %v13951_v11  ;;  %v14018_v10 = vld [vmem:[%s19134_s1 + $0x1020] ss:$16 sps:$4 sm:$0xff]   ;;  %v14021_v11 = vld [vmem:[%s19134_s1 + $0x1028] ss:$16 sps:$4 sm:$0xff]   ;;  %v14029_v4 = vld [vmem:[%s19134_s1 + $0x104c] ss:$16 sps:$4 sm:$0xff]  }
 0x1df   : > { %4445 = vmatpush1.bf16.msra.mxu0 %v13946_v12  ;;  %4567 = vmatpush1.bf16.msra.mxu1 %v13949_v56  ;;  %v3715_v12 = vrot.slane %v11319_v34, 3  ;;  %v14026_v56 = vld [vmem:[%s19134_s1 + $0x1044] ss:$16 sps:$4 sm:$0xff]   ;;  %v14081_v34 = vld [vmem:[%s19134_s1 + $0x1168] ss:$16 sps:$4 sm:$0xff]  }
 0x1e0   : > { %4446 = vmatprep.subr.bf16.mxu0 %v13954_v13  ;;  %4568 = vmatprep.subr.bf16.mxu1 %v13957_v14  ;;  %v4795_v13 = vshrl.u32 %v16451_v31, 16  ;;  %v4798_v14 = vshll.u32 %v16451_v31, 16  ;;  %v14032_v31 = vld [vmem:[%s19134_s1 + $0x1064] ss:$16 sps:$4 sm:$0xff]  }
 0x1e3   : > { %4447 = vmatpush1.bf16.msra.mxu0 %v13952_v15  ;;  %4569 = vmatpush1.bf16.msra.mxu1 %v13955_v16  ;;  %v4803_v15 = vshrl.u32 %v16455_v32, 16  ;;  %v4806_v16 = vshll.u32 %v16455_v32, 16  ;;  %v14035_v32 = vld [vmem:[%s19134_s1 + $0x106c] ss:$16 sps:$4 sm:$0xff]  }
 0x1e4   : > { %4448 = vmatprep.subr.bf16.mxu0 %v13960_v17  ;;  %4570 = vmatprep.subr.bf16.mxu1 %v13963_v0  ;;  %v14024_v17 = vld [vmem:[%s19134_s1 + $0x1040] ss:$16 sps:$4 sm:$0xff]   ;;  %v14027_v0 = vld [vmem:[%s19134_s1 + $0x1048] ss:$16 sps:$4 sm:$0xff]  }
 0x1e7   : > { %4449 = vmatpush1.bf16.msra.mxu0 %v13958_v18  ;;  %4571 = vmatpush1.bf16.msra.mxu1 %v13961_v19  ;;  %v3716_v18 = vsel %vm3698_vm2, %v3706_v52, %v3715_v12  ;;  %v4797_v19 = vrot.slane %v4795_v13, 3  ;;  %v14074_v52 = vld [vmem:[%s19134_s1 + $0x1144] ss:$16 sps:$4 sm:$0xff]   ;;  %v4778_v13 = vshrl.u32 %v16602_v20, 16 }
 0x1e8   : > { %4450 = vmatprep.subr.bf16.mxu0 %v13966_v48  ;;  %4572 = vmatprep.subr.bf16.mxu1 %v13969_v21  ;;  %v4800_v48 = vrot.slane %v4798_v14, 4  ;;  %v4805_v21 = vrot.slane %v4803_v15, 3  ;;  %v15022_v14 = vld [vmem:[%s15221_s17 + $0x40] sm:$0xff] }
 0x1eb   : > { %4451 = vmatpush1.bf16.msra.mxu0 %v13964_v23  ;;  %4573 = vmatpush1.bf16.msra.mxu1 %v13967_v24  ;;  %v4808_v23 = vrot.slane %v4806_v16, 4  ;;  %v14030_v24 = vld [vmem:[%s19134_s1 + $0x1060] ss:$16 sps:$4 sm:$0xff]   ;;  %v14095_v16 = vld [vmem:[%s19134_s1 + $0x11a8] ss:$16 sps:$4 sm:$0xff]  }
 0x1ec   : > { %4452 = vmatprep.subr.bf16.mxu0 %v13972_v26  ;;  %4574 = vmatprep.subr.bf16.mxu1 %v13975_v1  ;;  %v14033_v26 = vld [vmem:[%s19134_s1 + $0x1068] ss:$16 sps:$4 sm:$0xff]   ;;  %v14038_v1 = vld [vmem:[%s19134_s1 + $0x1084] ss:$16 sps:$4 sm:$0xff]  }
 0x1ef   : > { %4453 = vmatpush1.bf16.msra.mxu0 %v13970_v25  ;;  %4575 = vmatpush1.bf16.msra.mxu1 %v13973_v27  ;;  %v14041_v25 = vld [vmem:[%s19134_s1 + $0x108c] ss:$16 sps:$4 sm:$0xff]   ;;  %v14036_v27 = vld [vmem:[%s19134_s1 + $0x1080] ss:$16 sps:$4 sm:$0xff]  }
 0x1f0   : > { %4454 = vmatprep.subr.bf16.mxu0 %v13978_v28  ;;  %4576 = vmatprep.subr.bf16.mxu1 %v13981_v29  ;;  %v4801_v28 = vor.u32 %v4800_v48, %v4797_v19  ;;  %v16924_v29 = vor.u32 %v4808_v23, %v4805_v21  ;;  %v14098_v19 = vld [vmem:[%s19134_s1 + $0x11c0] ss:$16 sps:$4 sm:$0xff]   ;;  %v4780_v48 = vrot.slane %v4778_v13, 3 }
 0x1f3   : > { %4455 = vmatpush1.bf16.msra.mxu0 %v13976_v30  ;;  %4577 = vmatpush1.bf16.msra.mxu1 %v13979_v62  ;;  %v14039_v30 = vld [vmem:[%s19134_s1 + $0x1088] ss:$16 sps:$4 sm:$0xff]   ;;  %v14044_v62 = vld [vmem:[%s19134_s1 + $0x10a4] ss:$16 sps:$4 sm:$0xff]  }
 0x1f4   : > { %4456 = vmatprep.subr.bf16.mxu0 %v13985_v33  ;;  %4578 = vmatprep.subr.bf16.mxu1 %v13988_v35  ;;  %v14047_v33 = vld [vmem:[%s19134_s1 + $0x10ac] ss:$16 sps:$4 sm:$0xff]   ;;  %v4810_v35 = vsel %vm4776_vm3, %v4801_v28, %v16924_v29  ;;  %v14104_v28 = vld [vmem:[%s19134_s1 + $0x11e0] ss:$16 sps:$4 sm:$0xff]  }
 0x1f7   : > { %4457 = vmatpush1.bf16.msra.mxu0 %v13983_v36  ;;  %4579 = vmatpush1.bf16.msra.mxu1 %v13986_v37  ;;  %v14042_v36 = vld [vmem:[%s19134_s1 + $0x10a0] ss:$16 sps:$4 sm:$0xff]   ;;  %v14045_v37 = vld [vmem:[%s19134_s1 + $0x10a8] ss:$16 sps:$4 sm:$0xff]  }
 0x1f8   : > { %4458 = vmatprep.subr.bf16.mxu0 %v13992_v40  ;;  %4580 = vmatprep.subr.bf16.mxu1 %v13995_v43  ;;  %v14050_v40 = vld [vmem:[%s19134_s1 + $0x10c4] ss:$16 sps:$4 sm:$0xff]   ;;  %v14053_v43 = vld [vmem:[%s19134_s1 + $0x10cc] ss:$16 sps:$4 sm:$0xff]  }
 0x1fb   : > { %4459 = vmatpush1.bf16.msra.mxu0 %v13990_v44  ;;  %4581 = vmatpush1.bf16.msra.mxu1 %v13993_v46  ;;  %v14048_v44 = vld [vmem:[%s19134_s1 + $0x10c0] ss:$16 sps:$4 sm:$0xff]   ;;  %v14051_v46 = vld [vmem:[%s19134_s1 + $0x10c8] ss:$16 sps:$4 sm:$0xff]  }
 0x1fc   : > { %4460 = vmatprep.subr.bf16.mxu0 %v13998_v38  ;;  %4582 = vmatprep.subr.bf16.mxu1 %v14001_v47  ;;  %v14056_v38 = vld [vmem:[%s19134_s1 + $0x10e4] ss:$16 sps:$4 sm:$0xff]   ;;  %v14059_v47 = vld [vmem:[%s19134_s1 + $0x10ec] ss:$16 sps:$4 sm:$0xff]  }
 0x1ff   : > { %4461 = vmatpush1.bf16.msra.mxu0 %v13996_v50  ;;  %4583 = vmatpush1.bf16.msra.mxu1 %v13999_v39  ;;  %v14054_v50 = vld [vmem:[%s19134_s1 + $0x10e0] ss:$16 sps:$4 sm:$0xff]   ;;  %v14057_v39 = vld [vmem:[%s19134_s1 + $0x10e8] ss:$16 sps:$4 sm:$0xff]  }
 0x200   : > { %4462 = vmatprep.subr.bf16.mxu0 %v14004_v59  ;;  %4584 = vmatprep.subr.bf16.mxu1 %v14007_v60  ;;  %v14060_v59 = vld [vmem:[%s19134_s1 + $0x1100] ss:$16 sps:$4 sm:$0xff]   ;;  %v14063_v60 = vld [vmem:[%s19134_s1 + $0x1108] ss:$16 sps:$4 sm:$0xff]  }
 0x203   : > { %4463 = vmatpush1.bf16.msra.mxu0 %v14002_v53  ;;  %4585 = vmatpush1.bf16.msra.mxu1 %v14005_v54  ;;  %v14071_v53 = vld [vmem:[%s19134_s1 + $0x112c] ss:$16 sps:$4 sm:$0xff]   ;;  %v14066_v54 = vld [vmem:[%s19134_s1 + $0x1120] ss:$16 sps:$4 sm:$0xff]  }
 0x204   : > { %5533 = vmatprep.subr.bf16.mxu0 %v14013_v63  ;;  %5655 = vmatprep.subr.bf16.mxu1 %v14016_v2  ;;  %v14077_v63 = vld [vmem:[%s19134_s1 + $0x114c] ss:$16 sps:$4 sm:$0xff]   ;;  %v14072_v2 = vld [vmem:[%s19134_s1 + $0x1140] ss:$16 sps:$4 sm:$0xff]  }
 0x206   : > { %4465 = vmatmul.mubr.bf16.vlgmr.msra.gmra.mrb[0].mxu0 %v3707_v8  ;;  %4587 = vmatmul.mubr.bf16.vlgmr.msra.gmra.mrb[0].mxu1 %v3707_v8  ;;  %v14078_v8 = vld [vmem:[%s19134_s1 + $0x1160] ss:$16 sps:$4 sm:$0xff]  }
 0x207   : > { %5534 = vmatpush1.bf16.msra.mxu0 %v14011_v5  ;;  %5656 = vmatpush1.bf16.msra.mxu1 %v14014_v7  ;;  %v14080_v5 = vld [vmem:[%s19134_s1 + $0x1164] ss:$16 sps:$4 sm:$0xff]   ;;  %v14083_v7 = vld [vmem:[%s19134_s1 + $0x116c] ss:$16 sps:$4 sm:$0xff]  }
 0x208   : > { %5535 = vmatprep.subr.bf16.mxu0 %v14020_v3  ;;  %5657 = vmatprep.subr.bf16.mxu1 %v14023_v9  ;;  %v14087_v3 = vld [vmem:[%s19134_s1 + $0x1184] ss:$16 sps:$4 sm:$0xff]   ;;  %v14090_v9 = vld [vmem:[%s19134_s1 + $0x118c] ss:$16 sps:$4 sm:$0xff]  }
 0x209   : > { %4474 = vmatprep.mubr.bf16.mxu0 %v3718_v42  ;;  %4596 = vmatprep.mubr.bf16.mxu1 %v3718_v42  ;;  %v14085_v42 = vld [vmem:[%s19134_s1 + $0x1180] ss:$16 sps:$4 sm:$0xff]  }
 0x20b   : > { %5536 = vmatpush1.bf16.msra.mxu0 %v14018_v10  ;;  %5658 = vmatpush1.bf16.msra.mxu1 %v14021_v11  ;;  %v14088_v10 = vld [vmem:[%s19134_s1 + $0x1188] ss:$16 sps:$4 sm:$0xff]   ;;  %v4635_v11 = vld [vmem:[%s15221_s17 + $0x50] sm:$0x33] }
 0x20c   : > { %5537 = vmatprep.subr.bf16.mxu0 %v14026_v56  ;;  %5659 = vmatprep.subr.bf16.mxu1 %v14029_v4  ;;  %v14097_v56 = vld [vmem:[%s19134_s1 + $0x11ac] ss:$16 sps:$4 sm:$0xff]   ;;  %v14092_v4 = vld [vmem:[%s19134_s1 + $0x11a0] ss:$16 sps:$4 sm:$0xff]   ;;  %v11578_v15 = vcombine.high %v15022_v14, %v4635_v11 }
 0x20e   : > { %4475 = vmatmul.mubr.bf16.gmra.mrb[4].mxu0 %v3716_v18  ;;  %4597 = vmatmul.mubr.bf16.gmra.mrb[4].mxu1 %v3716_v18  ;;  %v4789_v18 = vshll.u32 %v16606_v22, 16  ;;  %v4858_v21 = vshll.u32 %v11578_v15, 16 }
 0x20f   : > { %5538 = vmatpush1.bf16.msra.mxu0 %v14024_v17  ;;  %5660 = vmatpush1.bf16.msra.mxu1 %v14027_v0  ;;  %v4781_v17 = vshll.u32 %v16602_v20, 16  ;;  %v4786_v0 = vshrl.u32 %v16606_v22, 16  ;;  %v4855_v20 = vshrl.u32 %v11578_v15, 16  ;;  %v14101_v22 = vld [vmem:[%s19134_s1 + $0x11c8] ss:$16 sps:$4 sm:$0xff]  }
 0x210   : > { %5539 = vmatprep.subr.bf16.mxu0 %v14032_v31  ;;  %5661 = vmatprep.subr.bf16.mxu1 %v14035_v32  ;;  %v14100_v31 = vld [vmem:[%s19134_s1 + $0x11c4] ss:$16 sps:$4 sm:$0xff]   ;;  %v14103_v32 = vld [vmem:[%s19134_s1 + $0x11cc] ss:$16 sps:$4 sm:$0xff]   ;;  %v14137_v15 = vld [vmem:[%s19134_s1 + $0x1288] ss:$16 sps:$4 sm:$0xff]  }
 0x211   : > { %4484 = vmatprep.mubr.bf16.mxu0 %v3717_v41  ;;  %4606 = vmatprep.mubr.bf16.mxu1 %v3717_v41  ;;  %v14075_v41 = vld [vmem:[%s19134_s1 + $0x1148] ss:$16 sps:$4 sm:$0xff]   ;;  %v4783_v23 = vrot.slane %v4781_v17, 4  ;;  %v14145_v17 = vld [vmem:[%s19134_s1 + $0x12ac] ss:$16 sps:$4 sm:$0xff]  }
 0x213   : > { %5540 = vmatpush1.bf16.msra.mxu0 %v14030_v24  ;;  %5662 = vmatpush1.bf16.msra.mxu1 %v14033_v26  ;;  %v4788_v24 = vrot.slane %v4786_v0, 3  ;;  %v4791_v26 = vrot.slane %v4789_v18, 4  ;;  %v14140_v18 = vld [vmem:[%s19134_s1 + $0x12a0] ss:$16 sps:$4 sm:$0xff]  }
 0x214   : > { %5541 = vmatprep.subr.bf16.mxu0 %v14038_v1  ;;  %5663 = vmatprep.subr.bf16.mxu1 %v14041_v25  ;;  %v11577_v1 = vcombine.low %v15022_v14, %v4635_v11  ;;  %v14106_v25 = vld [vmem:[%s19134_s1 + $0x11e4] ss:$16 sps:$4 sm:$0xff]   ;;  %v14131_v11 = vld [vmem:[%s19134_s1 + $0x1268] ss:$16 sps:$4 sm:$0xff]   ;;  %v14134_v14 = vld [vmem:[%s19134_s1 + $0x1280] ss:$16 sps:$4 sm:$0xff]  }
 0x216   : > { %4485 = vmatmul.mubr.bf16.gmra.mrb[8].mxu0 %v3715_v12  ;;  %4607 = vmatmul.mubr.bf16.gmra.mrb[8].mxu1 %v3715_v12  ;;  %v14094_v12 = vld [vmem:[%s19134_s1 + $0x11a4] ss:$16 sps:$4 sm:$0xff]  }
 0x217   : > { %5542 = vmatpush1.bf16.msra.mxu0 %v14036_v27  ;;  %5664 = vmatpush1.bf16.msra.mxu1 %v14039_v30  ;;  %v14109_v27 = vld [vmem:[%s19134_s1 + $0x11ec] ss:$16 sps:$4 sm:$0xff]   ;;  %v4857_v30 = vrot.slane %v4855_v20, 3  ;;  %v14149_v20 = vld [vmem:[%s19134_s1 + $0x12c8] ss:$16 sps:$4 sm:$0xff]  }
 0x218   : > { %5543 = vmatprep.subr.bf16.mxu0 %v14044_v62  ;;  %5665 = vmatprep.subr.bf16.mxu1 %v14047_v33  ;;  %v4860_v62 = vrot.slane %v4858_v21, 4  ;;  %v14107_v33 = vld [vmem:[%s19134_s1 + $0x11e8] ss:$16 sps:$4 sm:$0xff]   ;;  %v14154_v21 = vld [vmem:[%s19134_s1 + $0x12e4] ss:$16 sps:$4 sm:$0xff]  }
 0x219   : > { %5565 = vmatprep.mubr.bf16.mxu0 %v4810_v35  ;;  %5687 = vmatprep.mubr.bf16.mxu1 %v4810_v35  ;;  %v4784_v35 = vor.u32 %v4783_v23, %v4780_v48  ;;  %v14146_v48 = vld [vmem:[%s19134_s1 + $0x12c0] ss:$16 sps:$4 sm:$0xff]  }
 0x21a   : > { %v14152_v23 = vld [vmem:[%s19134_s1 + $0x12e0] ss:$16 sps:$4 sm:$0xff]  }
 0x21b   : > { %5544 = vmatpush1.bf16.msra.mxu0 %v14042_v36  ;;  %5666 = vmatpush1.bf16.msra.mxu1 %v14045_v37  ;;  %v4792_v36 = vor.u32 %v4791_v26, %v4788_v24  ;;  %v4846_v37 = vshrl.u32 %v11577_v1, 16  ;;  %v14155_v24 = vld [vmem:[%s19134_s1 + $0x12e8] ss:$16 sps:$4 sm:$0xff]   ;;  %v14160_v26 = vld [vmem:[%s19134_s1 + $0x1304] ss:$16 sps:$4 sm:$0xff]  }
 0x21c   : > { %5545 = vmatprep.subr.bf16.mxu0 %v14050_v40  ;;  %5667 = vmatprep.subr.bf16.mxu1 %v14053_v43  ;;  %v4849_v40 = vshll.u32 %v11577_v1, 16  ;;  %v14112_v43 = vld [vmem:[%s19134_s1 + $0x1204] ss:$16 sps:$4 sm:$0xff]   ;;  %v14163_v1 = vld [vmem:[%s19134_s1 + $0x130c] ss:$16 sps:$4 sm:$0xff]  }
 0x21f   : > { %5546 = vmatpush1.bf16.msra.mxu0 %v14048_v44  ;;  %5668 = vmatpush1.bf16.msra.mxu1 %v14051_v46  ;;  %v14115_v44 = vld [vmem:[%s19134_s1 + $0x120c] ss:$16 sps:$4 sm:$0xff]   ;;  %v14110_v46 = vld [vmem:[%s19134_s1 + $0x1200] ss:$16 sps:$4 sm:$0xff]  }
 0x220   : > { %5547 = vmatprep.subr.bf16.mxu0 %v14056_v38  ;;  %5669 = vmatprep.subr.bf16.mxu1 %v14059_v47  ;;  %v4861_v38 = vor.u32 %v4860_v62, %v4857_v30  ;;  %v14113_v47 = vld [vmem:[%s19134_s1 + $0x1208] ss:$16 sps:$4 sm:$0xff]   ;;  %v14169_v30 = vld [vmem:[%s19134_s1 + $0x132c] ss:$16 sps:$4 sm:$0xff]   ;;  %v14164_v62 = vld [vmem:[%s19134_s1 + $0x1320] ss:$16 sps:$4 sm:$0xff]  }
 0x223   : > { %5548 = vmatpush1.bf16.msra.mxu0 %v14054_v50  ;;  %5670 = vmatpush1.bf16.msra.mxu1 %v14057_v39  ;;  %v4793_v50 = vsel %vm4776_vm3, %v4784_v35, %v4792_v36  ;;  %v4848_v39 = vrot.slane %v4846_v37, 3  ;;  %v14172_v35 = vld [vmem:[%s19134_s1 + $0x1344] ss:$16 sps:$4 sm:$0xff]   ;;  %v14170_v37 = vld [vmem:[%s19134_s1 + $0x1340] ss:$16 sps:$4 sm:$0xff]  }
 0x224   : > { %5549 = vmatprep.subr.bf16.mxu0 %v14062_v55  ;;  %5671 = vmatprep.subr.bf16.mxu1 %v14065_v57  ;;  %v4851_v55 = vrot.slane %v4849_v40, 4  ;;  %v14118_v57 = vld [vmem:[%s19134_s1 + $0x1224] ss:$16 sps:$4 sm:$0xff]   ;;  %v14173_v40 = vld [vmem:[%s19134_s1 + $0x1348] ss:$16 sps:$4 sm:$0xff]  }
 0x227   : > { %5550 = vmatpush1.bf16.msra.mxu0 %v14060_v59  ;;  %5672 = vmatpush1.bf16.msra.mxu1 %v14063_v60  ;;  %v14121_v59 = vld [vmem:[%s19134_s1 + $0x122c] ss:$16 sps:$4 sm:$0xff]   ;;  %v4862_v60 = vsel %vm4776_vm3, %v16924_v29, %v4861_v38 }
 0x228   : > { %5551 = vmatprep.subr.bf16.mxu0 %v14068_v61  ;;  %5673 = vmatprep.subr.bf16.mxu1 %v14071_v53  ;;  %v14116_v61 = vld [vmem:[%s19134_s1 + $0x1220] ss:$16 sps:$4 sm:$0xff]   ;;  %v14119_v53 = vld [vmem:[%s19134_s1 + $0x1228] ss:$16 sps:$4 sm:$0xff]   ;;  %v14127_v29 = vld [vmem:[%s19134_s1 + $0x124c] ss:$16 sps:$4 sm:$0xff]  }
 0x22b   : > { %5552 = vmatpush1.bf16.msra.mxu0 %v14066_v54  ;;  %5674 = vmatpush1.bf16.msra.mxu1 %v14069_v58  ;;  %v4852_v54 = vor.u32 %v4851_v55, %v4848_v39  ;;  %v14124_v58 = vld [vmem:[%s19134_s1 + $0x1244] ss:$16 sps:$4 sm:$0xff]   ;;  %v14183_v39 = vld [vmem:[%s19134_s1 + $0x1380] ss:$16 sps:$4 sm:$0xff]   ;;  %v14186_v55 = vld [vmem:[%s19134_s1 + $0x1388] ss:$16 sps:$4 sm:$0xff]  }
 0x22c   : > { %5553 = vmatprep.subr.bf16.mxu0 %v14074_v52  ;;  %5675 = vmatprep.subr.bf16.mxu1 %v14077_v63  ;;  %v4829_v52 = vshrl.u32 %v16685_v45, 16  ;;  %v4832_v63 = vshll.u32 %v16685_v45, 16  ;;  %v14130_v45 = vld [vmem:[%s19134_s1 + $0x1264] ss:$16 sps:$4 sm:$0xff]  }
 0x22f   : > { %5554 = vmatpush1.bf16.msra.mxu0 %v14072_v2  ;;  %5676 = vmatpush1.bf16.msra.mxu1 %v14075_v41  ;;  %v4837_v2 = vshrl.u32 %v16689_v6, 16  ;;  %v4840_v41 = vshll.u32 %v16689_v6, 16  ;;  %v14133_v6 = vld [vmem:[%s19134_s1 + $0x126c] ss:$16 sps:$4 sm:$0xff]  }
 0x230   : > { %5555 = vmatprep.subr.bf16.mxu0 %v14080_v5  ;;  %5677 = vmatprep.subr.bf16.mxu1 %v14083_v7  ;;  %v14122_v5 = vld [vmem:[%s19134_s1 + $0x1240] ss:$16 sps:$4 sm:$0xff]   ;;  %v14125_v7 = vld [vmem:[%s19134_s1 + $0x1248] ss:$16 sps:$4 sm:$0xff]  }
 0x233   : > { %5556 = vmatpush1.bf16.msra.mxu0 %v14078_v8  ;;  %5678 = vmatpush1.bf16.msra.mxu1 %v14081_v34  ;;  %v4853_v8 = vsel %vm4776_vm3, %v4792_v36, %v4852_v54  ;;  %v4831_v34 = vrot.slane %v4829_v52, 3  ;;  %v14175_v36 = vld [vmem:[%s19134_s1 + $0x134c] ss:$16 sps:$4 sm:$0xff]   ;;  %v4815_v52 = vshll.u32 %v16836_v49, 16 }
 0x234   : > { %5557 = vmatprep.subr.bf16.mxu0 %v14087_v3  ;;  %5679 = vmatprep.subr.bf16.mxu1 %v14090_v9  ;;  %v4834_v3 = vrot.slane %v4832_v63, 4  ;;  %v4839_v9 = vrot.slane %v4837_v2, 3  ;;  %v4820_v63 = vshrl.u32 %v16840_v51, 16  ;;  %v4823_v2 = vshll.u32 %v16840_v51, 16  ;;  %v14199_v51 = vld [vmem:[%s19134_s1 + $0x13c8] ss:$16 sps:$4 sm:$0xff]  }
 0x237   : > { %5558 = vmatpush1.bf16.msra.mxu0 %v14085_v42  ;;  %5680 = vmatpush1.bf16.msra.mxu1 %v14088_v10  ;;  %v4842_v42 = vrot.slane %v4840_v41, 4  ;;  %v14128_v10 = vld [vmem:[%s19134_s1 + $0x1260] ss:$16 sps:$4 sm:$0xff]   ;;  %v14198_v41 = vld [vmem:[%s19134_s1 + $0x13c4] ss:$16 sps:$4 sm:$0xff]  }
 0x238   : > { %5559 = vmatprep.subr.bf16.mxu0 %v14094_v12  ;;  %5681 = vmatprep.subr.bf16.mxu1 %v14097_v56  ;;  %v14136_v12 = vld [vmem:[%s19134_s1 + $0x1284] ss:$16 sps:$4 sm:$0xff]   ;;  %v14139_v56 = vld [vmem:[%s19134_s1 + $0x128c] ss:$16 sps:$4 sm:$0xff]  }
 0x239   : > { %v17131_v13 = vor.u32 %v4842_v42, %v4839_v9  ;;  %v14204_v42 = vld [vmem:[%s19134_s1 + $0x13e4] ss:$16 sps:$4 sm:$0xff]  }
 0x23b   : > { %5560 = vmatpush1.bf16.msra.mxu0 %v14092_v4  ;;  %5682 = vmatpush1.bf16.msra.mxu1 %v14095_v16  ;;  %v4835_v4 = vor.u32 %v4834_v3, %v4831_v34  ;;  %v14142_v16 = vld [vmem:[%s19134_s1 + $0x12a4] ss:$16 sps:$4 sm:$0xff]   ;;  %v4822_v34 = vrot.slane %v4820_v63, 3  ;;  %v4825_v3 = vrot.slane %v4823_v2, 4  ;;  %v14255_v63 = vld [vmem:[%s19134_s1 + $0x14ec] ss:$16 sps:$4 sm:$0xff]  }
 0x23c   : > { %5561 = vmatprep.subr.bf16.mxu0 %v14100_v31  ;;  %5683 = vmatprep.subr.bf16.mxu1 %v14103_v32  ;;  %v14143_v31 = vld [vmem:[%s19134_s1 + $0x12a8] ss:$16 sps:$4 sm:$0xff]   ;;  %v14148_v32 = vld [vmem:[%s19134_s1 + $0x12c4] ss:$16 sps:$4 sm:$0xff]   ;;  %v14250_v2 = vld [vmem:[%s19134_s1 + $0x14e0] ss:$16 sps:$4 sm:$0xff]  }
 0x23d   : > { %v4844_v0 = vsel %vm4776_vm3, %v4835_v4, %v17131_v13  ;;  %v14205_v4 = vld [vmem:[%s19134_s1 + $0x13e8] ss:$16 sps:$4 sm:$0xff]  }
 0x23f   : > { %5562 = vmatpush1.bf16.msra.mxu0 %v14098_v19  ;;  %5684 = vmatpush1.bf16.msra.mxu1 %v14101_v22  ;;  %v14151_v19 = vld [vmem:[%s19134_s1 + $0x12cc] ss:$16 sps:$4 sm:$0xff]  }
 0x240   : > { %5563 = vmatprep.subr.bf16.mxu0 %v14106_v25  ;;  %5685 = vmatprep.subr.bf16.mxu1 %v14109_v27  ;;  %v14157_v22 = vld [vmem:[%s19134_s1 + $0x12ec] ss:$16 sps:$4 sm:$0xff]   ;;  %v14158_v25 = vld [vmem:[%s19134_s1 + $0x1300] ss:$16 sps:$4 sm:$0xff]   ;;  %v14161_v27 = vld [vmem:[%s19134_s1 + $0x1308] ss:$16 sps:$4 sm:$0xff]  }
 0x243   : > { %5564 = vmatpush1.bf16.msra.mxu0 %v14104_v28  ;;  %5686 = vmatpush1.bf16.msra.mxu1 %v14107_v33  ;;  %v14166_v28 = vld [vmem:[%s19134_s1 + $0x1324] ss:$16 sps:$4 sm:$0xff]   ;;  %v14167_v33 = vld [vmem:[%s19134_s1 + $0x1328] ss:$16 sps:$4 sm:$0xff]  }
 0x244   : > { %5594 = vmatprep.subr.bf16.mxu0 %v14112_v43  ;;  %5716 = vmatprep.subr.bf16.mxu1 %v14115_v44  ;;  %v14178_v43 = vld [vmem:[%s19134_s1 + $0x1364] ss:$16 sps:$4 sm:$0xff]   ;;  %v14181_v44 = vld [vmem:[%s19134_s1 + $0x136c] ss:$16 sps:$4 sm:$0xff]  }
 0x246   : > { %5566 = vmatmul.mubr.bf16.vlgmr.msra.gmra.mrb[0].mxu0 %v4793_v50  ;;  %5688 = vmatmul.mubr.bf16.vlgmr.msra.gmra.mrb[0].mxu1 %v4793_v50  ;;  %v14188_v50 = vld [vmem:[%s19134_s1 + $0x138c] ss:$16 sps:$4 sm:$0xff]  }
 0x247   : > { %5595 = vmatpush1.bf16.msra.mxu0 %v14110_v46  ;;  %5717 = vmatpush1.bf16.msra.mxu1 %v14113_v47  ;;  %v14176_v46 = vld [vmem:[%s19134_s1 + $0x1360] ss:$16 sps:$4 sm:$0xff]   ;;  %v14185_v47 = vld [vmem:[%s19134_s1 + $0x1384] ss:$16 sps:$4 sm:$0xff]  }
 0x248   : > { %5596 = vmatprep.subr.bf16.mxu0 %v14118_v57  ;;  %5718 = vmatprep.subr.bf16.mxu1 %v14121_v59  ;;  %v17238_v57 = vld [vmem:[%s15221_s17 + $0x58] sm:$0x33]  ;;  %v14192_v59 = vld [vmem:[%s19134_s1 + $0x13a4] ss:$16 sps:$4 sm:$0xff]  }
 0x249   : > { %5575 = vmatprep.mubr.bf16.mxu0 %v4862_v60  ;;  %5697 = vmatprep.mubr.bf16.mxu1 %v4862_v60  ;;  %v14195_v60 = vld [vmem:[%s19134_s1 + $0x13ac] ss:$16 sps:$4 sm:$0xff]  }
 0x24b   : > { %5597 = vmatpush1.bf16.msra.mxu0 %v14116_v61  ;;  %5719 = vmatpush1.bf16.msra.mxu1 %v14119_v53  ;;  %v14190_v61 = vld [vmem:[%s19134_s1 + $0x13a0] ss:$16 sps:$4 sm:$0xff]   ;;  %v4812_v53 = vshrl.u32 %v16836_v49, 16 }
 0x24c   : > { %5598 = vmatprep.subr.bf16.mxu0 %v14124_v58  ;;  %5720 = vmatprep.subr.bf16.mxu1 %v14127_v29  ;;  %v14193_v29 = vld [vmem:[%s19134_s1 + $0x13a8] ss:$16 sps:$4 sm:$0xff]  }
 0x24e   : > { %5576 = vmatmul.mubr.bf16.gmra.mrb[4].mxu0 %v4853_v8  ;;  %5698 = vmatmul.mubr.bf16.gmra.mrb[4].mxu1 %v4853_v8  ;;  %v4814_v8 = vrot.slane %v4812_v53, 3  ;;  %v14249_v53 = vld [vmem:[%s19134_s1 + $0x14cc] ss:$16 sps:$4 sm:$0xff]  }
 0x24f   : > { %5599 = vmatpush1.bf16.msra.mxu0 %v14122_v5  ;;  %5721 = vmatpush1.bf16.msra.mxu1 %v14125_v7  ;;  %v14201_v5 = vld [vmem:[%s19134_s1 + $0x13cc] ss:$16 sps:$4 sm:$0xff]   ;;  %v14196_v7 = vld [vmem:[%s19134_s1 + $0x13c0] ss:$16 sps:$4 sm:$0xff]  }
 0x250   : > { %5600 = vmatprep.subr.bf16.mxu0 %v14130_v45  ;;  %5722 = vmatprep.subr.bf16.mxu1 %v14133_v6  ;;  %v4817_v6 = vrot.slane %v4815_v52, 4  ;;  %v14252_v52 = vld [vmem:[%s19134_s1 + $0x14e4] ss:$16 sps:$4 sm:$0xff]  }
 0x251   : > { %5585 = vmatprep.mubr.bf16.mxu0 %v4861_v38  ;;  %5707 = vmatprep.mubr.bf16.mxu1 %v4861_v38  ;;  %v14179_v38 = vld [vmem:[%s19134_s1 + $0x1368] ss:$16 sps:$4 sm:$0xff]  }
 0x253   : > { %5601 = vmatpush1.bf16.msra.mxu0 %v14128_v10  ;;  %5723 = vmatpush1.bf16.msra.mxu1 %v14131_v11  ;;  %v14207_v10 = vld [vmem:[%s19134_s1 + $0x13ec] ss:$16 sps:$4 sm:$0xff]   ;;  %v14202_v11 = vld [vmem:[%s19134_s1 + $0x13e0] ss:$16 sps:$4 sm:$0xff]  }
 0x254   : > { %5602 = vmatprep.subr.bf16.mxu0 %v14136_v12  ;;  %5724 = vmatprep.subr.bf16.mxu1 %v14139_v56 }
 0x256   : > { %5586 = vmatmul.mubr.bf16.gmra.mrb[8].mxu0 %v4852_v54  ;;  %5708 = vmatmul.mubr.bf16.gmra.mrb[8].mxu1 %v4852_v54  ;;  %v17251_v54 = vld [vmem:[%s15221_s17 + $0x48] sm:$0xff] }
 0x257   : > { %5603 = vmatpush1.bf16.msra.mxu0 %v14134_v14  ;;  %5725 = vmatpush1.bf16.msra.mxu1 %v14137_v15  ;;  %v11580_v58 = vcombine.high %v17251_v54, %v17238_v57  ;;  %v11579_v9 = vcombine.low %v17251_v54, %v17238_v57  ;;  %v4818_v14 = vor.u32 %v4817_v6, %v4814_v8  ;;  %v14256_v8 = vld [vmem:[%s19134_s1 + $0x1500] ss:$16 sps:$4 sm:$0xff]  }
 0x258   : > { %5604 = vmatprep.subr.bf16.mxu0 %v14142_v16  ;;  %5726 = vmatprep.subr.bf16.mxu1 %v14145_v17  ;;  %v4826_v15 = vor.u32 %v4825_v3, %v4822_v34  ;;  %v14262_v6 = vld [vmem:[%s19134_s1 + $0x1520] ss:$16 sps:$4 sm:$0xff]   ;;  %v14265_v34 = vld [vmem:[%s19134_s1 + $0x1528] ss:$16 sps:$4 sm:$0xff]   ;;  %v14270_v3 = vld [vmem:[%s19134_s1 + $0x1544] ss:$16 sps:$4 sm:$0xff]  }
 0x259   : > { %5626 = vmatprep.mubr.bf16.mxu0 %v4844_v0  ;;  %5748 = vmatprep.mubr.bf16.mxu1 %v4844_v0  ;;  %v4873_v49 = vshrl.u32 %v11580_v58, 16  ;;  %v4876_v45 = vshll.u32 %v11580_v58, 16  ;;  %v4864_v16 = vshrl.u32 %v11579_v9, 16  ;;  %v4867_v17 = vshll.u32 %v11579_v9, 16  ;;  %v14210_v0 = vld [vmem:[%s19134_s1 + $0x1404] ss:$16 sps:$4 sm:$0xff]  }
 0x25a   : > { %v14244_v58 = vld [vmem:[%s19134_s1 + $0x14c0] ss:$16 sps:$4 sm:$0xff]   ;;  %v14273_v9 = vld [vmem:[%s19134_s1 + $0x154c] ss:$16 sps:$4 sm:$0xff]  }
 0x25b   : > { %5605 = vmatpush1.bf16.msra.mxu0 %v14140_v18  ;;  %5727 = vmatpush1.bf16.msra.mxu1 %v14143_v31  ;;  %v4875_v12 = vrot.slane %v4873_v49, 3  ;;  %v4878_v56 = vrot.slane %v4876_v45, 4  ;;  %v14213_v18 = vld [vmem:[%s19134_s1 + $0x140c] ss:$16 sps:$4 sm:$0xff]   ;;  %v14208_v31 = vld [vmem:[%s19134_s1 + $0x1400] ss:$16 sps:$4 sm:$0xff]  }
 0x25c   : > { %5606 = vmatprep.subr.bf16.mxu0 %v14148_v32  ;;  %5728 = vmatprep.subr.bf16.mxu1 %v14151_v19  ;;  %v14211_v19 = vld [vmem:[%s19134_s1 + $0x1408] ss:$16 sps:$4 sm:$0xff]   ;;  %v14264_v45 = vld [vmem:[%s19134_s1 + $0x1524] ss:$16 sps:$4 sm:$0xff]  }
 0x25d   : > { %v4879_v32 = vor.u32 %v4878_v56, %v4875_v12  ;;  %v14259_v49 = vld [vmem:[%s19134_s1 + $0x1508] ss:$16 sps:$4 sm:$0xff]   ;;  %v14279_v12 = vld [vmem:[%s19134_s1 + $0x156c] ss:$16 sps:$4 sm:$0xff]   ;;  %v14274_v56 = vld [vmem:[%s19134_s1 + $0x1560] ss:$16 sps:$4 sm:$0xff]  }
 0x25f   : > { %5607 = vmatpush1.bf16.msra.mxu0 %v14146_v48  ;;  %5729 = vmatpush1.bf16.msra.mxu1 %v14149_v20  ;;  %v4827_v48 = vsel %vm4776_vm3, %v4818_v14, %v4826_v15  ;;  %v4866_v20 = vrot.slane %v4864_v16, 3  ;;  %v14283_v14 = vld [vmem:[%s19134_s1 + $0x1584] ss:$16 sps:$4 sm:$0xff]   ;;  %v14281_v16 = vld [vmem:[%s19134_s1 + $0x1580] ss:$16 sps:$4 sm:$0xff]  }
 0x260   : > { %5608 = vmatprep.subr.bf16.mxu0 %v14154_v21  ;;  %5730 = vmatprep.subr.bf16.mxu1 %v14157_v22  ;;  %v4869_v21 = vrot.slane %v4867_v17, 4  ;;  %v14216_v22 = vld [vmem:[%s19134_s1 + $0x1424] ss:$16 sps:$4 sm:$0xff]   ;;  %v14284_v17 = vld [vmem:[%s19134_s1 + $0x1588] ss:$16 sps:$4 sm:$0xff]  }
 0x263   : > { %5609 = vmatpush1.bf16.msra.mxu0 %v14152_v23  ;;  %5731 = vmatpush1.bf16.msra.mxu1 %v14155_v24  ;;  %v14219_v23 = vld [vmem:[%s19134_s1 + $0x142c] ss:$16 sps:$4 sm:$0xff]   ;;  %v4880_v24 = vsel %vm4776_vm3, %v17131_v13, %v4879_v32 }
 0x264   : > { %5610 = vmatprep.subr.bf16.mxu0 %v14160_v26  ;;  %5732 = vmatprep.subr.bf16.mxu1 %v14163_v1  ;;  %v14214_v26 = vld [vmem:[%s19134_s1 + $0x1420] ss:$16 sps:$4 sm:$0xff]   ;;  %v14217_v1 = vld [vmem:[%s19134_s1 + $0x1428] ss:$16 sps:$4 sm:$0xff]   ;;  %v14225_v13 = vld [vmem:[%s19134_s1 + $0x144c] ss:$16 sps:$4 sm:$0xff]  }
 0x267   : > { %5611 = vmatpush1.bf16.msra.mxu0 %v14158_v25  ;;  %5733 = vmatpush1.bf16.msra.mxu1 %v14161_v27  ;;  %v4870_v25 = vor.u32 %v4869_v21, %v4866_v20  ;;  %v14222_v27 = vld [vmem:[%s19134_s1 + $0x1444] ss:$16 sps:$4 sm:$0xff]   ;;  %v14294_v20 = vld [vmem:[%s19134_s1 + $0x15c0] ss:$16 sps:$4 sm:$0xff]   ;;  %v14297_v21 = vld [vmem:[%s19134_s1 + $0x15c8] ss:$16 sps:$4 sm:$0xff]  }
 0x268   : > { %5612 = vmatprep.subr.bf16.mxu0 %v14166_v28  ;;  %5734 = vmatprep.subr.bf16.mxu1 %v14169_v30  ;;  %v14220_v28 = vld [vmem:[%s19134_s1 + $0x1440] ss:$16 sps:$4 sm:$0xff]   ;;  %v14223_v30 = vld [vmem:[%s19134_s1 + $0x1448] ss:$16 sps:$4 sm:$0xff]  }
 0x26b   : > { %5613 = vmatpush1.bf16.msra.mxu0 %v14164_v62  ;;  %5735 = vmatpush1.bf16.msra.mxu1 %v14167_v33  ;;  %v4871_v62 = vsel %vm4776_vm3, %v4826_v15, %v4870_v25  ;;  %v14228_v33 = vld [vmem:[%s19134_s1 + $0x1464] ss:$16 sps:$4 sm:$0xff]   ;;  %v14286_v15 = vld [vmem:[%s19134_s1 + $0x158c] ss:$16 sps:$4 sm:$0xff]  }
 0x26c   : > { %5614 = vmatprep.subr.bf16.mxu0 %v14172_v35  ;;  %5736 = vmatprep.subr.bf16.mxu1 %v14175_v36  ;;  %v14231_v35 = vld [vmem:[%s19134_s1 + $0x146c] ss:$16 sps:$4 sm:$0xff]   ;;  %v14226_v36 = vld [vmem:[%s19134_s1 + $0x1460] ss:$16 sps:$4 sm:$0xff]  }
 0x26f   : > { %5615 = vmatpush1.bf16.msra.mxu0 %v14170_v37  ;;  %5737 = vmatpush1.bf16.msra.mxu1 %v14173_v40  ;;  %v14229_v37 = vld [vmem:[%s19134_s1 + $0x1468] ss:$16 sps:$4 sm:$0xff]   ;;  %v14234_v40 = vld [vmem:[%s19134_s1 + $0x1484] ss:$16 sps:$4 sm:$0xff]  }
 0x270   : > { %5616 = vmatprep.subr.bf16.mxu0 %v14178_v43  ;;  %5738 = vmatprep.subr.bf16.mxu1 %v14181_v44  ;;  %v14237_v43 = vld [vmem:[%s19134_s1 + $0x148c] ss:$16 sps:$4 sm:$0xff]   ;;  %v14232_v44 = vld [vmem:[%s19134_s1 + $0x1480] ss:$16 sps:$4 sm:$0xff]  }
 0x273   : > { %5617 = vmatpush1.bf16.msra.mxu0 %v14176_v46  ;;  %5739 = vmatpush1.bf16.msra.mxu1 %v14179_v38  ;;  %v14235_v46 = vld [vmem:[%s19134_s1 + $0x1488] ss:$16 sps:$4 sm:$0xff]   ;;  %v14240_v38 = vld [vmem:[%s19134_s1 + $0x14a4] ss:$16 sps:$4 sm:$0xff]  }
 0x274   : > { %5618 = vmatprep.subr.bf16.mxu0 %v14185_v47  ;;  %5740 = vmatprep.subr.bf16.mxu1 %v14188_v50  ;;  %v14243_v47 = vld [vmem:[%s19134_s1 + $0x14ac] ss:$16 sps:$4 sm:$0xff]   ;;  %v17358_v50 = vld [vmem:[%s15221_s17 + $0x10] sm:$0xff] }
 0x277   : > { %5619 = vmatpush1.bf16.msra.mxu0 %v14183_v39  ;;  %5741 = vmatpush1.bf16.msra.mxu1 %v14186_v55  ;;  %v17361_v39 = vld [vmem:[%s15221_s17 + $0x20] sm:$0xff] }
 0x278   : > { %5620 = vmatprep.subr.bf16.mxu0 %v14192_v59  ;;  %5742 = vmatprep.subr.bf16.mxu1 %v14195_v60  ;;  %v11838_v55 = vcombine.high %v17358_v50, %v17361_v39  ;;  %v14238_v59 = vld [vmem:[%s19134_s1 + $0x14a0] ss:$16 sps:$4 sm:$0xff]   ;;  %v14241_v60 = vld [vmem:[%s19134_s1 + $0x14a8] ss:$16 sps:$4 sm:$0xff]  }
 0x27b   : > { %5621 = vmatpush1.bf16.msra.mxu0 %v14190_v61  ;;  %5743 = vmatpush1.bf16.msra.mxu1 %v14193_v29  ;;  %v14246_v61 = vld [vmem:[%s19134_s1 + $0x14c4] ss:$16 sps:$4 sm:$0xff]   ;;  %v14247_v29 = vld [vmem:[%s19134_s1 + $0x14c8] ss:$16 sps:$4 sm:$0xff]  }
 0x27c   : > { %5622 = vmatprep.subr.bf16.mxu0 %v14198_v41  ;;  %5744 = vmatprep.subr.bf16.mxu1 %v14201_v5  ;;  %v14253_v41 = vld [vmem:[%s19134_s1 + $0x14e8] ss:$16 sps:$4 sm:$0xff]   ;;  %v14258_v5 = vld [vmem:[%s19134_s1 + $0x1504] ss:$16 sps:$4 sm:$0xff]  }
 0x27f   : > { %5623 = vmatpush1.bf16.msra.mxu0 %v14196_v7  ;;  %5745 = vmatpush1.bf16.msra.mxu1 %v14199_v51  ;;  %v14261_v7 = vld [vmem:[%s19134_s1 + $0x150c] ss:$16 sps:$4 sm:$0xff]  }
 0x280   : > { %5624 = vmatprep.subr.bf16.mxu0 %v14204_v42  ;;  %5746 = vmatprep.subr.bf16.mxu1 %v14207_v10  ;;  %v14267_v51 = vld [vmem:[%s19134_s1 + $0x152c] ss:$16 sps:$4 sm:$0xff]   ;;  %v14268_v42 = vld [vmem:[%s19134_s1 + $0x1540] ss:$16 sps:$4 sm:$0xff]   ;;  %v14271_v10 = vld [vmem:[%s19134_s1 + $0x1548] ss:$16 sps:$4 sm:$0xff]  }
 0x283   : > { %5625 = vmatpush1.bf16.msra.mxu0 %v14202_v11  ;;  %5747 = vmatpush1.bf16.msra.mxu1 %v14205_v4  ;;  %v14276_v11 = vld [vmem:[%s19134_s1 + $0x1564] ss:$16 sps:$4 sm:$0xff]   ;;  %v14277_v4 = vld [vmem:[%s19134_s1 + $0x1568] ss:$16 sps:$4 sm:$0xff]  }
 0x284   : > { %6590 = vmatprep.subr.bf16.mxu0 %v14210_v0  ;;  %6712 = vmatprep.subr.bf16.mxu1 %v14213_v18  ;;  %v14290_v0 = vld [vmem:[%s19134_s1 + $0x15a4] ss:$16 sps:$4 sm:$0xff]   ;;  %v14293_v18 = vld [vmem:[%s19134_s1 + $0x15ac] ss:$16 sps:$4 sm:$0xff]  }
 0x286   : > { %5627 = vmatmul.mubr.bf16.vlgmr.msra.gmra.mrb[0].mxu0 %v4827_v48  ;;  %5749 = vmatmul.mubr.bf16.vlgmr.msra.gmra.mrb[0].mxu1 %v4827_v48  ;;  %v14299_v48 = vld [vmem:[%s19134_s1 + $0x15cc] ss:$16 sps:$4 sm:$0xff]  }
 0x287   : > { %6591 = vmatpush1.bf16.msra.mxu0 %v14208_v31  ;;  %6713 = vmatpush1.bf16.msra.mxu1 %v14211_v19  ;;  %v14288_v31 = vld [vmem:[%s19134_s1 + $0x15a0] ss:$16 sps:$4 sm:$0xff]   ;;  %v14296_v19 = vld [vmem:[%s19134_s1 + $0x15c4] ss:$16 sps:$4 sm:$0xff]  }
 0x288   : > { %6592 = vmatprep.subr.bf16.mxu0 %v14216_v22  ;;  %6714 = vmatprep.subr.bf16.mxu1 %v14219_v23  ;;  %v14302_v22 = vld [vmem:[%s19134_s1 + $0x15e4] ss:$16 sps:$4 sm:$0xff]   ;;  %v14305_v23 = vld [vmem:[%s19134_s1 + $0x15ec] ss:$16 sps:$4 sm:$0xff]  }
 0x289   : > { %5636 = vmatprep.mubr.bf16.mxu0 %v4880_v24  ;;  %5758 = vmatprep.mubr.bf16.mxu1 %v4880_v24  ;;  %v14300_v24 = vld [vmem:[%s19134_s1 + $0x15e0] ss:$16 sps:$4 sm:$0xff]  }
 0x28b   : > { %6593 = vmatpush1.bf16.msra.mxu0 %v14214_v26  ;;  %6715 = vmatpush1.bf16.msra.mxu1 %v14217_v1  ;;  %v14303_v26 = vld [vmem:[%s19134_s1 + $0x15e8] ss:$16 sps:$4 sm:$0xff]   ;;  %v14309_v1 = vld [vmem:[%s19134_s1 + $0x1604] ss:$16 sps:$4 sm:$0xff]  }
 0x28c   : > { %6594 = vmatprep.subr.bf16.mxu0 %v14222_v27  ;;  %6716 = vmatprep.subr.bf16.mxu1 %v14225_v13  ;;  %v11837_v27 = vcombine.low %v17358_v50, %v17361_v39  ;;  %v14307_v13 = vld [vmem:[%s19134_s1 + $0x1600] ss:$16 sps:$4 sm:$0xff]   ;;  %v14328_v50 = vld [vmem:[%s19134_s1 + $0x1664] ss:$16 sps:$4 sm:$0xff]  }
 0x28e   : > { %5637 = vmatmul.mubr.bf16.gmra.mrb[4].mxu0 %v4871_v62  ;;  %5759 = vmatmul.mubr.bf16.gmra.mrb[4].mxu1 %v4871_v62  ;;  %v14319_v62 = vld [vmem:[%s19134_s1 + $0x162c] ss:$16 sps:$4 sm:$0xff]  }
 0x28f   : > { %6595 = vmatpush1.bf16.msra.mxu0 %v14220_v28  ;;  %6717 = vmatpush1.bf16.msra.mxu1 %v14223_v30  ;;  %v14310_v28 = vld [vmem:[%s19134_s1 + $0x1608] ss:$16 sps:$4 sm:$0xff]   ;;  %v14316_v30 = vld [vmem:[%s19134_s1 + $0x1624] ss:$16 sps:$4 sm:$0xff]  }
 0x290   : > { %6596 = vmatprep.subr.bf16.mxu0 %v14228_v33  ;;  %6718 = vmatprep.subr.bf16.mxu1 %v14231_v35  ;;  %v15026_v33 = vld [vmem:[%s15221_s17 + $0x30] sm:$0xff]  ;;  %v15027_v35 = vld [vmem:[%s15221_s17 + $0x40] sm:$0xff] }
 0x291   : > { %5646 = vmatprep.mubr.bf16.mxu0 %v4879_v32  ;;  %5768 = vmatprep.mubr.bf16.mxu1 %v4879_v32  ;;  %v14291_v32 = vld [vmem:[%s19134_s1 + $0x15a8] ss:$16 sps:$4 sm:$0xff]  }
 0x293   : > { %6597 = vmatpush1.bf16.msra.mxu0 %v14226_v36  ;;  %6719 = vmatpush1.bf16.msra.mxu1 %v14229_v37  ;;  %v17513_v36 = vcombine.high %v15026_v33, %v15027_v35  ;;  %v14314_v37 = vld [vmem:[%s19134_s1 + $0x1620] ss:$16 sps:$4 sm:$0xff]  }
 0x294   : > { %6598 = vmatprep.subr.bf16.mxu0 %v14234_v40  ;;  %6720 = vmatprep.subr.bf16.mxu1 %v14237_v43  ;;  %v14317_v40 = vld [vmem:[%s19134_s1 + $0x1628] ss:$16 sps:$4 sm:$0xff]   ;;  %v14322_v43 = vld [vmem:[%s19134_s1 + $0x1644] ss:$16 sps:$4 sm:$0xff]  }
 0x296   : > { %5647 = vmatmul.mubr.bf16.gmra.mrb[8].mxu0 %v4870_v25  ;;  %5769 = vmatmul.mubr.bf16.gmra.mrb[8].mxu1 %v4870_v25  ;;  %v14312_v25 = vld [vmem:[%s19134_s1 + $0x160c] ss:$16 sps:$4 sm:$0xff]  }
 0x297   : > { %6599 = vmatpush1.bf16.msra.mxu0 %v14232_v44  ;;  %6721 = vmatpush1.bf16.msra.mxu1 %v14235_v46  ;;  %v14325_v44 = vld [vmem:[%s19134_s1 + $0x164c] ss:$16 sps:$4 sm:$0xff]   ;;  %v17529_v46 = vcombine.low %v15026_v33, %v15027_v35  ;;  %v14395_v35 = vld [vmem:[%s19134_s1 + $0x17c0] ss:$16 sps:$4 sm:$0xff]  }
 0x298   : > { %6600 = vmatprep.subr.bf16.mxu0 %v14240_v38  ;;  %6722 = vmatprep.subr.bf16.mxu1 %v14243_v47  ;;  %v14320_v38 = vld [vmem:[%s19134_s1 + $0x1640] ss:$16 sps:$4 sm:$0xff]   ;;  %v14323_v47 = vld [vmem:[%s19134_s1 + $0x1648] ss:$16 sps:$4 sm:$0xff]   ;;  %v14400_v33 = vld [vmem:[%s19134_s1 + $0x17cc] ss:$16 sps:$4 sm:$0xff]  }
 0x299   : > { %6622 = vmatprep.mubr.bf16.mxu0 %v11838_v55  ;;  %6744 = vmatprep.mubr.bf16.mxu1 %v11838_v55  ;;  %v14331_v55 = vld [vmem:[%s19134_s1 + $0x166c] ss:$16 sps:$4 sm:$0xff]  }
 0x29b   : > { %6601 = vmatpush1.bf16.msra.mxu0 %v14238_v59  ;;  %6723 = vmatpush1.bf16.msra.mxu1 %v14241_v60  ;;  %v15028_v59 = vld [vmem:[%s15221_s17 + $0x50] sm:$0x33] }
 0x29c   : > { %6602 = vmatprep.subr.bf16.mxu0 %v14246_v61  ;;  %6724 = vmatprep.subr.bf16.mxu1 %v14249_v53  ;;  %v11846_v60 = vcombine.high %v15028_v59, %v15028_v59  ;;  %v14326_v61 = vld [vmem:[%s19134_s1 + $0x1660] ss:$16 sps:$4 sm:$0xff]   ;;  %v14329_v53 = vld [vmem:[%s19134_s1 + $0x1668] ss:$16 sps:$4 sm:$0xff]  }
 0x29f   : > { %6603 = vmatpush1.bf16.msra.mxu0 %v14244_v58  ;;  %6725 = vmatpush1.bf16.msra.mxu1 %v14247_v29  ;;  %v14334_v58 = vld [vmem:[%s19134_s1 + $0x1684] ss:$16 sps:$4 sm:$0xff]   ;;  %v14337_v29 = vld [vmem:[%s19134_s1 + $0x168c] ss:$16 sps:$4 sm:$0xff]  }
 0x2a0   : > { %6604 = vmatprep.subr.bf16.mxu0 %v14252_v52  ;;  %6726 = vmatprep.subr.bf16.mxu1 %v14255_v63  ;;  %v11845_v52 = vcombine.low %v15028_v59, %v15028_v59  ;;  %v14332_v63 = vld [vmem:[%s19134_s1 + $0x1680] ss:$16 sps:$4 sm:$0xff]  }
 0x2a1   : > { %v14409_v59 = vld [vmem:[%s19134_s1 + $0x1800] ss:$16 sps:$4 sm:$0xff]  }
 0x2a3   : > { %6605 = vmatpush1.bf16.msra.mxu0 %v14250_v2  ;;  %6727 = vmatpush1.bf16.msra.mxu1 %v14253_v41  ;;  %v14335_v2 = vld [vmem:[%s19134_s1 + $0x1688] ss:$16 sps:$4 sm:$0xff]   ;;  %v14340_v41 = vld [vmem:[%s19134_s1 + $0x16a4] ss:$16 sps:$4 sm:$0xff]  }
 0x2a4   : > { %6606 = vmatprep.subr.bf16.mxu0 %v14258_v5  ;;  %6728 = vmatprep.subr.bf16.mxu1 %v14261_v7  ;;  %v14343_v5 = vld [vmem:[%s19134_s1 + $0x16ac] ss:$16 sps:$4 sm:$0xff]  }
 0x2a5   : > { %v17571_v7 = vld [vmem:[%s15221_s17 + $0x18] sm:$0xff] }
 0x2a7   : > { %6607 = vmatpush1.bf16.msra.mxu0 %v14256_v8  ;;  %6729 = vmatpush1.bf16.msra.mxu1 %v14259_v49  ;;  %v17574_v8 = vld [vmem:[%s15221_s17 + $0x28] sm:$0xff] }
 0x2a8   : > { %6608 = vmatprep.subr.bf16.mxu0 %v14264_v45  ;;  %6730 = vmatprep.subr.bf16.mxu1 %v14267_v51  ;;  %v11840_v49 = vcombine.high %v17571_v7, %v17574_v8  ;;  %v14338_v45 = vld [vmem:[%s19134_s1 + $0x16a0] ss:$16 sps:$4 sm:$0xff]   ;;  %v14341_v51 = vld [vmem:[%s19134_s1 + $0x16a8] ss:$16 sps:$4 sm:$0xff]  }
 0x2ab   : > { %6609 = vmatpush1.bf16.msra.mxu0 %v14262_v6  ;;  %6731 = vmatpush1.bf16.msra.mxu1 %v14265_v34  ;;  %v14346_v6 = vld [vmem:[%s19134_s1 + $0x16c4] ss:$16 sps:$4 sm:$0xff]   ;;  %v14349_v34 = vld [vmem:[%s19134_s1 + $0x16cc] ss:$16 sps:$4 sm:$0xff]  }
 0x2ac   : > { %6610 = vmatprep.subr.bf16.mxu0 %v14270_v3  ;;  %6732 = vmatprep.subr.bf16.mxu1 %v14273_v9  ;;  %v14344_v3 = vld [vmem:[%s19134_s1 + $0x16c0] ss:$16 sps:$4 sm:$0xff]   ;;  %v14347_v9 = vld [vmem:[%s19134_s1 + $0x16c8] ss:$16 sps:$4 sm:$0xff]  }
 0x2af   : > { %6611 = vmatpush1.bf16.msra.mxu0 %v14268_v42  ;;  %6733 = vmatpush1.bf16.msra.mxu1 %v14271_v10  ;;  %v14352_v42 = vld [vmem:[%s19134_s1 + $0x16e4] ss:$16 sps:$4 sm:$0xff]   ;;  %v14355_v10 = vld [vmem:[%s19134_s1 + $0x16ec] ss:$16 sps:$4 sm:$0xff]  }
 0x2b0   : > { %6612 = vmatprep.subr.bf16.mxu0 %v14276_v11  ;;  %6734 = vmatprep.subr.bf16.mxu1 %v14279_v12  ;;  %v14350_v11 = vld [vmem:[%s19134_s1 + $0x16e0] ss:$16 sps:$4 sm:$0xff]   ;;  %v14353_v12 = vld [vmem:[%s19134_s1 + $0x16e8] ss:$16 sps:$4 sm:$0xff]  }
 0x2b3   : > { %6613 = vmatpush1.bf16.msra.mxu0 %v14274_v56  ;;  %6735 = vmatpush1.bf16.msra.mxu1 %v14277_v4  ;;  %v14358_v56 = vld [vmem:[%s19134_s1 + $0x1704] ss:$16 sps:$4 sm:$0xff]   ;;  %v14361_v4 = vld [vmem:[%s19134_s1 + $0x170c] ss:$16 sps:$4 sm:$0xff]  }
 0x2b4   : > { %6614 = vmatprep.subr.bf16.mxu0 %v14283_v14  ;;  %6736 = vmatprep.subr.bf16.mxu1 %v14286_v15  ;;  %v14356_v14 = vld [vmem:[%s19134_s1 + $0x1700] ss:$16 sps:$4 sm:$0xff]   ;;  %v14359_v15 = vld [vmem:[%s19134_s1 + $0x1708] ss:$16 sps:$4 sm:$0xff]  }
 0x2b7   : > { %6615 = vmatpush1.bf16.msra.mxu0 %v14281_v16  ;;  %6737 = vmatpush1.bf16.msra.mxu1 %v14284_v17  ;;  %v14364_v16 = vld [vmem:[%s19134_s1 + $0x1724] ss:$16 sps:$4 sm:$0xff]   ;;  %v14367_v17 = vld [vmem:[%s19134_s1 + $0x172c] ss:$16 sps:$4 sm:$0xff]  }
 0x2b8   : > { %6616 = vmatprep.subr.bf16.mxu0 %v14290_v0  ;;  %6738 = vmatprep.subr.bf16.mxu1 %v14293_v18  ;;  %v14362_v0 = vld [vmem:[%s19134_s1 + $0x1720] ss:$16 sps:$4 sm:$0xff]   ;;  %v14365_v18 = vld [vmem:[%s19134_s1 + $0x1728] ss:$16 sps:$4 sm:$0xff]  }
 0x2bb   : > { %6617 = vmatpush1.bf16.msra.mxu0 %v14288_v31  ;;  %6739 = vmatpush1.bf16.msra.mxu1 %v14291_v32  ;;  %v14370_v31 = vld [vmem:[%s19134_s1 + $0x1744] ss:$16 sps:$4 sm:$0xff]   ;;  %v14373_v32 = vld [vmem:[%s19134_s1 + $0x174c] ss:$16 sps:$4 sm:$0xff]  }
 0x2bc   : > { %6618 = vmatprep.subr.bf16.mxu0 %v14296_v19  ;;  %6740 = vmatprep.subr.bf16.mxu1 %v14299_v48  ;;  %v14368_v19 = vld [vmem:[%s19134_s1 + $0x1740] ss:$16 sps:$4 sm:$0xff]   ;;  %v14371_v48 = vld [vmem:[%s19134_s1 + $0x1748] ss:$16 sps:$4 sm:$0xff]  }
 0x2bf   : > { %6619 = vmatpush1.bf16.msra.mxu0 %v14294_v20  ;;  %6741 = vmatpush1.bf16.msra.mxu1 %v14297_v21  ;;  %v14376_v20 = vld [vmem:[%s19134_s1 + $0x1764] ss:$16 sps:$4 sm:$0xff]   ;;  %v14379_v21 = vld [vmem:[%s19134_s1 + $0x176c] ss:$16 sps:$4 sm:$0xff]  }
 0x2c0   : > { %6620 = vmatprep.subr.bf16.mxu0 %v14302_v22  ;;  %6742 = vmatprep.subr.bf16.mxu1 %v14305_v23  ;;  %v14374_v22 = vld [vmem:[%s19134_s1 + $0x1760] ss:$16 sps:$4 sm:$0xff]   ;;  %v14377_v23 = vld [vmem:[%s19134_s1 + $0x1768] ss:$16 sps:$4 sm:$0xff]  }
 0x2c3   : > { %6621 = vmatpush1.bf16.msra.mxu0 %v14300_v24  ;;  %6743 = vmatpush1.bf16.msra.mxu1 %v14303_v26  ;;  %v14383_v24 = vld [vmem:[%s19134_s1 + $0x1784] ss:$16 sps:$4 sm:$0xff]   ;;  %v14386_v26 = vld [vmem:[%s19134_s1 + $0x178c] ss:$16 sps:$4 sm:$0xff]  }
 0x2c4   : > { %6651 = vmatprep.subr.bf16.mxu0 %v14309_v1  ;;  %6773 = vmatprep.subr.bf16.mxu1 %v14312_v25  ;;  %v14381_v1 = vld [vmem:[%s19134_s1 + $0x1780] ss:$16 sps:$4 sm:$0xff]   ;;  %v14384_v25 = vld [vmem:[%s19134_s1 + $0x1788] ss:$16 sps:$4 sm:$0xff]  }
 0x2c6   : > { %6623 = vmatmul.mubr.bf16.vlgmr.msra.gmra.mrb[0].mxu0 %v11837_v27  ;;  %6745 = vmatmul.mubr.bf16.vlgmr.msra.gmra.mrb[0].mxu1 %v11837_v27  ;;  %v14390_v27 = vld [vmem:[%s19134_s1 + $0x17a4] ss:$16 sps:$4 sm:$0xff]  }
 0x2c7   : > { %6652 = vmatpush1.bf16.msra.mxu0 %v14307_v13  ;;  %6774 = vmatpush1.bf16.msra.mxu1 %v14310_v28  ;;  %v14393_v13 = vld [vmem:[%s19134_s1 + $0x17ac] ss:$16 sps:$4 sm:$0xff]   ;;  %v14388_v28 = vld [vmem:[%s19134_s1 + $0x17a0] ss:$16 sps:$4 sm:$0xff]  }
 0x2c8   : > { %6653 = vmatprep.subr.bf16.mxu0 %v14316_v30  ;;  %6775 = vmatprep.subr.bf16.mxu1 %v14319_v62  ;;  %v14391_v30 = vld [vmem:[%s19134_s1 + $0x17a8] ss:$16 sps:$4 sm:$0xff]   ;;  %v14397_v62 = vld [vmem:[%s19134_s1 + $0x17c4] ss:$16 sps:$4 sm:$0xff]  }
 0x2c9   : > { %6632 = vmatprep.mubr.bf16.mxu0 %v17513_v36  ;;  %6754 = vmatprep.mubr.bf16.mxu1 %v17513_v36 }
 0x2cb   : > { %6654 = vmatpush1.bf16.msra.mxu0 %v14314_v37  ;;  %6776 = vmatpush1.bf16.msra.mxu1 %v14317_v40  ;;  %v14398_v37 = vld [vmem:[%s19134_s1 + $0x17c8] ss:$16 sps:$4 sm:$0xff]   ;;  %v14404_v40 = vld [vmem:[%s19134_s1 + $0x17e4] ss:$16 sps:$4 sm:$0xff]  }
 0x2cc   : > { %6655 = vmatprep.subr.bf16.mxu0 %v14322_v43  ;;  %6777 = vmatprep.subr.bf16.mxu1 %v14325_v44  ;;  %v14407_v43 = vld [vmem:[%s19134_s1 + $0x17ec] ss:$16 sps:$4 sm:$0xff]   ;;  %v14402_v44 = vld [vmem:[%s19134_s1 + $0x17e0] ss:$16 sps:$4 sm:$0xff]  }
 0x2ce   : > { %6633 = vmatmul.mubr.bf16.gmra.mrb[4].mxu0 %v17529_v46  ;;  %6755 = vmatmul.mubr.bf16.gmra.mrb[4].mxu1 %v17529_v46 }
 0x2cf   : > { %6656 = vmatpush1.bf16.msra.mxu0 %v14320_v38  ;;  %6778 = vmatpush1.bf16.msra.mxu1 %v14323_v47  ;;  %v14405_v38 = vld [vmem:[%s19134_s1 + $0x17e8] ss:$16 sps:$4 sm:$0xff]   ;;  %v14411_v47 = vld [vmem:[%s19134_s1 + $0x1804] ss:$16 sps:$4 sm:$0xff]  }
 0x2d0   : > { %6657 = vmatprep.subr.bf16.mxu0 %v14328_v50  ;;  %6779 = vmatprep.subr.bf16.mxu1 %v14331_v55  ;;  %v14414_v50 = vld [vmem:[%s19134_s1 + $0x180c] ss:$16 sps:$4 sm:$0xff]   ;;  %v11839_v55 = vcombine.low %v17571_v7, %v17574_v8  ;;  %v14422_v7 = vld [vmem:[%s19134_s1 + $0x1840] ss:$16 sps:$4 sm:$0xff]  }
 0x2d1   : > { %6642 = vmatprep.mubr.bf16.mxu0 %v11846_v60  ;;  %6764 = vmatprep.mubr.bf16.mxu1 %v11846_v60  ;;  %v14412_v60 = vld [vmem:[%s19134_s1 + $0x1808] ss:$16 sps:$4 sm:$0xff]  }
 0x2d3   : > { %6658 = vmatpush1.bf16.msra.mxu0 %v14326_v61  ;;  %6780 = vmatpush1.bf16.msra.mxu1 %v14329_v53  ;;  %v14418_v61 = vld [vmem:[%s19134_s1 + $0x1824] ss:$16 sps:$4 sm:$0xff]   ;;  %v14421_v53 = vld [vmem:[%s19134_s1 + $0x182c] ss:$16 sps:$4 sm:$0xff]  }
 0x2d4   : > { %6659 = vmatprep.subr.bf16.mxu0 %v14334_v58  ;;  %6781 = vmatprep.subr.bf16.mxu1 %v14337_v29  ;;  %v15031_v58 = vld [vmem:[%s15221_s17 + $0x38] sm:$0xff] }
 0x2d5   : > { %v17726_v29 = vcombine.high %v15031_v58, %v17251_v54 }
 0x2d6   : > { %6643 = vmatmul.mubr.bf16.gmra.mrb[8].mxu0 %v11845_v52  ;;  %6765 = vmatmul.mubr.bf16.gmra.mrb[8].mxu1 %v11845_v52  ;;  %v14416_v52 = vld [vmem:[%s19134_s1 + $0x1820] ss:$16 sps:$4 sm:$0xff]  }
 0x2d7   : > { %6660 = vmatpush1.bf16.msra.mxu0 %v14332_v63  ;;  %6782 = vmatpush1.bf16.msra.mxu1 %v14335_v2  ;;  %v14419_v63 = vld [vmem:[%s19134_s1 + $0x1828] ss:$16 sps:$4 sm:$0xff]   ;;  %v14424_v2 = vld [vmem:[%s19134_s1 + $0x1844] ss:$16 sps:$4 sm:$0xff]  }
 0x2d8   : > { %6661 = vmatprep.subr.bf16.mxu0 %v14340_v41  ;;  %6783 = vmatprep.subr.bf16.mxu1 %v14343_v5  ;;  %v14427_v41 = vld [vmem:[%s19134_s1 + $0x184c] ss:$16 sps:$4 sm:$0xff]   ;;  %v17743_v5 = vcombine.low %v15031_v58, %v17251_v54  ;;  %v14499_v58 = vld [vmem:[%s19134_s1 + $0x19c4] ss:$16 sps:$4 sm:$0xff]  }
 0x2d9   : > { %6683 = vmatprep.mubr.bf16.mxu0 %v11840_v49  ;;  %6805 = vmatprep.mubr.bf16.mxu1 %v11840_v49  ;;  %v14425_v49 = vld [vmem:[%s19134_s1 + $0x1848] ss:$16 sps:$4 sm:$0xff]   ;;  %v14433_v54 = vld [vmem:[%s19134_s1 + $0x186c] ss:$16 sps:$4 sm:$0xff]  }
 0x2db   : > { %6662 = vmatpush1.bf16.msra.mxu0 %v14338_v45  ;;  %6784 = vmatpush1.bf16.msra.mxu1 %v14341_v51  ;;  %v17752_v45 = vld [vmem:[%s15221_s17 + $0x10] sm:$0xcc] }
 0x2dc   : > { %6663 = vmatprep.subr.bf16.mxu0 %v14346_v6  ;;  %6785 = vmatprep.subr.bf16.mxu1 %v14349_v34  ;;  %v14430_v51 = vld [vmem:[%s19134_s1 + $0x1864] ss:$16 sps:$4 sm:$0xff]   ;;  %v11848_v6 = vcombine.high %v17238_v57, %v17238_v57  ;;  %v12106_v34 = vcombine.high %v17752_v45, %v17361_v39 }
 0x2df   : > { %6664 = vmatpush1.bf16.msra.mxu0 %v14344_v3  ;;  %6786 = vmatpush1.bf16.msra.mxu1 %v14347_v9  ;;  %v14428_v3 = vld [vmem:[%s19134_s1 + $0x1860] ss:$16 sps:$4 sm:$0xff]   ;;  %v14431_v9 = vld [vmem:[%s19134_s1 + $0x1868] ss:$16 sps:$4 sm:$0xff]  }
 0x2e0   : > { %6665 = vmatprep.subr.bf16.mxu0 %v14352_v42  ;;  %6787 = vmatprep.subr.bf16.mxu1 %v14355_v10  ;;  %v14436_v42 = vld [vmem:[%s19134_s1 + $0x1884] ss:$16 sps:$4 sm:$0xff]   ;;  %v14439_v10 = vld [vmem:[%s19134_s1 + $0x188c] ss:$16 sps:$4 sm:$0xff]  }
 0x2e3   : > { %6666 = vmatpush1.bf16.msra.mxu0 %v14350_v11  ;;  %6788 = vmatpush1.bf16.msra.mxu1 %v14353_v12  ;;  %v11847_v11 = vcombine.low %v17238_v57, %v17238_v57  ;;  %v7011_v12 = vrot.slane %v12106_v34, 2  ;;  %v14442_v57 = vld [vmem:[%s19134_s1 + $0x18a4] ss:$16 sps:$4 sm:$0xff]  }
 0x2e4   : > { %6667 = vmatprep.subr.bf16.mxu0 %v14358_v56  ;;  %6789 = vmatprep.subr.bf16.mxu1 %v14361_v4  ;;  %v7012_v56 = vrot.slane %v17513_v36, 2  ;;  %v14434_v4 = vld [vmem:[%s19134_s1 + $0x1880] ss:$16 sps:$4 sm:$0xff]   ;;  %v14526_v36 = vld [vmem:[%s19134_s1 + $0x1a44] ss:$16 sps:$4 sm:$0xff]  }
 0x2e7   : > { %6668 = vmatpush1.bf16.msra.mxu0 %v14356_v14  ;;  %6790 = vmatpush1.bf16.msra.mxu1 %v14359_v15  ;;  %v14437_v14 = vld [vmem:[%s19134_s1 + $0x1888] ss:$16 sps:$4 sm:$0xff]   ;;  %v14445_v15 = vld [vmem:[%s19134_s1 + $0x18ac] ss:$16 sps:$4 sm:$0xff]  }
 0x2e8   : > { %6669 = vmatprep.subr.bf16.mxu0 %v14364_v16  ;;  %6791 = vmatprep.subr.bf16.mxu1 %v14367_v17  ;;  %v7013_v16 = vsel %vm7007_vm4, %v7011_v12, %v7012_v56  ;;  %v14440_v17 = vld [vmem:[%s19134_s1 + $0x18a0] ss:$16 sps:$4 sm:$0xff]  }
 0x2eb   : > { %6670 = vmatpush1.bf16.msra.mxu0 %v14362_v0  ;;  %6792 = vmatpush1.bf16.msra.mxu1 %v14365_v18  ;;  %v14443_v0 = vld [vmem:[%s19134_s1 + $0x18a8] ss:$16 sps:$4 sm:$0xff]   ;;  %v14448_v18 = vld [vmem:[%s19134_s1 + $0x18c4] ss:$16 sps:$4 sm:$0xff]  }
 0x2ec   : > { %6671 = vmatprep.subr.bf16.mxu0 %v14370_v31  ;;  %6793 = vmatprep.subr.bf16.mxu1 %v14373_v32  ;;  %v14451_v31 = vld [vmem:[%s19134_s1 + $0x18cc] ss:$16 sps:$4 sm:$0xff]   ;;  %v14446_v32 = vld [vmem:[%s19134_s1 + $0x18c0] ss:$16 sps:$4 sm:$0xff]  }
 0x2ef   : > { %6672 = vmatpush1.bf16.msra.mxu0 %v14368_v19  ;;  %6794 = vmatpush1.bf16.msra.mxu1 %v14371_v48  ;;  %v14449_v19 = vld [vmem:[%s19134_s1 + $0x18c8] ss:$16 sps:$4 sm:$0xff]   ;;  %v14454_v48 = vld [vmem:[%s19134_s1 + $0x18e4] ss:$16 sps:$4 sm:$0xff]  }
 0x2f0   : > { %6673 = vmatprep.subr.bf16.mxu0 %v14376_v20  ;;  %6795 = vmatprep.subr.bf16.mxu1 %v14379_v21  ;;  %v14457_v20 = vld [vmem:[%s19134_s1 + $0x18ec] ss:$16 sps:$4 sm:$0xff]   ;;  %v14452_v21 = vld [vmem:[%s19134_s1 + $0x18e0] ss:$16 sps:$4 sm:$0xff]  }
 0x2f3   : > { %6674 = vmatpush1.bf16.msra.mxu0 %v14374_v22  ;;  %6796 = vmatpush1.bf16.msra.mxu1 %v14377_v23  ;;  %v14455_v22 = vld [vmem:[%s19134_s1 + $0x18e8] ss:$16 sps:$4 sm:$0xff]   ;;  %v14460_v23 = vld [vmem:[%s19134_s1 + $0x1904] ss:$16 sps:$4 sm:$0xff]  }
 0x2f4   : > { %6675 = vmatprep.subr.bf16.mxu0 %v14383_v24  ;;  %6797 = vmatprep.subr.bf16.mxu1 %v14386_v26  ;;  %v14463_v24 = vld [vmem:[%s19134_s1 + $0x190c] ss:$16 sps:$4 sm:$0xff]   ;;  %v14458_v26 = vld [vmem:[%s19134_s1 + $0x1900] ss:$16 sps:$4 sm:$0xff]  }
 0x2f7   : > { %6676 = vmatpush1.bf16.msra.mxu0 %v14381_v1  ;;  %6798 = vmatpush1.bf16.msra.mxu1 %v14384_v25  ;;  %v14461_v1 = vld [vmem:[%s19134_s1 + $0x1908] ss:$16 sps:$4 sm:$0xff]   ;;  %v14466_v25 = vld [vmem:[%s19134_s1 + $0x1924] ss:$16 sps:$4 sm:$0xff]  }
 0x2f8   : > { %6677 = vmatprep.subr.bf16.mxu0 %v14390_v27  ;;  %6799 = vmatprep.subr.bf16.mxu1 %v14393_v13  ;;  %v14469_v27 = vld [vmem:[%s19134_s1 + $0x192c] ss:$16 sps:$4 sm:$0xff]   ;;  %v14464_v13 = vld [vmem:[%s19134_s1 + $0x1920] ss:$16 sps:$4 sm:$0xff]  }
 0x2fb   : > { %6678 = vmatpush1.bf16.msra.mxu0 %v14388_v28  ;;  %6800 = vmatpush1.bf16.msra.mxu1 %v14391_v30  ;;  %v14467_v28 = vld [vmem:[%s19134_s1 + $0x1928] ss:$16 sps:$4 sm:$0xff]   ;;  %v14472_v30 = vld [vmem:[%s19134_s1 + $0x1944] ss:$16 sps:$4 sm:$0xff]  }
 0x2fc   : > { %6679 = vmatprep.subr.bf16.mxu0 %v14397_v62  ;;  %6801 = vmatprep.subr.bf16.mxu1 %v14400_v33  ;;  %v14475_v62 = vld [vmem:[%s19134_s1 + $0x194c] ss:$16 sps:$4 sm:$0xff]   ;;  %v14470_v33 = vld [vmem:[%s19134_s1 + $0x1940] ss:$16 sps:$4 sm:$0xff]  }
 0x2ff   : > { %6680 = vmatpush1.bf16.msra.mxu0 %v14395_v35  ;;  %6802 = vmatpush1.bf16.msra.mxu1 %v14398_v37  ;;  %v14473_v35 = vld [vmem:[%s19134_s1 + $0x1948] ss:$16 sps:$4 sm:$0xff]   ;;  %v14478_v37 = vld [vmem:[%s19134_s1 + $0x1964] ss:$16 sps:$4 sm:$0xff]  }
 0x300   : > { %6681 = vmatprep.subr.bf16.mxu0 %v14404_v40  ;;  %6803 = vmatprep.subr.bf16.mxu1 %v14407_v43  ;;  %v14481_v40 = vld [vmem:[%s19134_s1 + $0x196c] ss:$16 sps:$4 sm:$0xff]   ;;  %v14476_v43 = vld [vmem:[%s19134_s1 + $0x1960] ss:$16 sps:$4 sm:$0xff]  }
 0x303   : > { %6682 = vmatpush1.bf16.msra.mxu0 %v14402_v44  ;;  %6804 = vmatpush1.bf16.msra.mxu1 %v14405_v38  ;;  %v14479_v44 = vld [vmem:[%s19134_s1 + $0x1968] ss:$16 sps:$4 sm:$0xff]   ;;  %v14485_v38 = vld [vmem:[%s19134_s1 + $0x1984] ss:$16 sps:$4 sm:$0xff]  }
 0x304   : > { %7680 = vmatprep.subr.bf16.mxu0 %v14411_v47  ;;  %7802 = vmatprep.subr.bf16.mxu1 %v14414_v50  ;;  %v14488_v47 = vld [vmem:[%s19134_s1 + $0x198c] ss:$16 sps:$4 sm:$0xff]   ;;  %v14483_v50 = vld [vmem:[%s19134_s1 + $0x1980] ss:$16 sps:$4 sm:$0xff]  }
 0x306   : > { %6684 = vmatmul.mubr.bf16.vlgmr.msra.gmra.mrb[0].mxu0 %v11839_v55  ;;  %6806 = vmatmul.mubr.bf16.vlgmr.msra.gmra.mrb[0].mxu1 %v11839_v55  ;;  %v14486_v55 = vld [vmem:[%s19134_s1 + $0x1988] ss:$16 sps:$4 sm:$0xff]  }
 0x307   : > { %7681 = vmatpush1.bf16.msra.mxu0 %v14409_v59  ;;  %7803 = vmatpush1.bf16.msra.mxu1 %v14412_v60  ;;  %v14492_v59 = vld [vmem:[%s19134_s1 + $0x19a4] ss:$16 sps:$4 sm:$0xff]   ;;  %v14495_v60 = vld [vmem:[%s19134_s1 + $0x19ac] ss:$16 sps:$4 sm:$0xff]  }
 0x308   : > { %7682 = vmatprep.subr.bf16.mxu0 %v14418_v61  ;;  %7804 = vmatprep.subr.bf16.mxu1 %v14421_v53  ;;  %v14490_v61 = vld [vmem:[%s19134_s1 + $0x19a0] ss:$16 sps:$4 sm:$0xff]   ;;  %v14493_v53 = vld [vmem:[%s19134_s1 + $0x19a8] ss:$16 sps:$4 sm:$0xff]  }
 0x309   : > { %6693 = vmatprep.mubr.bf16.mxu0 %v17726_v29  ;;  %6815 = vmatprep.mubr.bf16.mxu1 %v17726_v29 }
 0x30b   : > { %7683 = vmatpush1.bf16.msra.mxu0 %v14416_v52  ;;  %7805 = vmatpush1.bf16.msra.mxu1 %v14419_v63  ;;  %v14502_v52 = vld [vmem:[%s19134_s1 + $0x19cc] ss:$16 sps:$4 sm:$0xff]   ;;  %v14497_v63 = vld [vmem:[%s19134_s1 + $0x19c0] ss:$16 sps:$4 sm:$0xff]  }
 0x30c   : > { %7684 = vmatprep.subr.bf16.mxu0 %v14424_v2  ;;  %7806 = vmatprep.subr.bf16.mxu1 %v14427_v41  ;;  %v14500_v2 = vld [vmem:[%s19134_s1 + $0x19c8] ss:$16 sps:$4 sm:$0xff]   ;;  %v12105_v41 = vcombine.low %v17752_v45, %v17361_v39  ;;  %v14504_v39 = vld [vmem:[%s19134_s1 + $0x19e0] ss:$16 sps:$4 sm:$0xff]  }
 0x30d   : > { %v14507_v45 = vld [vmem:[%s19134_s1 + $0x19e8] ss:$16 sps:$4 sm:$0xff]  }
 0x30e   : > { %6694 = vmatmul.mubr.bf16.gmra.mrb[4].mxu0 %v17743_v5  ;;  %6816 = vmatmul.mubr.bf16.gmra.mrb[4].mxu1 %v17743_v5  ;;  %v7008_v34 = vrot.slane %v12105_v41, 2  ;;  %v14577_v41 = vld [vmem:[%s19134_s1 + $0x1b4c] ss:$16 sps:$4 sm:$0xff]  }
 0x30f   : > { %7685 = vmatpush1.bf16.msra.mxu0 %v14422_v7  ;;  %7807 = vmatpush1.bf16.msra.mxu1 %v14425_v49  ;;  %v17913_v7 = vld [vmem:[%s15221_s17 + $0x50] sm:$0xff] }
 0x310   : > { %7686 = vmatprep.subr.bf16.mxu0 %v14430_v51  ;;  %7808 = vmatprep.subr.bf16.mxu1 %v14433_v54  ;;  %v14506_v49 = vld [vmem:[%s19134_s1 + $0x19e4] ss:$16 sps:$4 sm:$0xff]   ;;  %v14509_v51 = vld [vmem:[%s19134_s1 + $0x19ec] ss:$16 sps:$4 sm:$0xff]   ;;  %v12110_v54 = vcombine.high %v17913_v7, %v17913_v7  ;;  %v12109_v12 = vcombine.low %v17913_v7, %v17913_v7 }
 0x311   : > { %6703 = vmatprep.mubr.bf16.mxu0 %v11848_v6  ;;  %6825 = vmatprep.mubr.bf16.mxu1 %v11848_v6  ;;  %v7009_v6 = vrot.slane %v17529_v46, 2  ;;  %v14517_v46 = vld [vmem:[%s19134_s1 + $0x1a0c] ss:$16 sps:$4 sm:$0xff]  }
 0x313   : > { %7687 = vmatpush1.bf16.msra.mxu0 %v14428_v3  ;;  %7809 = vmatpush1.bf16.msra.mxu1 %v14431_v9  ;;  %v14514_v3 = vld [vmem:[%s19134_s1 + $0x1a04] ss:$16 sps:$4 sm:$0xff]   ;;  %v7022_v9 = vrot.slane %v12110_v54, 2 }
 0x314   : > { %7688 = vmatprep.subr.bf16.mxu0 %v14436_v42  ;;  %7810 = vmatprep.subr.bf16.mxu1 %v14439_v10  ;;  %v14512_v42 = vld [vmem:[%s19134_s1 + $0x1a00] ss:$16 sps:$4 sm:$0xff]   ;;  %v14515_v10 = vld [vmem:[%s19134_s1 + $0x1a08] ss:$16 sps:$4 sm:$0xff]   ;;  %v14580_v54 = vld [vmem:[%s19134_s1 + $0x1b64] ss:$16 sps:$4 sm:$0xff]  }
 0x316   : > { %6704 = vmatmul.mubr.bf16.gmra.mrb[8].mxu0 %v11847_v11  ;;  %6826 = vmatmul.mubr.bf16.gmra.mrb[8].mxu1 %v11847_v11  ;;  %v7010_v11 = vsel %vm7007_vm4, %v7008_v34, %v7009_v6  ;;  %v14587_v34 = vld [vmem:[%s19134_s1 + $0x1b84] ss:$16 sps:$4 sm:$0xff]  }
 0x317   : > { %7689 = vmatpush1.bf16.msra.mxu0 %v14434_v4  ;;  %7811 = vmatpush1.bf16.msra.mxu1 %v14437_v14  ;;  %v14520_v4 = vld [vmem:[%s19134_s1 + $0x1a24] ss:$16 sps:$4 sm:$0xff]   ;;  %v14523_v14 = vld [vmem:[%s19134_s1 + $0x1a2c] ss:$16 sps:$4 sm:$0xff]  }
 0x318   : > { %7690 = vmatprep.subr.bf16.mxu0 %v14442_v57  ;;  %7812 = vmatprep.subr.bf16.mxu1 %v14445_v15  ;;  %v7023_v57 = vsel %vm7007_vm4, %v7012_v56, %v7022_v9  ;;  %v14518_v15 = vld [vmem:[%s19134_s1 + $0x1a20] ss:$16 sps:$4 sm:$0xff]   ;;  %v14529_v56 = vld [vmem:[%s19134_s1 + $0x1a4c] ss:$16 sps:$4 sm:$0xff]  }
 0x319   : > { %7712 = vmatprep.mubr.bf16.mxu0 %v7013_v16  ;;  %7834 = vmatprep.mubr.bf16.mxu1 %v7013_v16  ;;  %v14521_v16 = vld [vmem:[%s19134_s1 + $0x1a28] ss:$16 sps:$4 sm:$0xff]  }
 0x31b   : > { %7691 = vmatpush1.bf16.msra.mxu0 %v14440_v17  ;;  %7813 = vmatpush1.bf16.msra.mxu1 %v14443_v0  ;;  %v7020_v17 = vrot.slane %v12109_v12, 2  ;;  %v14524_v0 = vld [vmem:[%s19134_s1 + $0x1a40] ss:$16 sps:$4 sm:$0xff]   ;;  %v14595_v12 = vld [vmem:[%s19134_s1 + $0x1ba8] ss:$16 sps:$4 sm:$0xff]  }
 0x31c   : > { %7692 = vmatprep.subr.bf16.mxu0 %v14448_v18  ;;  %7814 = vmatprep.subr.bf16.mxu1 %v14451_v31  ;;  %v14527_v18 = vld [vmem:[%s19134_s1 + $0x1a48] ss:$16 sps:$4 sm:$0xff]  }
 0x31d   : > { %v7021_v31 = vsel %vm7007_vm4, %v7009_v6, %v7020_v17  ;;  %v14583_v6 = vld [vmem:[%s19134_s1 + $0x1b6c] ss:$16 sps:$4 sm:$0xff]  }
 0x31f   : > { %7693 = vmatpush1.bf16.msra.mxu0 %v14446_v32  ;;  %7815 = vmatpush1.bf16.msra.mxu1 %v14449_v19  ;;  %v17974_v32 = vld [vmem:[%s15221_s17 + $0x18] sm:$0xcc]  ;;  %v14532_v19 = vld [vmem:[%s19134_s1 + $0x1a64] ss:$16 sps:$4 sm:$0xff]  }
 0x320   : > { %7694 = vmatprep.subr.bf16.mxu0 %v14454_v48  ;;  %7816 = vmatprep.subr.bf16.mxu1 %v14457_v20  ;;  %v14535_v48 = vld [vmem:[%s19134_s1 + $0x1a6c] ss:$16 sps:$4 sm:$0xff]   ;;  %v12108_v20 = vcombine.high %v17974_v32, %v17574_v8 }
 0x323   : > { %7695 = vmatpush1.bf16.msra.mxu0 %v14452_v21  ;;  %7817 = vmatpush1.bf16.msra.mxu1 %v14455_v22  ;;  %v14530_v21 = vld [vmem:[%s19134_s1 + $0x1a60] ss:$16 sps:$4 sm:$0xff]   ;;  %v14533_v22 = vld [vmem:[%s19134_s1 + $0x1a68] ss:$16 sps:$4 sm:$0xff]  }
 0x324   : > { %7696 = vmatprep.subr.bf16.mxu0 %v14460_v23  ;;  %7818 = vmatprep.subr.bf16.mxu1 %v14463_v24  ;;  %v14538_v23 = vld [vmem:[%s19134_s1 + $0x1a84] ss:$16 sps:$4 sm:$0xff]   ;;  %v14541_v24 = vld [vmem:[%s19134_s1 + $0x1a8c] ss:$16 sps:$4 sm:$0xff]  }
 0x327   : > { %7697 = vmatpush1.bf16.msra.mxu0 %v14458_v26  ;;  %7819 = vmatpush1.bf16.msra.mxu1 %v14461_v1  ;;  %v7017_v26 = vrot.slane %v12108_v20, 2  ;;  %v7018_v1 = vrot.slane %v17726_v29, 2  ;;  %v14626_v29 = vld [vmem:[%s19134_s1 + $0x1c44] ss:$16 sps:$4 sm:$0xff]  }
 0x328   : > { %7698 = vmatprep.subr.bf16.mxu0 %v14466_v25  ;;  %7820 = vmatprep.subr.bf16.mxu1 %v14469_v27  ;;  %v14536_v25 = vld [vmem:[%s19134_s1 + $0x1a80] ss:$16 sps:$4 sm:$0xff]   ;;  %v14539_v27 = vld [vmem:[%s19134_s1 + $0x1a88] ss:$16 sps:$4 sm:$0xff]  }
 0x32b   : > { %7699 = vmatpush1.bf16.msra.mxu0 %v14464_v13  ;;  %7821 = vmatpush1.bf16.msra.mxu1 %v14467_v28  ;;  %v14544_v13 = vld [vmem:[%s19134_s1 + $0x1aa4] ss:$16 sps:$4 sm:$0xff]   ;;  %v14547_v28 = vld [vmem:[%s19134_s1 + $0x1aac] ss:$16 sps:$4 sm:$0xff]  }
 0x32c   : > { %7700 = vmatprep.subr.bf16.mxu0 %v14472_v30  ;;  %7822 = vmatprep.subr.bf16.mxu1 %v14475_v62  ;;  %v7019_v30 = vsel %vm7007_vm4, %v7017_v26, %v7018_v1  ;;  %v14542_v62 = vld [vmem:[%s19134_s1 + $0x1aa0] ss:$16 sps:$4 sm:$0xff]  }
 0x32d   : > { %v18165_v26 = vld [vmem:[%s15221_s17 + $0x20] sm:$0xff] }
 0x32f   : > { %7701 = vmatpush1.bf16.msra.mxu0 %v14470_v33  ;;  %7823 = vmatpush1.bf16.msra.mxu1 %v14473_v35  ;;  %v14545_v33 = vld [vmem:[%s19134_s1 + $0x1aa8] ss:$16 sps:$4 sm:$0xff]   ;;  %v14550_v35 = vld [vmem:[%s19134_s1 + $0x1ac4] ss:$16 sps:$4 sm:$0xff]  }
 0x330   : > { %7702 = vmatprep.subr.bf16.mxu0 %v14478_v37  ;;  %7824 = vmatprep.subr.bf16.mxu1 %v14481_v40  ;;  %v14553_v37 = vld [vmem:[%s19134_s1 + $0x1acc] ss:$16 sps:$4 sm:$0xff]   ;;  %v14548_v40 = vld [vmem:[%s19134_s1 + $0x1ac0] ss:$16 sps:$4 sm:$0xff]  }
 0x333   : > { %7703 = vmatpush1.bf16.msra.mxu0 %v14476_v43  ;;  %7825 = vmatpush1.bf16.msra.mxu1 %v14479_v44  ;;  %v14551_v43 = vld [vmem:[%s19134_s1 + $0x1ac8] ss:$16 sps:$4 sm:$0xff]   ;;  %v14556_v44 = vld [vmem:[%s19134_s1 + $0x1ae4] ss:$16 sps:$4 sm:$0xff]  }
 0x334   : > { %7704 = vmatprep.subr.bf16.mxu0 %v14485_v38  ;;  %7826 = vmatprep.subr.bf16.mxu1 %v14488_v47  ;;  %v14559_v38 = vld [vmem:[%s19134_s1 + $0x1aec] ss:$16 sps:$4 sm:$0xff]   ;;  %v14554_v47 = vld [vmem:[%s19134_s1 + $0x1ae0] ss:$16 sps:$4 sm:$0xff]  }
 0x337   : > { %7705 = vmatpush1.bf16.msra.mxu0 %v14483_v50  ;;  %7827 = vmatpush1.bf16.msra.mxu1 %v14486_v55  ;;  %v14557_v50 = vld [vmem:[%s19134_s1 + $0x1ae8] ss:$16 sps:$4 sm:$0xff]   ;;  %v14562_v55 = vld [vmem:[%s19134_s1 + $0x1b04] ss:$16 sps:$4 sm:$0xff]  }
 0x338   : > { %7706 = vmatprep.subr.bf16.mxu0 %v14492_v59  ;;  %7828 = vmatprep.subr.bf16.mxu1 %v14495_v60  ;;  %v14565_v59 = vld [vmem:[%s19134_s1 + $0x1b0c] ss:$16 sps:$4 sm:$0xff]   ;;  %v14560_v60 = vld [vmem:[%s19134_s1 + $0x1b00] ss:$16 sps:$4 sm:$0xff]  }
 0x33b   : > { %7707 = vmatpush1.bf16.msra.mxu0 %v14490_v61  ;;  %7829 = vmatpush1.bf16.msra.mxu1 %v14493_v53  ;;  %v14563_v61 = vld [vmem:[%s19134_s1 + $0x1b08] ss:$16 sps:$4 sm:$0xff]   ;;  %v14568_v53 = vld [vmem:[%s19134_s1 + $0x1b24] ss:$16 sps:$4 sm:$0xff]  }
 0x33c   : > { %7708 = vmatprep.subr.bf16.mxu0 %v14499_v58  ;;  %7830 = vmatprep.subr.bf16.mxu1 %v14502_v52  ;;  %v14571_v58 = vld [vmem:[%s19134_s1 + $0x1b2c] ss:$16 sps:$4 sm:$0xff]   ;;  %v14566_v52 = vld [vmem:[%s19134_s1 + $0x1b20] ss:$16 sps:$4 sm:$0xff]  }
 0x33f   : > { %7709 = vmatpush1.bf16.msra.mxu0 %v14497_v63  ;;  %7831 = vmatpush1.bf16.msra.mxu1 %v14500_v2  ;;  %v14569_v63 = vld [vmem:[%s19134_s1 + $0x1b28] ss:$16 sps:$4 sm:$0xff]   ;;  %v14574_v2 = vld [vmem:[%s19134_s1 + $0x1b44] ss:$16 sps:$4 sm:$0xff]  }
 0x340   : > { %7710 = vmatprep.subr.bf16.mxu0 %v14506_v49  ;;  %7832 = vmatprep.subr.bf16.mxu1 %v14509_v51  ;;  %v14572_v49 = vld [vmem:[%s19134_s1 + $0x1b40] ss:$16 sps:$4 sm:$0xff]   ;;  %v14575_v51 = vld [vmem:[%s19134_s1 + $0x1b48] ss:$16 sps:$4 sm:$0xff]  }
 0x343   : > { %7711 = vmatpush1.bf16.msra.mxu0 %v14504_v39  ;;  %7833 = vmatpush1.bf16.msra.mxu1 %v14507_v45  ;;  %v14578_v39 = vld [vmem:[%s19134_s1 + $0x1b60] ss:$16 sps:$4 sm:$0xff]   ;;  %v14581_v45 = vld [vmem:[%s19134_s1 + $0x1b68] ss:$16 sps:$4 sm:$0xff]  }
 0x344   : > { %7741 = vmatprep.subr.bf16.mxu0 %v14514_v3  ;;  %7863 = vmatprep.subr.bf16.mxu1 %v14517_v46  ;;  %v14590_v3 = vld [vmem:[%s19134_s1 + $0x1b8c] ss:$16 sps:$4 sm:$0xff]   ;;  %v14585_v46 = vld [vmem:[%s19134_s1 + $0x1b80] ss:$16 sps:$4 sm:$0xff]  }
 0x346   : > { %7713 = vmatmul.mubr.bf16.vlgmr.msra.gmra.mrb[0].mxu0 %v7010_v11  ;;  %7835 = vmatmul.mubr.bf16.vlgmr.msra.gmra.mrb[0].mxu1 %v7010_v11  ;;  %v14592_v11 = vld [vmem:[%s19134_s1 + $0x1ba0] ss:$16 sps:$4 sm:$0xff]  }
 0x347   : > { %7742 = vmatpush1.bf16.msra.mxu0 %v14512_v42  ;;  %7864 = vmatpush1.bf16.msra.mxu1 %v14515_v10  ;;  %v14594_v42 = vld [vmem:[%s19134_s1 + $0x1ba4] ss:$16 sps:$4 sm:$0xff]   ;;  %v14597_v10 = vld [vmem:[%s19134_s1 + $0x1bac] ss:$16 sps:$4 sm:$0xff]  }
 0x348   : > { %7743 = vmatprep.subr.bf16.mxu0 %v14520_v4  ;;  %7865 = vmatprep.subr.bf16.mxu1 %v14523_v14  ;;  %v14600_v4 = vld [vmem:[%s19134_s1 + $0x1bc4] ss:$16 sps:$4 sm:$0xff]   ;;  %v14603_v14 = vld [vmem:[%s19134_s1 + $0x1bcc] ss:$16 sps:$4 sm:$0xff]  }
 0x349   : > { %7722 = vmatprep.mubr.bf16.mxu0 %v7023_v57  ;;  %7844 = vmatprep.mubr.bf16.mxu1 %v7023_v57  ;;  %v14598_v57 = vld [vmem:[%s19134_s1 + $0x1bc0] ss:$16 sps:$4 sm:$0xff]  }
 0x34b   : > { %7744 = vmatpush1.bf16.msra.mxu0 %v14518_v15  ;;  %7866 = vmatpush1.bf16.msra.mxu1 %v14521_v16  ;;  %v14601_v15 = vld [vmem:[%s19134_s1 + $0x1bc8] ss:$16 sps:$4 sm:$0xff]   ;;  %v12107_v16 = vcombine.low %v17974_v32, %v17574_v8  ;;  %v14604_v8 = vld [vmem:[%s19134_s1 + $0x1be0] ss:$16 sps:$4 sm:$0xff]  }
 0x34c   : > { %7745 = vmatprep.subr.bf16.mxu0 %v14526_v36  ;;  %7867 = vmatprep.subr.bf16.mxu1 %v14529_v56  ;;  %v14606_v36 = vld [vmem:[%s19134_s1 + $0x1be4] ss:$16 sps:$4 sm:$0xff]   ;;  %v14609_v56 = vld [vmem:[%s19134_s1 + $0x1bec] ss:$16 sps:$4 sm:$0xff]  }
 0x34d   : > { %v7014_v32 = vrot.slane %v12107_v16, 2  ;;  %v14665_v16 = vld [vmem:[%s19134_s1 + $0x1d0c] ss:$16 sps:$4 sm:$0xff]  }
 0x34e   : > { %7723 = vmatmul.mubr.bf16.gmra.mrb[4].mxu0 %v7021_v31  ;;  %7845 = vmatmul.mubr.bf16.gmra.mrb[4].mxu1 %v7021_v31  ;;  %v14607_v31 = vld [vmem:[%s19134_s1 + $0x1be8] ss:$16 sps:$4 sm:$0xff]  }
 0x34f   : > { %7746 = vmatpush1.bf16.msra.mxu0 %v14524_v0  ;;  %7868 = vmatpush1.bf16.msra.mxu1 %v14527_v18  ;;  %v7015_v18 = vrot.slane %v17743_v5, 2  ;;  %v14617_v5 = vld [vmem:[%s19134_s1 + $0x1c0c] ss:$16 sps:$4 sm:$0xff]  }
 0x350   : > { %7747 = vmatprep.subr.bf16.mxu0 %v14532_v19  ;;  %7869 = vmatprep.subr.bf16.mxu1 %v14535_v48  ;;  %v14614_v19 = vld [vmem:[%s19134_s1 + $0x1c04] ss:$16 sps:$4 sm:$0xff]   ;;  %v14612_v48 = vld [vmem:[%s19134_s1 + $0x1c00] ss:$16 sps:$4 sm:$0xff]  }
 0x351   : > { %7732 = vmatprep.mubr.bf16.mxu0 %v7022_v9  ;;  %7854 = vmatprep.mubr.bf16.mxu1 %v7022_v9  ;;  %v14588_v9 = vld [vmem:[%s19134_s1 + $0x1b88] ss:$16 sps:$4 sm:$0xff]  }
 0x353   : > { %7748 = vmatpush1.bf16.msra.mxu0 %v14530_v21  ;;  %7870 = vmatpush1.bf16.msra.mxu1 %v14533_v22  ;;  %v14615_v21 = vld [vmem:[%s19134_s1 + $0x1c08] ss:$16 sps:$4 sm:$0xff]   ;;  %v7016_v22 = vsel %vm7007_vm4, %v7014_v32, %v7015_v18  ;;  %v14674_v32 = vld [vmem:[%s19134_s1 + $0x1d44] ss:$16 sps:$4 sm:$0xff]  }
 0x354   : > { %7749 = vmatprep.subr.bf16.mxu0 %v14538_v23  ;;  %7871 = vmatprep.subr.bf16.mxu1 %v14541_v24  ;;  %v18162_v24 = vld [vmem:[%s15221_s17 + $0x10] sm:$0xcc] }
 0x356   : > { %7733 = vmatmul.mubr.bf16.gmra.mrb[8].mxu0 %v7020_v17  ;;  %7855 = vmatmul.mubr.bf16.gmra.mrb[8].mxu1 %v7020_v17  ;;  %v18129_v17 = vld [vmem:[%s15221_s17 + $0x58] sm:$0xff] }
 0x357   : > { %7750 = vmatpush1.bf16.msra.mxu0 %v14536_v25  ;;  %7872 = vmatpush1.bf16.msra.mxu1 %v14539_v27  ;;  %v12112_v0 = vcombine.high %v18129_v17, %v18129_v17  ;;  %v12111_v23 = vcombine.low %v18129_v17, %v18129_v17  ;;  %v14620_v25 = vld [vmem:[%s19134_s1 + $0x1c24] ss:$16 sps:$4 sm:$0xff]   ;;  %v14623_v27 = vld [vmem:[%s19134_s1 + $0x1c2c] ss:$16 sps:$4 sm:$0xff]  }
 0x358   : > { %7751 = vmatprep.subr.bf16.mxu0 %v14544_v13  ;;  %7873 = vmatprep.subr.bf16.mxu1 %v14547_v28  ;;  %v12370_v28 = vcombine.high %v18162_v24, %v18165_v26 }
 0x359   : > { %7773 = vmatprep.mubr.bf16.mxu0 %v7019_v30  ;;  %7895 = vmatprep.mubr.bf16.mxu1 %v7019_v30  ;;  %v7026_v20 = vrot.slane %v12112_v0, 2  ;;  %v18179_v30 = vld [vmem:[%s15221_s17 + $0x34] ss:$16 sps:$4 sm:$0xff]  }
 0x35a   : > { %v14668_v0 = vld [vmem:[%s19134_s1 + $0x1d24] ss:$16 sps:$4 sm:$0xff]  }
 0x35b   : > { %7752 = vmatpush1.bf16.msra.mxu0 %v14542_v62  ;;  %7874 = vmatpush1.bf16.msra.mxu1 %v14545_v33  ;;  %v7027_v13 = vsel %vm7007_vm4, %v7018_v1, %v7026_v20  ;;  %v14618_v62 = vld [vmem:[%s19134_s1 + $0x1c20] ss:$16 sps:$4 sm:$0xff]   ;;  %v14621_v33 = vld [vmem:[%s19134_s1 + $0x1c28] ss:$16 sps:$4 sm:$0xff]   ;;  %v14629_v1 = vld [vmem:[%s19134_s1 + $0x1c4c] ss:$16 sps:$4 sm:$0xff]  }
 0x35c   : > { %7753 = vmatprep.subr.bf16.mxu0 %v14550_v35  ;;  %7875 = vmatprep.subr.bf16.mxu1 %v14553_v37  ;;  %v7024_v35 = vrot.slane %v12111_v23, 2  ;;  %v8152_v37 = vshrl.u32 %v12370_v28, 16  ;;  %v14681_v23 = vld [vmem:[%s19134_s1 + $0x1d68] ss:$16 sps:$4 sm:$0xff]  }
 0x35f   : > { %7754 = vmatpush1.bf16.msra.mxu0 %v14548_v40  ;;  %7876 = vmatpush1.bf16.msra.mxu1 %v14551_v43  ;;  %v8155_v40 = vshll.u32 %v12370_v28, 16  ;;  %v8160_v43 = vshrl.u32 %v18179_v30, 16  ;;  %v12369_v28 = vcombine.low %v18162_v24, %v18165_v26  ;;  %v14692_v24 = vld [vmem:[%s19134_s1 + $0x1da0] ss:$16 sps:$4 sm:$0xff]  }
 0x360   : > { %7755 = vmatprep.subr.bf16.mxu0 %v14556_v44  ;;  %7877 = vmatprep.subr.bf16.mxu1 %v14559_v38  ;;  %v8163_v44 = vshll.u32 %v18179_v30, 16  ;;  %v14624_v38 = vld [vmem:[%s19134_s1 + $0x1c40] ss:$16 sps:$4 sm:$0xff]  }
 0x363   : > { %7756 = vmatpush1.bf16.msra.mxu0 %v14554_v47  ;;  %7878 = vmatpush1.bf16.msra.mxu1 %v14557_v50  ;;  %v14627_v47 = vld [vmem:[%s19134_s1 + $0x1c48] ss:$16 sps:$4 sm:$0xff]   ;;  %v7025_v50 = vsel %vm7007_vm4, %v7015_v18, %v7024_v35  ;;  %v14671_v18 = vld [vmem:[%s19134_s1 + $0x1d2c] ss:$16 sps:$4 sm:$0xff]  }
 0x364   : > { %7757 = vmatprep.subr.bf16.mxu0 %v14562_v55  ;;  %7879 = vmatprep.subr.bf16.mxu1 %v14565_v59  ;;  %v14632_v55 = vld [vmem:[%s19134_s1 + $0x1c64] ss:$16 sps:$4 sm:$0xff]   ;;  %v14635_v59 = vld [vmem:[%s19134_s1 + $0x1c6c] ss:$16 sps:$4 sm:$0xff]  }
 0x367   : > { %7758 = vmatpush1.bf16.msra.mxu0 %v14560_v60  ;;  %7880 = vmatpush1.bf16.msra.mxu1 %v14563_v61  ;;  %v8154_v60 = vrot.slane %v8152_v37, 2  ;;  %v8157_v61 = vrot.slane %v8155_v40, 3  ;;  %v8135_v37 = vshrl.u32 %v12369_v28, 16 }
 0x368   : > { %7759 = vmatprep.subr.bf16.mxu0 %v14568_v53  ;;  %7881 = vmatprep.subr.bf16.mxu1 %v14571_v58  ;;  %v8162_v53 = vrot.slane %v8160_v43, 2  ;;  %v8165_v58 = vrot.slane %v8163_v44, 3  ;;  %v14695_v43 = vld [vmem:[%s19134_s1 + $0x1da8] ss:$16 sps:$4 sm:$0xff]   ;;  %v8138_v44 = vshll.u32 %v12369_v28, 16 }
 0x369   : > { %v14735_v28 = vld [vmem:[%s19134_s1 + $0x1e64] ss:$16 sps:$4 sm:$0xff]  }
 0x36b   : > { %7760 = vmatpush1.bf16.msra.mxu0 %v14566_v52  ;;  %7882 = vmatpush1.bf16.msra.mxu1 %v14569_v63  ;;  %v14630_v52 = vld [vmem:[%s19134_s1 + $0x1c60] ss:$16 sps:$4 sm:$0xff]   ;;  %v14633_v63 = vld [vmem:[%s19134_s1 + $0x1c68] ss:$16 sps:$4 sm:$0xff]  }
 0x36c   : > { %7761 = vmatprep.subr.bf16.mxu0 %v14574_v2  ;;  %7883 = vmatprep.subr.bf16.mxu1 %v14577_v41  ;;  %v14638_v2 = vld [vmem:[%s19134_s1 + $0x1c84] ss:$16 sps:$4 sm:$0xff]   ;;  %v14641_v41 = vld [vmem:[%s19134_s1 + $0x1c8c] ss:$16 sps:$4 sm:$0xff]  }
 0x36f   : > { %7762 = vmatpush1.bf16.msra.mxu0 %v14572_v49  ;;  %7884 = vmatpush1.bf16.msra.mxu1 %v14575_v51  ;;  %v8158_v49 = vor.u32 %v8157_v61, %v8154_v60  ;;  %v18220_v51 = vor.u32 %v8165_v58, %v8162_v53  ;;  %v8137_v60 = vrot.slane %v8135_v37, 2  ;;  %v14701_v58 = vld [vmem:[%s19134_s1 + $0x1dc8] ss:$16 sps:$4 sm:$0xff]   ;;  %v14733_v37 = vld [vmem:[%s19134_s1 + $0x1e60] ss:$16 sps:$4 sm:$0xff]  }
 0x370   : > { %7763 = vmatprep.subr.bf16.mxu0 %v14580_v54  ;;  %7885 = vmatprep.subr.bf16.mxu1 %v14583_v6  ;;  %v14636_v54 = vld [vmem:[%s19134_s1 + $0x1c80] ss:$16 sps:$4 sm:$0xff]   ;;  %v14639_v6 = vld [vmem:[%s19134_s1 + $0x1c88] ss:$16 sps:$4 sm:$0xff]  }
 0x373   : > { %7764 = vmatpush1.bf16.msra.mxu0 %v14578_v39  ;;  %7886 = vmatpush1.bf16.msra.mxu1 %v14581_v45  ;;  %v14644_v39 = vld [vmem:[%s19134_s1 + $0x1ca4] ss:$16 sps:$4 sm:$0xff]   ;;  %v14647_v45 = vld [vmem:[%s19134_s1 + $0x1cac] ss:$16 sps:$4 sm:$0xff]  }
 0x374   : > { %7765 = vmatprep.subr.bf16.mxu0 %v14587_v34  ;;  %7887 = vmatprep.subr.bf16.mxu1 %v14590_v3  ;;  %v8167_v34 = vsel %vm8133_vm5, %v8158_v49, %v18220_v51  ;;  %v14642_v3 = vld [vmem:[%s19134_s1 + $0x1ca0] ss:$16 sps:$4 sm:$0xff]   ;;  %v14706_v49 = vld [vmem:[%s19134_s1 + $0x1de4] ss:$16 sps:$4 sm:$0xff]  }
 0x377   : > { %7766 = vmatpush1.bf16.msra.mxu0 %v14585_v46  ;;  %7888 = vmatpush1.bf16.msra.mxu1 %v14588_v9  ;;  %v14645_v46 = vld [vmem:[%s19134_s1 + $0x1ca8] ss:$16 sps:$4 sm:$0xff]   ;;  %v14650_v9 = vld [vmem:[%s19134_s1 + $0x1cc4] ss:$16 sps:$4 sm:$0xff]  }
 0x378   : > { %7767 = vmatprep.subr.bf16.mxu0 %v14594_v42  ;;  %7889 = vmatprep.subr.bf16.mxu1 %v14597_v10  ;;  %v14653_v42 = vld [vmem:[%s19134_s1 + $0x1ccc] ss:$16 sps:$4 sm:$0xff]   ;;  %v14648_v10 = vld [vmem:[%s19134_s1 + $0x1cc0] ss:$16 sps:$4 sm:$0xff]  }
 0x37b   : > { %7768 = vmatpush1.bf16.msra.mxu0 %v14592_v11  ;;  %7890 = vmatpush1.bf16.msra.mxu1 %v14595_v12  ;;  %v14651_v11 = vld [vmem:[%s19134_s1 + $0x1cc8] ss:$16 sps:$4 sm:$0xff]   ;;  %v14656_v12 = vld [vmem:[%s19134_s1 + $0x1ce4] ss:$16 sps:$4 sm:$0xff]  }
 0x37c   : > { %7769 = vmatprep.subr.bf16.mxu0 %v14600_v4  ;;  %7891 = vmatprep.subr.bf16.mxu1 %v14603_v14  ;;  %v14659_v4 = vld [vmem:[%s19134_s1 + $0x1cec] ss:$16 sps:$4 sm:$0xff]   ;;  %v14654_v14 = vld [vmem:[%s19134_s1 + $0x1ce0] ss:$16 sps:$4 sm:$0xff]  }
 0x37f   : > { %7770 = vmatpush1.bf16.msra.mxu0 %v14598_v57  ;;  %7892 = vmatpush1.bf16.msra.mxu1 %v14601_v15  ;;  %v14657_v57 = vld [vmem:[%s19134_s1 + $0x1ce8] ss:$16 sps:$4 sm:$0xff]   ;;  %v14662_v15 = vld [vmem:[%s19134_s1 + $0x1d04] ss:$16 sps:$4 sm:$0xff]  }
 0x380   : > { %7771 = vmatprep.subr.bf16.mxu0 %v14606_v36  ;;  %7893 = vmatprep.subr.bf16.mxu1 %v14609_v56  ;;  %v14660_v36 = vld [vmem:[%s19134_s1 + $0x1d00] ss:$16 sps:$4 sm:$0xff]   ;;  %v14663_v56 = vld [vmem:[%s19134_s1 + $0x1d08] ss:$16 sps:$4 sm:$0xff]  }
 0x383   : > { %7772 = vmatpush1.bf16.msra.mxu0 %v14604_v8  ;;  %7894 = vmatpush1.bf16.msra.mxu1 %v14607_v31  ;;  %v14666_v8 = vld [vmem:[%s19134_s1 + $0x1d20] ss:$16 sps:$4 sm:$0xff]   ;;  %v14669_v31 = vld [vmem:[%s19134_s1 + $0x1d28] ss:$16 sps:$4 sm:$0xff]  }
 0x384   : > { %8890 = vmatprep.subr.bf16.mxu0 %v14614_v19  ;;  %9012 = vmatprep.subr.bf16.mxu1 %v14617_v5  ;;  %v14677_v19 = vld [vmem:[%s19134_s1 + $0x1d4c] ss:$16 sps:$4 sm:$0xff]   ;;  %v14672_v5 = vld [vmem:[%s19134_s1 + $0x1d40] ss:$16 sps:$4 sm:$0xff]  }
 0x386   : > { %7774 = vmatmul.mubr.bf16.vlgmr.msra.gmra.mrb[0].mxu0 %v7016_v22  ;;  %7896 = vmatmul.mubr.bf16.vlgmr.msra.gmra.mrb[0].mxu1 %v7016_v22  ;;  %v14678_v22 = vld [vmem:[%s19134_s1 + $0x1d60] ss:$16 sps:$4 sm:$0xff]  }
 0x387   : > { %8891 = vmatpush1.bf16.msra.mxu0 %v14612_v48  ;;  %9013 = vmatpush1.bf16.msra.mxu1 %v14615_v21  ;;  %v14675_v48 = vld [vmem:[%s19134_s1 + $0x1d48] ss:$16 sps:$4 sm:$0xff]   ;;  %v14683_v21 = vld [vmem:[%s19134_s1 + $0x1d6c] ss:$16 sps:$4 sm:$0xff]  }
 0x388   : > { %8892 = vmatprep.subr.bf16.mxu0 %v14620_v25  ;;  %9014 = vmatprep.subr.bf16.mxu1 %v14623_v27  ;;  %v14687_v25 = vld [vmem:[%s19134_s1 + $0x1d84] ss:$16 sps:$4 sm:$0xff]   ;;  %v14690_v27 = vld [vmem:[%s19134_s1 + $0x1d8c] ss:$16 sps:$4 sm:$0xff]  }
 0x389   : > { %7783 = vmatprep.mubr.bf16.mxu0 %v7027_v13  ;;  %7905 = vmatprep.mubr.bf16.mxu1 %v7027_v13  ;;  %v14685_v13 = vld [vmem:[%s19134_s1 + $0x1d80] ss:$16 sps:$4 sm:$0xff]  }
 0x38b   : > { %8893 = vmatpush1.bf16.msra.mxu0 %v14618_v62  ;;  %9015 = vmatpush1.bf16.msra.mxu1 %v14621_v33  ;;  %v14688_v62 = vld [vmem:[%s19134_s1 + $0x1d88] ss:$16 sps:$4 sm:$0xff]   ;;  %v18329_v33 = vld [vmem:[%s15221_s17 + $0x30] ss:$16 sps:$4 sm:$0xff]  }
 0x38c   : > { %8894 = vmatprep.subr.bf16.mxu0 %v14626_v29  ;;  %9016 = vmatprep.subr.bf16.mxu1 %v14629_v1  ;;  %v14694_v29 = vld [vmem:[%s19134_s1 + $0x1da4] ss:$16 sps:$4 sm:$0xff]   ;;  %v14697_v1 = vld [vmem:[%s19134_s1 + $0x1dac] ss:$16 sps:$4 sm:$0xff]  }
 0x38e   : > { %7784 = vmatmul.mubr.bf16.gmra.mrb[4].mxu0 %v7025_v50  ;;  %7906 = vmatmul.mubr.bf16.gmra.mrb[4].mxu1 %v7025_v50  ;;  %v14700_v50 = vld [vmem:[%s19134_s1 + $0x1dc4] ss:$16 sps:$4 sm:$0xff]  }
 0x38f   : > { %8895 = vmatpush1.bf16.msra.mxu0 %v14624_v38  ;;  %9017 = vmatpush1.bf16.msra.mxu1 %v14627_v47  ;;  %v8143_v38 = vshrl.u32 %v18329_v33, 16  ;;  %v8146_v47 = vshll.u32 %v18329_v33, 16 }
 0x390   : > { %8896 = vmatprep.subr.bf16.mxu0 %v14632_v55  ;;  %9018 = vmatprep.subr.bf16.mxu1 %v14635_v59  ;;  %v14703_v55 = vld [vmem:[%s19134_s1 + $0x1dcc] ss:$16 sps:$4 sm:$0xff]   ;;  %v14698_v59 = vld [vmem:[%s19134_s1 + $0x1dc0] ss:$16 sps:$4 sm:$0xff]  }
 0x391   : > { %7793 = vmatprep.mubr.bf16.mxu0 %v7026_v20  ;;  %7915 = vmatprep.mubr.bf16.mxu1 %v7026_v20  ;;  %v14680_v20 = vld [vmem:[%s19134_s1 + $0x1d64] ss:$16 sps:$4 sm:$0xff]  }
 0x393   : > { %8897 = vmatpush1.bf16.msra.mxu0 %v14630_v52  ;;  %9019 = vmatpush1.bf16.msra.mxu1 %v14633_v63  ;;  %v8140_v52 = vrot.slane %v8138_v44, 3  ;;  %v8145_v63 = vrot.slane %v8143_v38, 2  ;;  %v14741_v44 = vld [vmem:[%s19134_s1 + $0x1e84] ss:$16 sps:$4 sm:$0xff]   ;;  %v14744_v38 = vld [vmem:[%s19134_s1 + $0x1e8c] ss:$16 sps:$4 sm:$0xff]  }
 0x394   : > { %8898 = vmatprep.subr.bf16.mxu0 %v14638_v2  ;;  %9020 = vmatprep.subr.bf16.mxu1 %v14641_v41  ;;  %v8148_v2 = vrot.slane %v8146_v47, 3 }
 0x396   : > { %7794 = vmatmul.mubr.bf16.gmra.mrb[8].mxu0 %v7024_v35  ;;  %7916 = vmatmul.mubr.bf16.gmra.mrb[8].mxu1 %v7024_v35  ;;  %v7954_v35 = vld [vmem:[%s15221_s17 + $0x60] sm:$0x11] }
 0x397   : > { %8899 = vmatpush1.bf16.msra.mxu0 %v14636_v54  ;;  %9021 = vmatpush1.bf16.msra.mxu1 %v14639_v6  ;;  %v18342_v40 = vcombine.high %v17913_v7, %v7954_v35  ;;  %v18364_v41 = vcombine.low %v17913_v7, %v7954_v35  ;;  %v14709_v54 = vld [vmem:[%s19134_s1 + $0x1dec] ss:$16 sps:$4 sm:$0xff]   ;;  %v14707_v7 = vld [vmem:[%s19134_s1 + $0x1de8] ss:$16 sps:$4 sm:$0xff]  }
 0x398   : > { %8900 = vmatprep.subr.bf16.mxu0 %v14644_v39  ;;  %9022 = vmatprep.subr.bf16.mxu1 %v14647_v45  ;;  %v14704_v45 = vld [vmem:[%s19134_s1 + $0x1de0] ss:$16 sps:$4 sm:$0xff]  }
 0x399   : > { %8922 = vmatprep.mubr.bf16.mxu0 %v8167_v34  ;;  %9044 = vmatprep.mubr.bf16.mxu1 %v8167_v34  ;;  %v8212_v61 = vshrl.u32 %v18342_v40, 16  ;;  %v8215_v53 = vshll.u32 %v18342_v40, 16  ;;  %v8141_v34 = vor.u32 %v8140_v52, %v8137_v60  ;;  %v14747_v60 = vld [vmem:[%s19134_s1 + $0x1ea4] ss:$16 sps:$4 sm:$0xff]   ;;  %v14748_v52 = vld [vmem:[%s19134_s1 + $0x1ea8] ss:$16 sps:$4 sm:$0xff]  }
 0x39b   : > { %8901 = vmatpush1.bf16.msra.mxu0 %v14642_v3  ;;  %9023 = vmatpush1.bf16.msra.mxu1 %v14645_v46  ;;  %v8214_v6 = vrot.slane %v8212_v61, 2  ;;  %v8217_v39 = vrot.slane %v8215_v53, 3  ;;  %v8149_v3 = vor.u32 %v8148_v2, %v8145_v63  ;;  %v8203_v46 = vshrl.u32 %v18364_v41, 16  ;;  %v14750_v61 = vld [vmem:[%s19134_s1 + $0x1eac] ss:$16 sps:$4 sm:$0xff]  }
 0x39c   : > { %8902 = vmatprep.subr.bf16.mxu0 %v14650_v9  ;;  %9024 = vmatprep.subr.bf16.mxu1 %v14653_v42  ;;  %v8206_v9 = vshll.u32 %v18364_v41, 16  ;;  %v14717_v42 = vld [vmem:[%s19134_s1 + $0x1e04] ss:$16 sps:$4 sm:$0xff]   ;;  %v14756_v2 = vld [vmem:[%s19134_s1 + $0x1ecc] ss:$16 sps:$4 sm:$0xff]  }
 0x39d   : > { %v14753_v63 = vld [vmem:[%s19134_s1 + $0x1ec4] ss:$16 sps:$4 sm:$0xff]  }
 0x39f   : > { %8903 = vmatpush1.bf16.msra.mxu0 %v14648_v10  ;;  %9025 = vmatpush1.bf16.msra.mxu1 %v14651_v11  ;;  %v14720_v10 = vld [vmem:[%s19134_s1 + $0x1e0c] ss:$16 sps:$4 sm:$0xff]   ;;  %v14715_v11 = vld [vmem:[%s19134_s1 + $0x1e00] ss:$16 sps:$4 sm:$0xff]  }
 0x3a0   : > { %8904 = vmatprep.subr.bf16.mxu0 %v14656_v12  ;;  %9026 = vmatprep.subr.bf16.mxu1 %v14659_v4  ;;  %v14718_v12 = vld [vmem:[%s19134_s1 + $0x1e08] ss:$16 sps:$4 sm:$0xff]   ;;  %v8218_v4 = vor.u32 %v8217_v39, %v8214_v6  ;;  %v14759_v6 = vld [vmem:[%s19134_s1 + $0x1ee4] ss:$16 sps:$4 sm:$0xff]   ;;  %v14762_v39 = vld [vmem:[%s19134_s1 + $0x1eec] ss:$16 sps:$4 sm:$0xff]  }
 0x3a3   : > { %8905 = vmatpush1.bf16.msra.mxu0 %v14654_v14  ;;  %9027 = vmatpush1.bf16.msra.mxu1 %v14657_v57  ;;  %v8150_v14 = vsel %vm8133_vm5, %v8141_v34, %v8149_v3  ;;  %v8205_v57 = vrot.slane %v8203_v46, 2  ;;  %v14765_v34 = vld [vmem:[%s19134_s1 + $0x1f04] ss:$16 sps:$4 sm:$0xff]   ;;  %v14763_v46 = vld [vmem:[%s19134_s1 + $0x1f00] ss:$16 sps:$4 sm:$0xff]  }
 0x3a4   : > { %8906 = vmatprep.subr.bf16.mxu0 %v14662_v15  ;;  %9028 = vmatprep.subr.bf16.mxu1 %v14665_v16  ;;  %v8208_v15 = vrot.slane %v8206_v9, 3  ;;  %v18394_v16 = vld [vmem:[%s15221_s17 + $0x18] sm:$0xcc] }
 0x3a5   : > { %v14766_v9 = vld [vmem:[%s19134_s1 + $0x1f08] ss:$16 sps:$4 sm:$0xff]  }
 0x3a7   : > { %8907 = vmatpush1.bf16.msra.mxu0 %v14660_v36  ;;  %9029 = vmatpush1.bf16.msra.mxu1 %v14663_v56  ;;  %v18397_v36 = vld [vmem:[%s15221_s17 + $0x28] sm:$0xff]  ;;  %v14723_v56 = vld [vmem:[%s19134_s1 + $0x1e24] ss:$16 sps:$4 sm:$0xff]  }
 0x3a8   : > { %8908 = vmatprep.subr.bf16.mxu0 %v14668_v0  ;;  %9030 = vmatprep.subr.bf16.mxu1 %v14671_v18  ;;  %v14726_v0 = vld [vmem:[%s19134_s1 + $0x1e2c] ss:$16 sps:$4 sm:$0xff]   ;;  %v8219_v18 = vsel %vm8133_vm5, %v18220_v51, %v8218_v4  ;;  %v14729_v51 = vld [vmem:[%s19134_s1 + $0x1e44] ss:$16 sps:$4 sm:$0xff]  }
 0x3ab   : > { %8909 = vmatpush1.bf16.msra.mxu0 %v14666_v8  ;;  %9031 = vmatpush1.bf16.msra.mxu1 %v14669_v31  ;;  %v12372_v8 = vcombine.high %v18394_v16, %v18397_v36  ;;  %v18410_v31 = vld [vmem:[%s15221_s17 + $0x3c] ss:$16 sps:$4 sm:$0xff]  }
 0x3ac   : > { %8910 = vmatprep.subr.bf16.mxu0 %v14674_v32  ;;  %9032 = vmatprep.subr.bf16.mxu1 %v14677_v19  ;;  %v14721_v32 = vld [vmem:[%s19134_s1 + $0x1e20] ss:$16 sps:$4 sm:$0xff]   ;;  %v14724_v19 = vld [vmem:[%s19134_s1 + $0x1e28] ss:$16 sps:$4 sm:$0xff]  }
 0x3af   : > { %8911 = vmatpush1.bf16.msra.mxu0 %v14672_v5  ;;  %9033 = vmatpush1.bf16.msra.mxu1 %v14675_v48  ;;  %v8209_v5 = vor.u32 %v8208_v15, %v8205_v57  ;;  %v14732_v48 = vld [vmem:[%s19134_s1 + $0x1e4c] ss:$16 sps:$4 sm:$0xff]   ;;  %v14775_v57 = vld [vmem:[%s19134_s1 + $0x1f40] ss:$16 sps:$4 sm:$0xff]   ;;  %v14778_v15 = vld [vmem:[%s19134_s1 + $0x1f48] ss:$16 sps:$4 sm:$0xff]  }
 0x3b0   : > { %8912 = vmatprep.subr.bf16.mxu0 %v14680_v20  ;;  %9034 = vmatprep.subr.bf16.mxu1 %v14683_v21  ;;  %v8186_v20 = vshrl.u32 %v12372_v8, 16  ;;  %v8189_v21 = vshll.u32 %v12372_v8, 16  ;;  %v14784_v8 = vld [vmem:[%s19134_s1 + $0x1f68] ss:$16 sps:$4 sm:$0xff]  }
 0x3b2   : > { %v8188_v35 = vrot.slane %v8186_v20, 2  ;;  %v18560_v20 = vld [vmem:[%s15221_s17 + $0x38] ss:$16 sps:$4 sm:$0xff]  }
 0x3b3   : > { %8913 = vmatpush1.bf16.msra.mxu0 %v14678_v22  ;;  %9035 = vmatpush1.bf16.msra.mxu1 %v14681_v23  ;;  %v8194_v22 = vshrl.u32 %v18410_v31, 16  ;;  %v8197_v23 = vshll.u32 %v18410_v31, 16 }
 0x3b4   : > { %8914 = vmatprep.subr.bf16.mxu0 %v14687_v25  ;;  %9036 = vmatprep.subr.bf16.mxu1 %v14690_v27  ;;  %v14727_v25 = vld [vmem:[%s19134_s1 + $0x1e40] ss:$16 sps:$4 sm:$0xff]   ;;  %v14730_v27 = vld [vmem:[%s19134_s1 + $0x1e48] ss:$16 sps:$4 sm:$0xff]  }
 0x3b7   : > { %8915 = vmatpush1.bf16.msra.mxu0 %v14685_v13  ;;  %9037 = vmatpush1.bf16.msra.mxu1 %v14688_v62  ;;  %v8210_v13 = vsel %vm8133_vm5, %v8149_v3, %v8209_v5  ;;  %v14738_v62 = vld [vmem:[%s19134_s1 + $0x1e6c] ss:$16 sps:$4 sm:$0xff]  }
 0x3b8   : > { %8916 = vmatprep.subr.bf16.mxu0 %v14694_v29  ;;  %9038 = vmatprep.subr.bf16.mxu1 %v14697_v1  ;;  %v8191_v29 = vrot.slane %v8189_v21, 3  ;;  %v8196_v1 = vrot.slane %v8194_v22, 2  ;;  %v14768_v3 = vld [vmem:[%s19134_s1 + $0x1f0c] ss:$16 sps:$4 sm:$0xff]   ;;  %v14797_v22 = vld [vmem:[%s19134_s1 + $0x1fa4] ss:$16 sps:$4 sm:$0xff]  }
 0x3b9   : > { %v7955_v21 = vld [vmem:[%s15221_s17 + $0x68] sm:$0x11] }
 0x3ba   : > { %v8192_v47 = vor.u32 %v8191_v29, %v8188_v35  ;;  %v8180_v35 = vshll.u32 %v18560_v20, 16  ;;  %v14803_v29 = vld [vmem:[%s19134_s1 + $0x1fc4] ss:$16 sps:$4 sm:$0xff]  }
 0x3bb   : > { %8917 = vmatpush1.bf16.msra.mxu0 %v14692_v24  ;;  %9039 = vmatpush1.bf16.msra.mxu1 %v14695_v43  ;;  %v8199_v24 = vrot.slane %v8197_v23, 3  ;;  %v14736_v43 = vld [vmem:[%s19134_s1 + $0x1e68] ss:$16 sps:$4 sm:$0xff]   ;;  %v14800_v23 = vld [vmem:[%s19134_s1 + $0x1fac] ss:$16 sps:$4 sm:$0xff]  }
 0x3bc   : > { %8918 = vmatprep.subr.bf16.mxu0 %v14700_v50  ;;  %9040 = vmatprep.subr.bf16.mxu1 %v14703_v55  ;;  %v14739_v55 = vld [vmem:[%s19134_s1 + $0x1e80] ss:$16 sps:$4 sm:$0xff]  }
 0x3bd   : > { %v18451_v50 = vor.u32 %v8199_v24, %v8196_v1  ;;  %v14806_v1 = vld [vmem:[%s19134_s1 + $0x1fcc] ss:$16 sps:$4 sm:$0xff]   ;;  %v14801_v24 = vld [vmem:[%s19134_s1 + $0x1fc0] ss:$16 sps:$4 sm:$0xff]  }
 0x3bf   : > { %8919 = vmatpush1.bf16.msra.mxu0 %v14698_v59  ;;  %9041 = vmatpush1.bf16.msra.mxu1 %v14701_v58  ;;  %v14742_v59 = vld [vmem:[%s19134_s1 + $0x1e88] ss:$16 sps:$4 sm:$0xff]   ;;  %v8201_v53 = vsel %vm8133_vm5, %v8192_v47, %v18451_v50  ;;  %v14745_v58 = vld [vmem:[%s19134_s1 + $0x1ea0] ss:$16 sps:$4 sm:$0xff]  }
 0x3c0   : > { %8920 = vmatprep.subr.bf16.mxu0 %v14706_v49  ;;  %9042 = vmatprep.subr.bf16.mxu1 %v14709_v54  ;;  %v14751_v49 = vld [vmem:[%s19134_s1 + $0x1ec0] ss:$16 sps:$4 sm:$0xff]   ;;  %v14754_v54 = vld [vmem:[%s19134_s1 + $0x1ec8] ss:$16 sps:$4 sm:$0xff]  }
 0x3c3   : > { %8921 = vmatpush1.bf16.msra.mxu0 %v14704_v45  ;;  %9043 = vmatpush1.bf16.msra.mxu1 %v14707_v7  ;;  %v14757_v45 = vld [vmem:[%s19134_s1 + $0x1ee0] ss:$16 sps:$4 sm:$0xff]   ;;  %v14760_v7 = vld [vmem:[%s19134_s1 + $0x1ee8] ss:$16 sps:$4 sm:$0xff]  }
 0x3c4   : > { %8951 = vmatprep.subr.bf16.mxu0 %v14717_v42  ;;  %9073 = vmatprep.subr.bf16.mxu1 %v14720_v10  ;;  %v14771_v42 = vld [vmem:[%s19134_s1 + $0x1f24] ss:$16 sps:$4 sm:$0xff]   ;;  %v14774_v10 = vld [vmem:[%s19134_s1 + $0x1f2c] ss:$16 sps:$4 sm:$0xff]  }
 0x3c6   : > { %8923 = vmatmul.mubr.bf16.vlgmr.msra.gmra.mrb[0].mxu0 %v8150_v14  ;;  %9045 = vmatmul.mubr.bf16.vlgmr.msra.gmra.mrb[0].mxu1 %v8150_v14  ;;  %v14780_v14 = vld [vmem:[%s19134_s1 + $0x1f4c] ss:$16 sps:$4 sm:$0xff]  }
 0x3c7   : > { %8952 = vmatpush1.bf16.msra.mxu0 %v14715_v11  ;;  %9074 = vmatpush1.bf16.msra.mxu1 %v14718_v12  ;;  %v14769_v11 = vld [vmem:[%s19134_s1 + $0x1f20] ss:$16 sps:$4 sm:$0xff]   ;;  %v14772_v12 = vld [vmem:[%s19134_s1 + $0x1f28] ss:$16 sps:$4 sm:$0xff]  }
 0x3c8   : > { %8953 = vmatprep.subr.bf16.mxu0 %v14723_v56  ;;  %9075 = vmatprep.subr.bf16.mxu1 %v14726_v0  ;;  %v14783_v56 = vld [vmem:[%s19134_s1 + $0x1f64] ss:$16 sps:$4 sm:$0xff]   ;;  %v14786_v0 = vld [vmem:[%s19134_s1 + $0x1f6c] ss:$16 sps:$4 sm:$0xff]  }
 0x3c9   : > { %8932 = vmatprep.mubr.bf16.mxu0 %v8219_v18  ;;  %9054 = vmatprep.mubr.bf16.mxu1 %v8219_v18  ;;  %v14781_v18 = vld [vmem:[%s19134_s1 + $0x1f60] ss:$16 sps:$4 sm:$0xff]  }
 0x3cb   : > { %8954 = vmatpush1.bf16.msra.mxu0 %v14721_v32  ;;  %9076 = vmatpush1.bf16.msra.mxu1 %v14724_v19  ;;  %v14790_v32 = vld [vmem:[%s19134_s1 + $0x1f84] ss:$16 sps:$4 sm:$0xff]   ;;  %v14793_v19 = vld [vmem:[%s19134_s1 + $0x1f8c] ss:$16 sps:$4 sm:$0xff]  }
 0x3cc   : > { %8955 = vmatprep.subr.bf16.mxu0 %v14729_v51  ;;  %9077 = vmatprep.subr.bf16.mxu1 %v14732_v48  ;;  %v12371_v51 = vcombine.low %v18394_v16, %v18397_v36  ;;  %v14791_v48 = vld [vmem:[%s19134_s1 + $0x1f88] ss:$16 sps:$4 sm:$0xff]   ;;  %v14795_v16 = vld [vmem:[%s19134_s1 + $0x1fa0] ss:$16 sps:$4 sm:$0xff]  }
 0x3ce   : > { %8933 = vmatmul.mubr.bf16.gmra.mrb[4].mxu0 %v8210_v13  ;;  %9055 = vmatmul.mubr.bf16.gmra.mrb[4].mxu1 %v8210_v13  ;;  %v14798_v13 = vld [vmem:[%s19134_s1 + $0x1fa8] ss:$16 sps:$4 sm:$0xff]  }
 0x3cf   : > { %8956 = vmatpush1.bf16.msra.mxu0 %v14727_v25  ;;  %9078 = vmatpush1.bf16.msra.mxu1 %v14730_v27  ;;  %v8169_v25 = vshrl.u32 %v12371_v51, 16  ;;  %v18573_v27 = vcombine.high %v18129_v17, %v7955_v21 }
 0x3d0   : > { %8957 = vmatprep.subr.bf16.mxu0 %v14735_v28  ;;  %9079 = vmatprep.subr.bf16.mxu1 %v14738_v62  ;;  %v8172_v28 = vshll.u32 %v12371_v51, 16  ;;  %v8177_v62 = vshrl.u32 %v18560_v20, 16  ;;  %v14836_v51 = vld [vmem:[%s19134_s1 + $0x2060] ss:$16 sps:$4 sm:$0xff]  }
 0x3d1   : > { %8942 = vmatprep.mubr.bf16.mxu0 %v8218_v4  ;;  %9064 = vmatprep.mubr.bf16.mxu1 %v8218_v4  ;;  %v14777_v4 = vld [vmem:[%s19134_s1 + $0x1f44] ss:$16 sps:$4 sm:$0xff]  }
 0x3d2   : > { %v8174_v47 = vrot.slane %v8172_v28, 3  ;;  %v14850_v28 = vld [vmem:[%s19134_s1 + $0x20a4] ss:$16 sps:$4 sm:$0xff]  }
 0x3d3   : > { %8958 = vmatpush1.bf16.msra.mxu0 %v14733_v37  ;;  %9080 = vmatpush1.bf16.msra.mxu1 %v14736_v43  ;;  %v8171_v37 = vrot.slane %v8169_v25, 2  ;;  %v8230_v43 = vshrl.u32 %v18573_v27, 16  ;;  %v14842_v25 = vld [vmem:[%s19134_s1 + $0x2080] ss:$16 sps:$4 sm:$0xff]  }
 0x3d4   : > { %8959 = vmatprep.subr.bf16.mxu0 %v14741_v44  ;;  %9081 = vmatprep.subr.bf16.mxu1 %v14744_v38  ;;  %v8233_v44 = vshll.u32 %v18573_v27, 16  ;;  %v14804_v38 = vld [vmem:[%s19134_s1 + $0x1fc8] ss:$16 sps:$4 sm:$0xff]  }
 0x3d6   : > { %8943 = vmatmul.mubr.bf16.gmra.mrb[8].mxu0 %v8209_v5  ;;  %9065 = vmatmul.mubr.bf16.gmra.mrb[8].mxu1 %v8209_v5  ;;  %v14788_v5 = vld [vmem:[%s19134_s1 + $0x1f80] ss:$16 sps:$4 sm:$0xff]  }
 0x3d7   : > { %8960 = vmatpush1.bf16.msra.mxu0 %v14739_v55  ;;  %9082 = vmatpush1.bf16.msra.mxu1 %v14742_v59  ;;  %v8179_v55 = vrot.slane %v8177_v62, 2  ;;  %v8182_v59 = vrot.slane %v8180_v35, 3  ;;  %v14853_v62 = vld [vmem:[%s19134_s1 + $0x20ac] ss:$16 sps:$4 sm:$0xff]  }
 0x3d8   : > { %8961 = vmatprep.subr.bf16.mxu0 %v14747_v60  ;;  %9083 = vmatprep.subr.bf16.mxu1 %v14750_v61  ;;  %v18595_v60 = vcombine.low %v18129_v17, %v7955_v21  ;;  %v14809_v61 = vld [vmem:[%s19134_s1 + $0x1fe4] ss:$16 sps:$4 sm:$0xff]   ;;  %v14810_v17 = vld [vmem:[%s19134_s1 + $0x1fe8] ss:$16 sps:$4 sm:$0xff]  }
 0x3d9   : > { %8983 = vmatprep.mubr.bf16.mxu0 %v8201_v53  ;;  %9105 = vmatprep.mubr.bf16.mxu1 %v8201_v53  ;;  %v14812_v53 = vld [vmem:[%s19134_s1 + $0x1fec] ss:$16 sps:$4 sm:$0xff]   ;;  %v14844_v21 = vld [vmem:[%s19134_s1 + $0x2084] ss:$16 sps:$4 sm:$0xff]  }
 0x3db   : > { %8962 = vmatpush1.bf16.msra.mxu0 %v14745_v58  ;;  %9084 = vmatpush1.bf16.msra.mxu1 %v14748_v52  ;;  %v8232_v58 = vrot.slane %v8230_v43, 2  ;;  %v8235_v52 = vrot.slane %v8233_v44, 3  ;;  %v15040_v43 = vmov 0   ;;  %v10335_v44 = vld [vmem:[%s19137_s4] sm:$0xff] }
 0x3dc   : > { %8963 = vmatprep.subr.bf16.mxu0 %v14753_v63  ;;  %9085 = vmatprep.subr.bf16.mxu1 %v14756_v2  ;;  %v14807_v63 = vld [vmem:[%s19134_s1 + $0x1fe0] ss:$16 sps:$4 sm:$0xff]   ;;  %v8175_v2 = vor.u32 %v8174_v47, %v8171_v37  ;;  %v14859_v37 = vld [vmem:[%s19134_s1 + $0x20cc] ss:$16 sps:$4 sm:$0xff]  }
 0x3dd   : > { %13210 = vset.pattern.permute.xlu0 %v15040_v43  ;;  %13211 = vset.pattern.permute.xlu1 %v15040_v43  ;;  %v14854_v47 = vld [vmem:[%s19134_s1 + $0x20c0] ss:$16 sps:$4 sm:$0xff]  }
 0x3de   : > { %10342 = vperm.xlu0 %13210, %v10335_v44   ;;  %v14924_v43 = vld [vmem:[%s19134_s1 + $0x2220] ss:$16 sps:$4 sm:$0xff]   ;;  %v14927_v44 = vld [vmem:[%s19134_s1 + $0x2228] ss:$16 sps:$4 sm:$0xff]  }
 0x3df   : > { %8964 = vmatpush1.bf16.msra.mxu0 %v14751_v49  ;;  %9086 = vmatpush1.bf16.msra.mxu1 %v14754_v54  ;;  %v8183_v49 = vor.u32 %v8182_v59, %v8179_v55  ;;  %v8221_v54 = vshrl.u32 %v18595_v60, 16  ;;  %v14857_v55 = vld [vmem:[%s19134_s1 + $0x20c8] ss:$16 sps:$4 sm:$0xff]   ;;  %v14862_v59 = vld [vmem:[%s19134_s1 + $0x20e4] ss:$16 sps:$4 sm:$0xff]  }
 0x3e0   : > { %8965 = vmatprep.subr.bf16.mxu0 %v14759_v6  ;;  %9087 = vmatprep.subr.bf16.mxu1 %v14762_v39  ;;  %v8224_v6 = vshll.u32 %v18595_v60, 16  ;;  %v14820_v39 = vld [vmem:[%s19134_s1 + $0x2004] ss:$16 sps:$4 sm:$0xff]  }
 0x3e3   : > { %8966 = vmatpush1.bf16.msra.mxu0 %v14757_v45  ;;  %9088 = vmatpush1.bf16.msra.mxu1 %v14760_v7  ;;  %v14823_v45 = vld [vmem:[%s19134_s1 + $0x200c] ss:$16 sps:$4 sm:$0xff]   ;;  %v8236_v7 = vor.u32 %v8235_v52, %v8232_v58  ;;  %v14860_v52 = vld [vmem:[%s19134_s1 + $0x20e0] ss:$16 sps:$4 sm:$0xff]  }
 0x3e4   : > { %8967 = vmatprep.subr.bf16.mxu0 %v14765_v34  ;;  %9089 = vmatprep.subr.bf16.mxu1 %v14768_v3  ;;  %v14818_v34 = vld [vmem:[%s19134_s1 + $0x2000] ss:$16 sps:$4 sm:$0xff]   ;;  %v14821_v3 = vld [vmem:[%s19134_s1 + $0x2008] ss:$16 sps:$4 sm:$0xff]  }
 0x3e5   : > { %v10338_v58 = vld [vmem:[%s19137_s4 + $0x18] sm:$0xff] }
 0x3e7   : > { %8968 = vmatpush1.bf16.msra.mxu0 %v14763_v46  ;;  %9090 = vmatpush1.bf16.msra.mxu1 %v14766_v9  ;;  %v8184_v46 = vsel %vm8133_vm5, %v8175_v2, %v8183_v49  ;;  %v8223_v9 = vrot.slane %v8221_v54, 2  ;;  %v14871_v2 = vld [vmem:[%s19134_s1 + $0x210c] ss:$16 sps:$4 sm:$0xff]   ;;  %v14866_v54 = vld [vmem:[%s19134_s1 + $0x2100] ss:$16 sps:$4 sm:$0xff]  }
 0x3e8   : > { %8969 = vmatprep.subr.bf16.mxu0 %v14771_v42  ;;  %9091 = vmatprep.subr.bf16.mxu1 %v14774_v10  ;;  %v8226_v42 = vrot.slane %v8224_v6, 3  ;;  %v14826_v10 = vld [vmem:[%s19134_s1 + $0x2024] ss:$16 sps:$4 sm:$0xff]   ;;  %v14869_v6 = vld [vmem:[%s19134_s1 + $0x2108] ss:$16 sps:$4 sm:$0xff]  }
 0x3eb   : > { %8970 = vmatpush1.bf16.msra.mxu0 %v14769_v11  ;;  %9092 = vmatpush1.bf16.msra.mxu1 %v14772_v12  ;;  %v14829_v11 = vld [vmem:[%s19134_s1 + $0x202c] ss:$16 sps:$4 sm:$0xff]   ;;  %v8237_v12 = vsel %vm8133_vm5, %v18451_v50, %v8236_v7 }
 0x3ec   : > { %8971 = vmatprep.subr.bf16.mxu0 %v14777_v4  ;;  %9093 = vmatprep.subr.bf16.mxu1 %v14780_v14  ;;  %v14824_v4 = vld [vmem:[%s19134_s1 + $0x2020] ss:$16 sps:$4 sm:$0xff]   ;;  %v14827_v14 = vld [vmem:[%s19134_s1 + $0x2028] ss:$16 sps:$4 sm:$0xff]   ;;  %v14835_v50 = vld [vmem:[%s19134_s1 + $0x204c] ss:$16 sps:$4 sm:$0xff]  }
 0x3ef   : > { %8972 = vmatpush1.bf16.msra.mxu0 %v14775_v57  ;;  %9094 = vmatpush1.bf16.msra.mxu1 %v14778_v15  ;;  %v8227_v57 = vor.u32 %v8226_v42, %v8223_v9  ;;  %v14832_v15 = vld [vmem:[%s19134_s1 + $0x2044] ss:$16 sps:$4 sm:$0xff]   ;;  %v14878_v9 = vld [vmem:[%s19134_s1 + $0x2140] ss:$16 sps:$4 sm:$0xff]   ;;  %v14881_v42 = vld [vmem:[%s19134_s1 + $0x2148] ss:$16 sps:$4 sm:$0xff]  }
 0x3f0   : > { %8973 = vmatprep.subr.bf16.mxu0 %v14783_v56  ;;  %9095 = vmatprep.subr.bf16.mxu1 %v14786_v0  ;;  %v14830_v56 = vld [vmem:[%s19134_s1 + $0x2040] ss:$16 sps:$4 sm:$0xff]   ;;  %v14833_v0 = vld [vmem:[%s19134_s1 + $0x2048] ss:$16 sps:$4 sm:$0xff]  }
 0x3f3   : > { %8974 = vmatpush1.bf16.msra.mxu0 %v14781_v18  ;;  %9096 = vmatpush1.bf16.msra.mxu1 %v14784_v8  ;;  %v8228_v18 = vsel %vm8133_vm5, %v8183_v49, %v8227_v57  ;;  %v18652_v8 = vld [vmem:[%s15221_s17 + $0x10] sm:$0x88]  ;;  %v10339_v49 = vld [vmem:[%s19137_s4 + $0x20] sm:$0xf] }
 0x3f4   : > { %8975 = vmatprep.subr.bf16.mxu0 %v14790_v32  ;;  %9097 = vmatprep.subr.bf16.mxu1 %v14793_v19  ;;  %v14838_v32 = vld [vmem:[%s19134_s1 + $0x2064] ss:$16 sps:$4 sm:$0xff]   ;;  %v14841_v19 = vld [vmem:[%s19134_s1 + $0x206c] ss:$16 sps:$4 sm:$0xff]  }
 0x3f7   : > { %8976 = vmatpush1.bf16.msra.mxu0 %v14788_v5  ;;  %9098 = vmatpush1.bf16.msra.mxu1 %v14791_v48  ;;  %v12638_v5 = vcombine.high %v18652_v8, %v18165_v26  ;;  %v14839_v48 = vld [vmem:[%s19134_s1 + $0x2068] ss:$16 sps:$4 sm:$0xff]  }
 0x3f8   : > { %8977 = vmatprep.subr.bf16.mxu0 %v14797_v22  ;;  %9099 = vmatprep.subr.bf16.mxu1 %v14800_v23  ;;  %v14847_v22 = vld [vmem:[%s19134_s1 + $0x208c] ss:$16 sps:$4 sm:$0xff]  }
 0x3f9   : > { %v9298_v23 = vrot.slane %v12638_v5, 3  ;;  %v14909_v5 = vld [vmem:[%s19134_s1 + $0x21cc] ss:$16 sps:$4 sm:$0xff]  }
 0x3fb   : > { %8978 = vmatpush1.bf16.msra.mxu0 %v14795_v16  ;;  %9100 = vmatpush1.bf16.msra.mxu1 %v14798_v13  ;;  %v9299_v16 = vrot.slane %v18179_v30, 3  ;;  %v14845_v13 = vld [vmem:[%s19134_s1 + $0x2088] ss:$16 sps:$4 sm:$0xff]   ;;  %v14932_v30 = vld [vmem:[%s19134_s1 + $0x2244] ss:$16 sps:$4 sm:$0xff]  }
 0x3fc   : > { %8979 = vmatprep.subr.bf16.mxu0 %v14803_v29  ;;  %9101 = vmatprep.subr.bf16.mxu1 %v14806_v1  ;;  %v14848_v29 = vld [vmem:[%s19134_s1 + $0x20a0] ss:$16 sps:$4 sm:$0xff]   ;;  %v14851_v1 = vld [vmem:[%s19134_s1 + $0x20a8] ss:$16 sps:$4 sm:$0xff]  }
 0x3fd   : > { %v9300_v35 = vsel %vm3698_vm2, %v9298_v23, %v9299_v16  ;;  %v14915_v23 = vld [vmem:[%s19134_s1 + $0x21ec] ss:$16 sps:$4 sm:$0xff]  }
 0x3ff   : > { %8980 = vmatpush1.bf16.msra.mxu0 %v14801_v24  ;;  %9102 = vmatpush1.bf16.msra.mxu1 %v14804_v38  ;;  %v14856_v24 = vld [vmem:[%s19134_s1 + $0x20c4] ss:$16 sps:$4 sm:$0xff]  }
 0x400   : > { %8981 = vmatprep.subr.bf16.mxu0 %v14809_v61  ;;  %9103 = vmatprep.subr.bf16.mxu1 %v14812_v53  ;;  %v10337_v38 = vld [vmem:[%s19137_s4 + $0x10] sm:$0xff]  ;;  %v14865_v61 = vld [vmem:[%s19134_s1 + $0x20ec] ss:$16 sps:$4 sm:$0xff]  }
 0x401   : > { %10352 = vperm.xlu1 %13211, %v10337_v38   ;;  %v10336_v53 = vld [vmem:[%s19137_s4 + $0x8] sm:$0xff]  ;;  %v9307_v38 = vrot.slane %v18364_v41, 3 }
 0x402   : > { %10347 = vperm.xlu0 %13210, %v10336_v53   ;;  %v14933_v41 = vld [vmem:[%s19134_s1 + $0x2248] ss:$16 sps:$4 sm:$0xff]   ;;  %v14941_v53 = vld [vmem:[%s19134_s1 + $0x226c] ss:$16 sps:$4 sm:$0xff]  }
 0x403   : > { %8982 = vmatpush1.bf16.msra.mxu0 %v14807_v63  ;;  %9104 = vmatpush1.bf16.msra.mxu1 %v14810_v17  ;;  %v14863_v63 = vld [vmem:[%s19134_s1 + $0x20e8] ss:$16 sps:$4 sm:$0xff]   ;;  %v14868_v17 = vld [vmem:[%s19134_s1 + $0x2104] ss:$16 sps:$4 sm:$0xff]  }
 0x404   : > { %9967 = vmatprep.subr.bf16.mxu0 %v14820_v39  ;;  %10089 = vmatprep.subr.bf16.mxu1 %v14823_v45  ;;  %v14874_v39 = vld [vmem:[%s19134_s1 + $0x2124] ss:$16 sps:$4 sm:$0xff]   ;;  %v14877_v45 = vld [vmem:[%s19134_s1 + $0x212c] ss:$16 sps:$4 sm:$0xff]  }
 0x405   : > { %10357 = vperm.xlu1 %13211, %v10338_v58  }
 0x406   : > { %8984 = vmatmul.mubr.bf16.vlgmr.msra.gmra.mrb[0].mxu0 %v8184_v46  ;;  %9106 = vmatmul.mubr.bf16.vlgmr.msra.gmra.mrb[0].mxu1 %v8184_v46  ;;  %v14883_v46 = vld [vmem:[%s19134_s1 + $0x214c] ss:$16 sps:$4 sm:$0xff]  }
 0x407   : > { %9968 = vmatpush1.bf16.msra.mxu0 %v14818_v34  ;;  %10090 = vmatpush1.bf16.msra.mxu1 %v14821_v3  ;;  %v14875_v34 = vld [vmem:[%s19134_s1 + $0x2128] ss:$16 sps:$4 sm:$0xff]   ;;  %v14880_v3 = vld [vmem:[%s19134_s1 + $0x2144] ss:$16 sps:$4 sm:$0xff]  }
 0x408   : > { %9969 = vmatprep.subr.bf16.mxu0 %v14826_v10  ;;  %10091 = vmatprep.subr.bf16.mxu1 %v14829_v11  ;;  %v14886_v10 = vld [vmem:[%s19134_s1 + $0x2164] ss:$16 sps:$4 sm:$0xff]   ;;  %v14889_v11 = vld [vmem:[%s19134_s1 + $0x216c] ss:$16 sps:$4 sm:$0xff]  }
 0x409   : > { %8993 = vmatprep.mubr.bf16.mxu0 %v8237_v12  ;;  %9115 = vmatprep.mubr.bf16.mxu1 %v8237_v12  ;;  %v14884_v12 = vld [vmem:[%s19134_s1 + $0x2160] ss:$16 sps:$4 sm:$0xff]  }
 0x40a   : > { %10362 = vperm.xlu0 %13210, %v10339_v49  }
 0x40b   : > { %9970 = vmatpush1.bf16.msra.mxu0 %v14824_v4  ;;  %10092 = vmatpush1.bf16.msra.mxu1 %v14827_v14  ;;  %v14887_v4 = vld [vmem:[%s19134_s1 + $0x2168] ss:$16 sps:$4 sm:$0xff]   ;;  %v14893_v14 = vld [vmem:[%s19134_s1 + $0x2184] ss:$16 sps:$4 sm:$0xff]  }
 0x40c   : > { %9971 = vmatprep.subr.bf16.mxu0 %v14832_v15  ;;  %10093 = vmatprep.subr.bf16.mxu1 %v14835_v50  ;;  %v14891_v15 = vld [vmem:[%s19134_s1 + $0x2180] ss:$16 sps:$4 sm:$0xff]   ;;  %v14894_v50 = vld [vmem:[%s19134_s1 + $0x2188] ss:$16 sps:$4 sm:$0xff]  }
 0x40e   : > { %8994 = vmatmul.mubr.bf16.gmra.mrb[4].mxu0 %v8228_v18  ;;  %9116 = vmatmul.mubr.bf16.gmra.mrb[4].mxu1 %v8228_v18  ;;  %v14898_v18 = vld [vmem:[%s19134_s1 + $0x21a0] ss:$16 sps:$4 sm:$0xff]  }
 0x40f   : > { %9972 = vmatpush1.bf16.msra.mxu0 %v14830_v56  ;;  %10094 = vmatpush1.bf16.msra.mxu1 %v14833_v0  ;;  %v14900_v56 = vld [vmem:[%s19134_s1 + $0x21a4] ss:$16 sps:$4 sm:$0xff]   ;;  %v14903_v0 = vld [vmem:[%s19134_s1 + $0x21ac] ss:$16 sps:$4 sm:$0xff]  }
 0x410   : > { %9973 = vmatprep.subr.bf16.mxu0 %v14838_v32  ;;  %10095 = vmatprep.subr.bf16.mxu1 %v14841_v19  ;;  %v14901_v32 = vld [vmem:[%s19134_s1 + $0x21a8] ss:$16 sps:$4 sm:$0xff]   ;;  %v14906_v19 = vld [vmem:[%s19134_s1 + $0x21c4] ss:$16 sps:$4 sm:$0xff]  }
 0x411   : > { %9003 = vmatprep.mubr.bf16.mxu0 %v8236_v7  ;;  %9125 = vmatprep.mubr.bf16.mxu1 %v8236_v7  ;;  %v14872_v7 = vld [vmem:[%s19134_s1 + $0x2120] ss:$16 sps:$4 sm:$0xff]  }
 0x413   : > { %9974 = vmatpush1.bf16.msra.mxu0 %v14836_v51  ;;  %10096 = vmatpush1.bf16.msra.mxu1 %v14839_v48  ;;  %v14904_v51 = vld [vmem:[%s19134_s1 + $0x21c0] ss:$16 sps:$4 sm:$0xff]   ;;  %v14907_v48 = vld [vmem:[%s19134_s1 + $0x21c8] ss:$16 sps:$4 sm:$0xff]  }
 0x414   : > { %9975 = vmatprep.subr.bf16.mxu0 %v14844_v21  ;;  %10097 = vmatprep.subr.bf16.mxu1 %v14847_v22  ;;  %v12637_v21 = vcombine.low %v18652_v8, %v18165_v26  ;;  %v14912_v22 = vld [vmem:[%s19134_s1 + $0x21e4] ss:$16 sps:$4 sm:$0xff]   ;;  %v14913_v26 = vld [vmem:[%s19134_s1 + $0x21e8] ss:$16 sps:$4 sm:$0xff]  }
 0x416   : > { %9004 = vmatmul.mubr.bf16.gmra.mrb[8].mxu0 %v8227_v57  ;;  %9126 = vmatmul.mubr.bf16.gmra.mrb[8].mxu1 %v8227_v57  ;;  %v14896_v57 = vld [vmem:[%s19134_s1 + $0x218c] ss:$16 sps:$4 sm:$0xff]   ;;  %v9295_v8 = vrot.slane %v12637_v21, 3  ;;  %v14978_v21 = vld [vmem:[%s19134_s1 + $0x2340] ss:$16 sps:$4 sm:$0xff]  }
 0x417   : > { %9976 = vmatpush1.bf16.msra.mxu0 %v14842_v25  ;;  %10098 = vmatpush1.bf16.msra.mxu1 %v14845_v13  ;;  %v14910_v25 = vld [vmem:[%s19134_s1 + $0x21e0] ss:$16 sps:$4 sm:$0xff]   ;;  %v9296_v13 = vrot.slane %v18329_v33, 3  ;;  %v14921_v33 = vld [vmem:[%s19134_s1 + $0x2208] ss:$16 sps:$4 sm:$0xff]  }
 0x418   : > { %9977 = vmatprep.subr.bf16.mxu0 %v14850_v28  ;;  %10099 = vmatprep.subr.bf16.mxu1 %v14853_v62  ;;  %v14920_v28 = vld [vmem:[%s19134_s1 + $0x2204] ss:$16 sps:$4 sm:$0xff]   ;;  %v14923_v62 = vld [vmem:[%s19134_s1 + $0x220c] ss:$16 sps:$4 sm:$0xff]  }
 0x419   : > { %9999 = vmatprep.mubr.bf16.mxu0 %v9300_v35  ;;  %10121 = vmatprep.mubr.bf16.mxu1 %v9300_v35  ;;  %v9309_v35 = vrot.slane %v18342_v40, 3  ;;  %v14929_v40 = vld [vmem:[%s19134_s1 + $0x222c] ss:$16 sps:$4 sm:$0xff]  }
 0x41b   : > { %9978 = vmatpush1.bf16.msra.mxu0 %v14848_v29  ;;  %10100 = vmatpush1.bf16.msra.mxu1 %v14851_v1  ;;  %v14918_v29 = vld [vmem:[%s19134_s1 + $0x2200] ss:$16 sps:$4 sm:$0xff]   ;;  %v9297_v1 = vsel %vm3698_vm2, %v9295_v8, %v9296_v13  ;;  %v14987_v8 = vld [vmem:[%s19134_s1 + $0x2368] ss:$16 sps:$4 sm:$0xff]  }
 0x41c   : > { %9979 = vmatprep.subr.bf16.mxu0 %v14856_v24  ;;  %10101 = vmatprep.subr.bf16.mxu1 %v14859_v37  ;;  %v14926_v24 = vld [vmem:[%s19134_s1 + $0x2224] ss:$16 sps:$4 sm:$0xff]   ;;  %v9310_v37 = vsel %vm3698_vm2, %v9299_v16, %v9309_v35  ;;  %v14935_v16 = vld [vmem:[%s19134_s1 + $0x224c] ss:$16 sps:$4 sm:$0xff]  }
 0x41f   : > { %9980 = vmatpush1.bf16.msra.mxu0 %v14854_v47  ;;  %10102 = vmatpush1.bf16.msra.mxu1 %v14857_v55  ;;  %v14930_v47 = vld [vmem:[%s19134_s1 + $0x2240] ss:$16 sps:$4 sm:$0xff]   ;;  %v9308_v55 = vsel %vm3698_vm2, %v9296_v13, %v9307_v38  ;;  %v14992_v13 = vld [vmem:[%s19134_s1 + $0x2384] ss:$16 sps:$4 sm:$0xff]  }
 0x420   : > { %9981 = vmatprep.subr.bf16.mxu0 %v14862_v59  ;;  %10103 = vmatprep.subr.bf16.mxu1 %v14865_v61  ;;  %v18878_v59 = vld [vmem:[%s15221_s17 + $0x18] sm:$0x88]  ;;  %v14938_v61 = vld [vmem:[%s19134_s1 + $0x2264] ss:$16 sps:$4 sm:$0xff]  }
 0x421   : > { %v12640_v58 = vcombine.high %v18878_v59, %v18397_v36 }
 0x423   : > { %9982 = vmatpush1.bf16.msra.mxu0 %v14860_v52  ;;  %10104 = vmatpush1.bf16.msra.mxu1 %v14863_v63  ;;  %v14936_v52 = vld [vmem:[%s19134_s1 + $0x2260] ss:$16 sps:$4 sm:$0xff]   ;;  %v14939_v63 = vld [vmem:[%s19134_s1 + $0x2268] ss:$16 sps:$4 sm:$0xff]   ;;  %v9304_v49 = vrot.slane %v12640_v58, 3  ;;  %v9311_v58 = vrot.slane %v18595_v60, 3 }
 0x424   : > { %9983 = vmatprep.subr.bf16.mxu0 %v14868_v17  ;;  %10105 = vmatprep.subr.bf16.mxu1 %v14871_v2  ;;  %v14944_v17 = vld [vmem:[%s19134_s1 + $0x2284] ss:$16 sps:$4 sm:$0xff]   ;;  %v14947_v2 = vld [vmem:[%s19134_s1 + $0x228c] ss:$16 sps:$4 sm:$0xff]   ;;  %v10273_v60 = vld [vmem:[%s19136_s3] sm:$0xf] }
 0x427   : > { %9984 = vmatpush1.bf16.msra.mxu0 %v14866_v54  ;;  %10106 = vmatpush1.bf16.msra.mxu1 %v14869_v6  ;;  %v9305_v54 = vrot.slane %v18410_v31, 3  ;;  %v14942_v6 = vld [vmem:[%s19134_s1 + $0x2280] ss:$16 sps:$4 sm:$0xff]  }
 0x428   : > { %9985 = vmatprep.subr.bf16.mxu0 %v14874_v39  ;;  %10107 = vmatprep.subr.bf16.mxu1 %v14877_v45  ;;  %v14945_v39 = vld [vmem:[%s19134_s1 + $0x2288] ss:$16 sps:$4 sm:$0xff]   ;;  %v14950_v45 = vld [vmem:[%s19134_s1 + $0x22a4] ss:$16 sps:$4 sm:$0xff]  }
 0x42b   : > { %9986 = vmatpush1.bf16.msra.mxu0 %v14872_v7  ;;  %10108 = vmatpush1.bf16.msra.mxu1 %v14875_v34  ;;  %v14953_v7 = vld [vmem:[%s19134_s1 + $0x22ac] ss:$16 sps:$4 sm:$0xff]   ;;  %v9306_v34 = vsel %vm3698_vm2, %v9304_v49, %v9305_v54 }
 0x42c   : > { %9987 = vmatprep.subr.bf16.mxu0 %v14880_v3  ;;  %10109 = vmatprep.subr.bf16.mxu1 %v14883_v46  ;;  %v14948_v3 = vld [vmem:[%s19134_s1 + $0x22a0] ss:$16 sps:$4 sm:$0xff]   ;;  %v14951_v46 = vld [vmem:[%s19134_s1 + $0x22a8] ss:$16 sps:$4 sm:$0xff]  }
 0x42f   : > { %9988 = vmatpush1.bf16.msra.mxu0 %v14878_v9  ;;  %10110 = vmatpush1.bf16.msra.mxu1 %v14881_v42  ;;  %v14956_v9 = vld [vmem:[%s19134_s1 + $0x22c4] ss:$16 sps:$4 sm:$0xff]   ;;  %v14959_v42 = vld [vmem:[%s19134_s1 + $0x22cc] ss:$16 sps:$4 sm:$0xff]  }
 0x430   : > { %9989 = vmatprep.subr.bf16.mxu0 %v14886_v10  ;;  %10111 = vmatprep.subr.bf16.mxu1 %v14889_v11  ;;  %v14954_v10 = vld [vmem:[%s19134_s1 + $0x22c0] ss:$16 sps:$4 sm:$0xff]   ;;  %v14957_v11 = vld [vmem:[%s19134_s1 + $0x22c8] ss:$16 sps:$4 sm:$0xff]  }
 0x433   : > { %9990 = vmatpush1.bf16.msra.mxu0 %v14884_v12  ;;  %10112 = vmatpush1.bf16.msra.mxu1 %v14887_v4  ;;  %v14962_v12 = vld [vmem:[%s19134_s1 + $0x22e4] ss:$16 sps:$4 sm:$0xff]   ;;  %v14965_v4 = vld [vmem:[%s19134_s1 + $0x22ec] ss:$16 sps:$4 sm:$0xff]  }
 0x434   : > { %9991 = vmatprep.subr.bf16.mxu0 %v14893_v14  ;;  %10113 = vmatprep.subr.bf16.mxu1 %v14896_v57  ;;  %v14960_v14 = vld [vmem:[%s19134_s1 + $0x22e0] ss:$16 sps:$4 sm:$0xff]   ;;  %v14963_v57 = vld [vmem:[%s19134_s1 + $0x22e8] ss:$16 sps:$4 sm:$0xff]  }
 0x437   : > { %9992 = vmatpush1.bf16.msra.mxu0 %v14891_v15  ;;  %10114 = vmatpush1.bf16.msra.mxu1 %v14894_v50  ;;  %v14968_v15 = vld [vmem:[%s19134_s1 + $0x2304] ss:$16 sps:$4 sm:$0xff]   ;;  %v14971_v50 = vld [vmem:[%s19134_s1 + $0x230c] ss:$16 sps:$4 sm:$0xff]  }
 0x438   : > { %9993 = vmatprep.subr.bf16.mxu0 %v14900_v56  ;;  %10115 = vmatprep.subr.bf16.mxu1 %v14903_v0  ;;  %v14966_v56 = vld [vmem:[%s19134_s1 + $0x2300] ss:$16 sps:$4 sm:$0xff]   ;;  %v14969_v0 = vld [vmem:[%s19134_s1 + $0x2308] ss:$16 sps:$4 sm:$0xff]  }
 0x43b   : > { %9994 = vmatpush1.bf16.msra.mxu0 %v14898_v18  ;;  %10116 = vmatpush1.bf16.msra.mxu1 %v14901_v32  ;;  %v14974_v18 = vld [vmem:[%s19134_s1 + $0x2324] ss:$16 sps:$4 sm:$0xff]   ;;  %v14977_v32 = vld [vmem:[%s19134_s1 + $0x232c] ss:$16 sps:$4 sm:$0xff]  }
 0x43c   : > { %9995 = vmatprep.subr.bf16.mxu0 %v14906_v19  ;;  %10117 = vmatprep.subr.bf16.mxu1 %v14909_v5  ;;  %v14972_v19 = vld [vmem:[%s19134_s1 + $0x2320] ss:$16 sps:$4 sm:$0xff]   ;;  %v14975_v5 = vld [vmem:[%s19134_s1 + $0x2328] ss:$16 sps:$4 sm:$0xff]  }
 0x43f   : > { %9996 = vmatpush1.bf16.msra.mxu0 %v14904_v51  ;;  %10118 = vmatpush1.bf16.msra.mxu1 %v14907_v48  ;;  %v14980_v51 = vld [vmem:[%s19134_s1 + $0x2344] ss:$16 sps:$4 sm:$0xff]   ;;  %v14983_v48 = vld [vmem:[%s19134_s1 + $0x234c] ss:$16 sps:$4 sm:$0xff]  }
 0x440   : > { %9997 = vmatprep.subr.bf16.mxu0 %v14912_v22  ;;  %10119 = vmatprep.subr.bf16.mxu1 %v14915_v23  ;;  %v14981_v22 = vld [vmem:[%s19134_s1 + $0x2348] ss:$16 sps:$4 sm:$0xff]   ;;  %v14986_v23 = vld [vmem:[%s19134_s1 + $0x2364] ss:$16 sps:$4 sm:$0xff]  }
 0x443   : > { %9998 = vmatpush1.bf16.msra.mxu0 %v14910_v25  ;;  %10120 = vmatpush1.bf16.msra.mxu1 %v14913_v26  ;;  %v14989_v25 = vld [vmem:[%s19134_s1 + $0x236c] ss:$16 sps:$4 sm:$0xff]   ;;  %v14984_v26 = vld [vmem:[%s19134_s1 + $0x2360] ss:$16 sps:$4 sm:$0xff]  }
 0x444   : > { %10028 = vmatprep.subr.bf16.mxu0 %v14920_v28  ;;  %10150 = vmatprep.subr.bf16.mxu1 %v14923_v62  ;;  %v14995_v28 = vld [vmem:[%s19134_s1 + $0x238c] ss:$16 sps:$4 sm:$0xff]   ;;  %v14990_v62 = vld [vmem:[%s19134_s1 + $0x2380] ss:$16 sps:$4 sm:$0xff]  }
 0x446   : > { %10000 = vmatmul.mubr.bf16.vlgmr.msra.gmra.mrb[0].mxu0 %v9297_v1  ;;  %10122 = vmatmul.mubr.bf16.vlgmr.msra.gmra.mrb[0].mxu1 %v9297_v1  ;;  %v14996_v1 = vld [vmem:[%s19134_s1 + $0x23a0] ss:$16 sps:$4 sm:$0xff]  }
 0x447   : > { %10029 = vmatpush1.bf16.msra.mxu0 %v14918_v29  ;;  %10151 = vmatpush1.bf16.msra.mxu1 %v14921_v33  ;;  %v14998_v29 = vld [vmem:[%s19134_s1 + $0x23a4] ss:$16 sps:$4 sm:$0xff]   ;;  %v15001_v33 = vld [vmem:[%s19134_s1 + $0x23ac] ss:$16 sps:$4 sm:$0xff]  }
 0x448   : > { %10030 = vmatprep.subr.bf16.mxu0 %v14926_v24  ;;  %10152 = vmatprep.subr.bf16.mxu1 %v14929_v40  ;;  %v14999_v24 = vld [vmem:[%s19134_s1 + $0x23a8] ss:$16 sps:$4 sm:$0xff]   ;;  %v15004_v40 = vld [vmem:[%s19134_s1 + $0x23c4] ss:$16 sps:$4 sm:$0xff]  }
 0x449   : > { %10009 = vmatprep.mubr.bf16.mxu0 %v9310_v37  ;;  %10131 = vmatprep.mubr.bf16.mxu1 %v9310_v37  ;;  %v15007_v37 = vld [vmem:[%s19134_s1 + $0x23cc] ss:$16 sps:$4 sm:$0xff]  }
 0x44b   : > { %10031 = vmatpush1.bf16.msra.mxu0 %v14924_v43  ;;  %10153 = vmatpush1.bf16.msra.mxu1 %v14927_v44  ;;  %v15002_v43 = vld [vmem:[%s19134_s1 + $0x23c0] ss:$16 sps:$4 sm:$0xff]   ;;  %v15005_v44 = vld [vmem:[%s19134_s1 + $0x23c8] ss:$16 sps:$4 sm:$0xff]  }
 0x44c   : > { %10032 = vmatprep.subr.bf16.mxu0 %v14932_v30  ;;  %10154 = vmatprep.subr.bf16.mxu1 %v14935_v16  ;;  %v15010_v30 = vld [vmem:[%s19134_s1 + $0x23e4] ss:$16 sps:$4 sm:$0xff]   ;;  %v15013_v16 = vld [vmem:[%s19134_s1 + $0x23ec] ss:$16 sps:$4 sm:$0xff]  }
 0x44e   : > { %10010 = vmatmul.mubr.bf16.gmra.mrb[4].mxu0 %v9308_v55  ;;  %10132 = vmatmul.mubr.bf16.gmra.mrb[4].mxu1 %v9308_v55  ;;  %v9302_v55 = vrot.slane %v18560_v20, 3 }
 0x44f   : > { %10033 = vmatpush1.bf16.msra.mxu0 %v14930_v47  ;;  %10155 = vmatpush1.bf16.msra.mxu1 %v14933_v41  ;;  %v15008_v47 = vld [vmem:[%s19134_s1 + $0x23e0] ss:$16 sps:$4 sm:$0xff]  }
 0x450   : > { %10034 = vmatprep.subr.bf16.mxu0 %v14938_v61  ;;  %10156 = vmatprep.subr.bf16.mxu1 %v14941_v53  ;;  %v9312_v20 = vsel %vm3698_vm2, %v9302_v55, %v9311_v58 }
 0x451   : > { %10019 = vmatprep.mubr.bf16.mxu0 %v9309_v35  ;;  %10141 = vmatprep.mubr.bf16.mxu1 %v9309_v35  ;;  %v14993_v35 = vld [vmem:[%s19134_s1 + $0x2388] ss:$16 sps:$4 sm:$0xff]  }
 0x453   : > { %10035 = vmatpush1.bf16.msra.mxu0 %v14936_v52  ;;  %10157 = vmatpush1.bf16.msra.mxu1 %v14939_v63 }
 0x454   : > { %10036 = vmatprep.subr.bf16.mxu0 %v14944_v17  ;;  %10158 = vmatprep.subr.bf16.mxu1 %v14947_v2  ;;  %v10231_v17 = vld [vmem:[%s19135_s2] sm:$0xf] }
 0x456   : > { %10020 = vmatmul.mubr.bf16.gmra.mrb[8].mxu0 %v9307_v38  ;;  %10142 = vmatmul.mubr.bf16.gmra.mrb[8].mxu1 %v9307_v38  ;;  %v12639_v38 = vcombine.low %v18878_v59, %v18397_v36  ;;  %v15011_v36 = vld [vmem:[%s19134_s1 + $0x23e8] ss:$16 sps:$4 sm:$0xff]   ;;  %v9313_v59 = vrot.slane %v18573_v27, 3  ;;  %v10233_v27 = vlaneseq }
 0x457   : > { %10037 = vmatpush1.bf16.msra.mxu0 %v14942_v6  ;;  %10159 = vmatpush1.bf16.msra.mxu1 %v14945_v39 }
 0x458   : > { %10038 = vmatprep.subr.bf16.mxu0 %v14950_v45  ;;  %10160 = vmatprep.subr.bf16.mxu1 %v14953_v7  ;;  %v9301_v41 = vrot.slane %v12639_v38, 3  ;;  %v9314_v53 = vsel %vm3698_vm2, %v9305_v54, %v9313_v59  ;;  %v10234_v52 = vshrl.u32 %v10233_v27, 7 }
 0x459   : > { %10060 = vmatprep.mubr.bf16.mxu0 %v9306_v34  ;;  %10182 = vmatprep.mubr.bf16.mxu1 %v9306_v34 }
 0x45a   : > { %v9303_v61 = vsel %vm3698_vm2, %v9301_v41, %v9302_v55  ;;  %v10235_v63 = vsub.s32 0, %v10234_v52  ;;  %v10243_v31 = vsub.s32 2, %v10234_v52  ;;  %v10239_v2 = vsub.s32 1, %v10234_v52 }
 0x45b   : > { %10039 = vmatpush1.bf16.msra.mxu0 %v14948_v3  ;;  %10161 = vmatpush1.bf16.msra.mxu1 %v14951_v46  ;;  %v10247_v49 = vsub.s32 3, %v10234_v52 }
 0x45c   : > { %10040 = vmatprep.subr.bf16.mxu0 %v14956_v9  ;;  %10162 = vmatprep.subr.bf16.mxu1 %v14959_v42  ;;  %v19058_v54 = vrot.slane %v10231_v17, %v10235_v63  ;;  %v19060_v6 = vrot.slane %v10231_v17, %v10243_v31  ;;  %v19062_v39 = vrot.slane %v10231_v17, %v10239_v2 }
 0x45d   : > { %v19064_v45 = vrot.slane %v10231_v17, %v10247_v49  ;;  %v19066_v7 = vrot.slane %v10273_v60, %v10235_v63  ;;  %v19068_v34 = vrot.slane %v10273_v60, %v10243_v31  ;;  %v10343_v3 = vpop.permute.xlu0 %10342  ;;  %v19070_v42 = vrot.slane %v10273_v60, %v10239_v2 }
 0x45f   : > { %10041 = vmatpush1.bf16.msra.mxu0 %v14954_v10  ;;  %10163 = vmatpush1.bf16.msra.mxu1 %v14957_v11  ;;  %v19072_v10 = vrot.slane %v10273_v60, %v10247_v49 }
 0x460   : > { %10042 = vmatprep.subr.bf16.mxu0 %v14962_v12  ;;  %10164 = vmatprep.subr.bf16.mxu1 %v14965_v4 }
 0x463   : > { %10043 = vmatpush1.bf16.msra.mxu0 %v14960_v14  ;;  %10165 = vmatpush1.bf16.msra.mxu1 %v14963_v57 }
 0x464   : > { %10044 = vmatprep.subr.bf16.mxu0 %v14968_v15  ;;  %10166 = vmatprep.subr.bf16.mxu1 %v14971_v50 }
 0x467   : > { %10045 = vmatpush1.bf16.msra.mxu0 %v14966_v56  ;;  %10167 = vmatpush1.bf16.msra.mxu1 %v14969_v0 }
 0x468   : > { %10046 = vmatprep.subr.bf16.mxu0 %v14974_v18  ;;  %10168 = vmatprep.subr.bf16.mxu1 %v14977_v32 }
 0x46b   : > { %10047 = vmatpush1.bf16.msra.mxu0 %v14972_v19  ;;  %10169 = vmatpush1.bf16.msra.mxu1 %v14975_v5 }
 0x46c   : > { %10048 = vmatprep.subr.bf16.mxu0 %v14980_v51  ;;  %10170 = vmatprep.subr.bf16.mxu1 %v14983_v48 }
 0x46f   : > { %10049 = vmatpush1.bf16.msra.mxu0 %v14978_v21  ;;  %10171 = vmatpush1.bf16.msra.mxu1 %v14981_v22 }
 0x470   : > { %10050 = vmatprep.subr.bf16.mxu0 %v14986_v23  ;;  %10172 = vmatprep.subr.bf16.mxu1 %v14989_v25 }
 0x473   : > { %10051 = vmatpush1.bf16.msra.mxu0 %v14984_v26  ;;  %10173 = vmatpush1.bf16.msra.mxu1 %v14987_v8 }
 0x474   : > { %10052 = vmatprep.subr.bf16.mxu0 %v14992_v13  ;;  %10174 = vmatprep.subr.bf16.mxu1 %v14995_v28 }
 0x477   : > { %10053 = vmatpush1.bf16.msra.mxu0 %v14990_v62  ;;  %10175 = vmatpush1.bf16.msra.mxu1 %v14993_v35 }
 0x478   : > { %10054 = vmatprep.subr.bf16.mxu0 %v14998_v29  ;;  %10176 = vmatprep.subr.bf16.mxu1 %v15001_v33 }
 0x47b   : > { %10055 = vmatpush1.bf16.msra.mxu0 %v14996_v1  ;;  %10177 = vmatpush1.bf16.msra.mxu1 %v14999_v24 }
 0x47c   : > { %10056 = vmatprep.subr.bf16.mxu0 %v15004_v40  ;;  %10178 = vmatprep.subr.bf16.mxu1 %v15007_v37 }
 0x47f   : > { %10057 = vmatpush1.bf16.msra.mxu0 %v15002_v43  ;;  %10179 = vmatpush1.bf16.msra.mxu1 %v15005_v44 }
 0x480   : > { %10058 = vmatprep.subr.bf16.mxu0 %v15010_v30  ;;  %10180 = vmatprep.subr.bf16.mxu1 %v15013_v16  ;;  %v10353_v43 = vpop.permute.xlu1 %10352 }
 0x481   : > { %v10348_v33 = vpop.permute.xlu0 %10347 }
 0x483   : > { %10059 = vmatpush1.bf16.msra.mxu0 %v15008_v47  ;;  %10181 = vmatpush1.bf16.msra.mxu1 %v15011_v36 }
 0x486   : > { %10061 = vmatmul.mubr.bf16.vlgmr.msra.gmra.mrb[0].mxu0 %v9303_v61  ;;  %10183 = vmatmul.mubr.bf16.vlgmr.msra.gmra.mrb[0].mxu1 %v9303_v61 }
 0x487   : > { %10070 = vmatprep.mubr.bf16.mxu0 %v9314_v53  ;;  %10192 = vmatprep.mubr.bf16.mxu1 %v9314_v53 }
 0x48e   : > { %10071 = vmatmul.mubr.bf16.gmra.mrb[4].mxu0 %v9312_v20  ;;  %10193 = vmatmul.mubr.bf16.gmra.mrb[4].mxu1 %v9312_v20 }
 0x48f   : > { %10080 = vmatprep.mubr.bf16.mxu0 %v9313_v59  ;;  %10202 = vmatprep.mubr.bf16.mxu1 %v9313_v59 }
 0x496   : > { %10081 = vmatmul.mubr.bf16.gmra.mrb[8].mxu0 %v9311_v58  ;;  %10203 = vmatmul.mubr.bf16.gmra.mrb[8].mxu1 %v9311_v58 }
 0x559   : > { %v10062_v46 = vpop.f32.mrb[0].mxu0  ;;  %v10184_v9 = vpop.f32.mrb[0].mxu1 }
 0x55a   : > { %v10253_v11 = vmul.f32 %v19058_v54, %v10062_v46  ;;  %v10255_v12 = vmul.f32 %v19060_v6, %v10184_v9  ;;  %v10064_v4 = vpop.f32.mrb[1].mxu0  ;;  %v10186_v14 = vpop.f32.mrb[1].mxu1 }
 0x55b   : > { %v10254_v57 = vmul.f32 %v19062_v39, %v10064_v4  ;;  %v10256_v15 = vmul.f32 %v19064_v45, %v10186_v14  ;;  %v10066_v50 = vpop.f32.mrb[2].mxu0  ;;  %v10188_v56 = vpop.f32.mrb[2].mxu1 }
 0x55c   : > { %v10295_v0 = vadd.f32 %v19066_v7, %v10253_v11  ;;  %v10297_v18 = vadd.f32 %v19068_v34, %v10255_v12  ;;  %v10257_v32 = vmul.f32 %v19058_v54, %v10066_v50  ;;  %v10259_v19 = vmul.f32 %v19060_v6, %v10188_v56  ;;  %v10068_v5 = vpop.f32.mrb[3].mxu0  ;;  %v10190_v51 = vpop.f32.mrb[3].mxu1 }
 0x55d   : > { %v10296_v48 = vadd.f32 %v19070_v42, %v10254_v57  ;;  %v10298_v21 = vadd.f32 %v19072_v10, %v10256_v15  ;;  %v10258_v22 = vmul.f32 %v19062_v39, %v10068_v5  ;;  %v10260_v23 = vmul.f32 %v19064_v45, %v10190_v51 }
 0x55e   : > { %v10315_v25 = vmax.f32 %v10295_v0, 0.0  ;;  %v10317_v26 = vmax.f32 %v10297_v18, 0.0  ;;  %v10299_v8 = vadd.f32 %v19066_v7, %v10257_v32  ;;  %v10301_v13 = vadd.f32 %v19068_v34, %v10259_v19 }
 0x55f   : > { %v10316_v28 = vmax.f32 %v10296_v48, 0.0  ;;  %v10318_v62 = vmax.f32 %v10298_v21, 0.0  ;;  %v10300_v35 = vadd.f32 %v19070_v42, %v10258_v22  ;;  %v10302_v29 = vadd.f32 %v19072_v10, %v10260_v23  ;;  %v10358_v22 = vpop.permute.xlu1 %10357 }
 0x560   : > { %v10319_v1 = vmax.f32 %v10299_v8, 0.0  ;;  %v10321_v24 = vmax.f32 %v10301_v13, 0.0  ;;  %v10365_v40 = vmul.f32 %v10343_v3, %v10315_v25  ;;  %v10367_v37 = vmul.f32 %v10343_v3, %v10317_v26 }
 0x561   : > { %v10320_v44 = vmax.f32 %v10300_v35, 0.0  ;;  %v10322_v38 = vmax.f32 %v10302_v29, 0.0  ;;  %v10366_v30 = vmul.f32 %v10343_v3, %v10316_v28  ;;  %v10368_v16 = vmul.f32 %v10343_v3, %v10318_v62  ;;  %v10072_v47 = vpop.f32.mrb[4].mxu0  ;;  %v10194_v36 = vpop.f32.mrb[4].mxu1 }
 0x562   : > { %v10369_v41 = vmul.f32 %v10348_v33, %v10319_v1  ;;  %v10371_v55 = vmul.f32 %v10348_v33, %v10321_v24  ;;  %v10261_v59 = vmul.f32 %v19058_v54, %v10072_v47  ;;  %v10263_v61 = vmul.f32 %v19060_v6, %v10194_v36  ;;  %v10074_v53 = vpop.f32.mrb[5].mxu0  ;;  %v10196_v58 = vpop.f32.mrb[5].mxu1 }
 0x563   : > { %v12781_v20 = vpack.c.bf16 %v10366_v30, %v10365_v40  ;;  %v12782_v27 = vpack.c.bf16 %v10368_v16, %v10367_v37  ;;  %v10370_v52 = vmul.f32 %v10348_v33, %v10320_v44  ;;  %v10372_v63 = vmul.f32 %v10348_v33, %v10322_v38  ;;  %v10076_v31 = vpop.f32.mrb[6].mxu0  ;;  %v10198_v17 = vpop.f32.mrb[6].mxu1 }
 0x564   : > { %v10303_v2 = vadd.f32 %v19066_v7, %v10261_v59  ;;  %v10305_v49 = vadd.f32 %v19068_v34, %v10263_v61  ;;  %v10262_v60 = vmul.f32 %v19062_v39, %v10074_v53  ;;  %v10264_v3 = vmul.f32 %v19064_v45, %v10196_v58  ;;  %v10078_v46 = vpop.f32.mrb[7].mxu0  ;;  %v10200_v9 = vpop.f32.mrb[7].mxu1 }
 0x565   : > { %10449 = vst [vmem:[%s19094_s25] sm:$0xff] %v12781_v20  ;;  %10450 = vst [vmem:[%s19094_s25 + $0x8] sm:$0xff] %v12782_v27  ;;  %v12783_v11 = vpack.c.bf16 %v10370_v52, %v10369_v41  ;;  %v12784_v12 = vpack.c.bf16 %v10372_v63, %v10371_v55  ;;  %v10265_v4 = vmul.f32 %v19058_v54, %v10076_v31  ;;  %v10363_v63 = vpop.permute.xlu0 %10362 }
 0x566   : > { %v10267_v14 = vmul.f32 %v19060_v6, %v10198_v17  ;;  %v10323_v57 = vmax.f32 %v10303_v2, 0.0  ;;  %v10325_v15 = vmax.f32 %v10305_v49, 0.0  ;;  %v10304_v50 = vadd.f32 %v19070_v42, %v10262_v60 }
 0x567   : > { %v10306_v56 = vadd.f32 %v19072_v10, %v10264_v3  ;;  %10451 = vst [vmem:[%s19094_s25 + $0x10] sm:$0xff] %v12783_v11  ;;  %10452 = vst [vmem:[%s19094_s25 + $0x18] sm:$0xff] %v12784_v12  ;;  %v10307_v0 = vadd.f32 %v19066_v7, %v10265_v4  ;;  %v10266_v32 = vmul.f32 %v19062_v39, %v10078_v46 }
 0x568   : > { %v10309_v18 = vadd.f32 %v19068_v34, %v10267_v14  ;;  %v10268_v19 = vmul.f32 %v19064_v45, %v10200_v9  ;;  %v10324_v5 = vmax.f32 %v10304_v50, 0.0  ;;  %v10373_v48 = vmul.f32 %v10353_v43, %v10323_v57 }
 0x569   : > { %v10326_v51 = vmax.f32 %v10306_v56, 0.0  ;;  %v10375_v21 = vmul.f32 %v10353_v43, %v10325_v15  ;;  %v10327_v23 = vmax.f32 %v10307_v0, 0.0  ;;  %v10308_v26 = vadd.f32 %v19070_v42, %v10266_v32  ;;  %v10082_v13 = vpop.f32.mrb[8].mxu0  ;;  %v10204_v28 = vpop.f32.mrb[8].mxu1 }
 0x56a   : > { %v10329_v25 = vmax.f32 %v10309_v18, 0.0  ;;  %v10310_v8 = vadd.f32 %v19072_v10, %v10268_v19  ;;  %v10374_v62 = vmul.f32 %v10353_v43, %v10324_v5  ;;  %v10269_v29 = vmul.f32 %v19058_v54, %v10082_v13  ;;  %v10084_v1 = vpop.f32.mrb[9].mxu0  ;;  %v10206_v24 = vpop.f32.mrb[9].mxu1 }
 0x56b   : > { %v10376_v35 = vmul.f32 %v10353_v43, %v10326_v51  ;;  %v10271_v33 = vmul.f32 %v19060_v6, %v10204_v28  ;;  %v10328_v40 = vmax.f32 %v10308_v26, 0.0  ;;  %v10377_v44 = vmul.f32 %v10358_v22, %v10327_v23  ;;  %v10086_v30 = vpop.f32.mrb[10].mxu0  ;;  %v10208_v16 = vpop.f32.mrb[10].mxu1 }
 0x56c   : > { %v10330_v37 = vmax.f32 %v10310_v8, 0.0  ;;  %v10379_v38 = vmul.f32 %v10358_v22, %v10329_v25  ;;  %v12785_v47 = vpack.c.bf16 %v10374_v62, %v10373_v48  ;;  %v10311_v41 = vadd.f32 %v19066_v7, %v10269_v29  ;;  %v10087_v54 = vpop.f32.mrb[11].mxu0  ;;  %v10209_v6 = vpop.f32.mrb[11].mxu1 }
 0x56d   : > { %v12786_v36 = vpack.c.bf16 %v10376_v35, %v10375_v21  ;;  %v10313_v43 = vadd.f32 %v19068_v34, %v10271_v33  ;;  %v10378_v55 = vmul.f32 %v10358_v22, %v10328_v40  ;;  %v10270_v61 = vmul.f32 %v19062_v39, %v10084_v1 }
 0x56e   : > { %v10380_v59 = vmul.f32 %v10358_v22, %v10330_v37  ;;  %v10272_v53 = vmul.f32 %v19064_v45, %v10206_v24  ;;  %10453 = vst [vmem:[%s19094_s25 + $0x20] sm:$0xff] %v12785_v47  ;;  %v10331_v58 = vmax.f32 %v10311_v41, 0.0 }
 0x56f   : > { %10454 = vst [vmem:[%s19094_s25 + $0x28] sm:$0xff] %v12786_v36  ;;  %v10333_v20 = vmax.f32 %v10313_v43, 0.0  ;;  %v12787_v27 = vpack.c.bf16 %v10378_v55, %v10377_v44  ;;  %v10312_v34 = vadd.f32 %v19070_v42, %v10270_v61 }
 0x570   : > { %v12788_v7 = vpack.c.bf16 %v10380_v59, %v10379_v38  ;;  %v10314_v52 = vadd.f32 %v19072_v10, %v10272_v53  ;;  %v10381_v31 = vmul.f32 %v10363_v63, %v10331_v58 }
 0x571   : > { %10455 = vst [vmem:[%s19094_s25 + $0x30] sm:$0xff] %v12787_v27  ;;  %v10383_v17 = vmul.f32 %v10363_v63, %v10333_v20  ;;  %v10332_v39 = vmax.f32 %v10312_v34, 0.0 }
 0x572   : > { %10456 = vst [vmem:[%s19094_s25 + $0x38] sm:$0xff] %v12788_v7  ;;  %v10334_v2 = vmax.f32 %v10314_v52, 0.0 }
 0x573   : > { %v10382_v45 = vmul.f32 %v10363_v63, %v10332_v39 }
 0x574   : > { %v10384_v49 = vmul.f32 %v10363_v63, %v10334_v2 }
 0x575   : > { %v12789_v60 = vpack.c.bf16 %v10382_v45, %v10381_v31 }
 0x576   : > { %v12790_v3 = vpack.c.bf16 %v10384_v49, %v10383_v17 }
 0x577   : > { %10457 = vst [vmem:[%s19094_s25 + $0x40] sm:$0x33] %v12789_v60 }
 0x578   : > { %10458 = vst [vmem:[%s19094_s25 + $0x48] sm:$0x33] %v12790_v3 }
 0x579 PF: > { %s15_s18 = sadd.s32 1, %s15038_s18  }
 0x57a   : > { %p12_p4 = scmp.ge.s32.totalorder %s15_s18, 4  }
 0x57c   :  { %14 = sbr.rel (!%p12_p4) target bundleno = 1 (0x1), region = 78 }

</bundles_post_ra>
